<compile_context>
chip_gen: v7x
topology: tpu7x:2x2x1
jax: 0.10.0
libtpu: 0.0.40
codegen_flags: <defaults>
</compile_context>

<pallas_src>
import functools
import math

import jax
import jax.numpy as jnp
from jax.experimental import pallas as pl
from jax.experimental.pallas import tpu as pltpu

# ---------------- configuration (small, lane-friendly shapes) ----------------
S_LEN = 128      # sequence length (tokens)
BATCH = 2        # batch size
D_MODEL = 128    # d_model
NHEAD = 4        # attention heads  -> head_dim = 32
DIM_FF = 256     # feedforward dim
HEAD_DIM = D_MODEL // NHEAD

NEG_BIG = -1e30  # finite "minus infinity" for the key-padding mask


# ---------------- fused transformer-encoder-layer kernel ----------------
def _encoder_layer_kernel(src_ref, pos_ref, bias_ref,
                          wqk_ref, wv_ref, wo_ref, w1_ref, w2_ref,
                          consts_ref, out_ref, *, nhead, head_dim, d_ff):
    f32, bf16 = jnp.float32, jnp.bfloat16

    src_bf = src_ref[...]                      # (S, D) bf16 (matmul / residual source)
    src = src_bf.astype(f32)                   # residual path in f32
    bias = bias_ref[...]                       # (1, S) f32: 0 valid key, -1e30 padded key
    S, D = src.shape

    # packed small operands: one (8, W) f32 tile, sliced statically
    c = consts_ref[...]
    bqk = c[0:1, :2 * D]                       # (1, 2D)  [bq*scale | bk]
    b1 = c[1:2, :d_ff]                         # (1, FF)
    bv = c[2:3, :D]
    bo = c[2:3, D:2 * D]
    b2 = c[3:4, :D]
    ln1g = c[3:4, D:2 * D]
    ln1b = c[4:5, :D]
    ln2g = c[4:5, D:2 * D]
    ln2b = c[5:6, :D]

    # --- fused q/k projection (shared src+pos input; softmax scale folded into Wq/bq) ---
    qk_in = (src_bf + pos_ref[...]).astype(bf16)
    qk = jnp.dot(qk_in, wqk_ref[...], preferred_element_type=f32) + bqk        # (S, 2D) f32
    v = jnp.dot(src_bf, wv_ref[...], preferred_element_type=f32) + bv          # (S, D)  f32

    q = qk[:, :D]        # already scaled by 1/sqrt(head_dim)
    k = qk[:, D:]

    # --- per-head attention with deferred softmax normalization ---
    # exp kept in f32 for v5e numerical parity (v6e/v7x could use bf16 exp).
    head_outs = []
    for h in range(nhead):
        lo = h * head_dim
        hi = lo + head_dim
        qh = q[:, lo:hi].astype(bf16)                                          # (S, dh)
        kh = k[:, lo:hi].astype(bf16)
        vh = v[:, lo:hi].astype(bf16)
        s = jax.lax.dot_general(qh, kh, (((1,), (1,)), ((), ())),
                                preferred_element_type=f32) + bias             # (S, S) f32
        m = jnp.max(s, axis=-1, keepdims=True)
        e = jnp.exp(s - m)                                                     # unnormalized
        r = jnp.sum(e, axis=-1, keepdims=True)                                 # (S, 1)
        o_un = jnp.dot(e.astype(bf16), vh, preferred_element_type=f32)         # (S, dh)
        o_h = o_un * pl.reciprocal(r, approx=True)                             # EUP recip
        head_outs.append(o_h.astype(bf16))

    # single K=D output projection over the concatenated heads
    o_cat = jnp.concatenate(head_outs, axis=-1)                                # (S, D) bf16
    attn_out = jnp.dot(o_cat, wo_ref[...], preferred_element_type=f32) + bo    # (S, D) f32

    # --- residual + LayerNorm 1 (f32) ---
    x1 = src + attn_out
    mean = jnp.mean(x1, axis=-1, keepdims=True)
    xc = x1 - mean
    var = jnp.mean(xc * xc, axis=-1, keepdims=True)
    x1 = xc * jax.lax.rsqrt(var + 1e-5) * ln1g + ln1b

    # --- FFN: linear1 -> ReLU -> linear2 ---
    h1 = jnp.dot(x1.astype(bf16), w1_ref[...], preferred_element_type=f32) + b1
    h1 = jnp.maximum(h1, 0.0)
    ff = jnp.dot(h1.astype(bf16), w2_ref[...], preferred_element_type=f32) + b2

    # --- residual + LayerNorm 2 (f32) ---
    x2 = x1 + ff
    mean = jnp.mean(x2, axis=-1, keepdims=True)
    xc = x2 - mean
    var = jnp.mean(xc * xc, axis=-1, keepdims=True)
    out_ref[...] = xc * jax.lax.rsqrt(var + 1e-5) * ln2g + ln2b


def transformer_encoder_layer_forward(params, src, key_padding_mask, pos):
    """PyTorch-layout inputs: src/pos (S, B, D), key_padding_mask (B, S) bool (True = pad)."""
    S, Bn, Dd = src.shape
    FFd = params["w1"].shape[1]
    dh = Dd // NHEAD
    scale = float(dh) ** -0.5

    # layout prep: bf16 cast fused into the transpose halves its HBM writeback + kernel DMA
    src_b = jnp.transpose(src.astype(jnp.bfloat16), (1, 0, 2))                 # (B, S, D) bf16
    pos_b = jnp.transpose(pos.astype(jnp.bfloat16), (1, 0, 2))
    bias = jnp.where(key_padding_mask, NEG_BIG, 0.0).astype(jnp.float32)[:, None, :]  # (B,1,S)

    bf = lambda a: a.astype(jnp.bfloat16)

    # fused q/k weight with 1/sqrt(head_dim) folded into the q half (one-time weight transform)
    wqk = bf(jnp.concatenate([params["wq"] * scale, params["wk"]], axis=1))    # (D, 2D) bf16
    wv, wo = bf(params["wv"]), bf(params["wo"])
    w1, w2 = bf(params["w1"]), bf(params["w2"])

    # pack all small bias / LayerNorm operands into one (8, W) f32 array (single DMA)
    W = max(2 * Dd, FFd)
    pad = lambda a: jnp.pad(a.astype(jnp.float32), (0, W - a.shape[0]))
    consts = jnp.stack([
        pad(jnp.concatenate([params["bq"] * scale, params["bk"]])),            # row 0: bqk
        pad(params["b1"]),                                                     # row 1: b1
        pad(jnp.concatenate([params["bv"], params["bo"]])),                    # row 2: bv | bo
        pad(jnp.concatenate([params["b2"], params["ln1_g"]])),                 # row 3: b2 | g1
        pad(jnp.concatenate([params["ln1_b"], params["ln2_g"]])),              # row 4: b1n| g2
        pad(params["ln2_b"]),                                                  # row 5: b2n
        jnp.zeros((W,), jnp.float32),
        jnp.zeros((W,), jnp.float32),
    ])                                                                         # (8, W) f32

    def per_batch(shape):
        return pl.BlockSpec(shape, lambda b: (b,) + (0,) * (len(shape) - 1))

    def full(shape):
        return pl.BlockSpec(shape, lambda b: (0,) * len(shape))

    kernel = functools.partial(_encoder_layer_kernel, nhead=NHEAD, head_dim=dh, d_ff=FFd)
    out = pl.pallas_call(
        kernel,
        out_shape=jax.ShapeDtypeStruct((Bn, S, Dd), jnp.float32),
        grid=(Bn,),
        in_specs=[
            per_batch((None, S, Dd)),          # src   (batch dim squeezed)
            per_batch((None, S, Dd)),          # pos
            per_batch((None, 1, S)),           # key-padding bias
            full((Dd, 2 * Dd)),                # wqk
            full((Dd, Dd)),                    # wv
            full((Dd, Dd)),                    # wo
            full((Dd, FFd)),                   # w1
            full((FFd, Dd)),                   # w2
            full((8, W)),                      # packed biases + LayerNorm params
        ],
        out_specs=per_batch((None, S, Dd)),
        compiler_params=pltpu.CompilerParams(dimension_semantics=("parallel",)),
    )(src_b, pos_b, bias, wqk, wv, wo, w1, w2, consts)

    return jnp.transpose(out, (1, 0, 2))       # back to (S, B, D)


# ---------------- pure-JAX f32 reference (mirrors forward_post in eval mode) ----------------
def _layernorm_ref(x, g, b, eps=1e-5):
    mean = jnp.mean(x, axis=-1, keepdims=True)
    var = jnp.mean((x - mean) ** 2, axis=-1, keepdims=True)
    return (x - mean) * jax.lax.rsqrt(var + eps) * g + b


def reference_forward(p, src, key_padding_mask, pos):
    S, Bn, Dd = src.shape
    H, dh = NHEAD, Dd // NHEAD
    x = src + pos
    q = x @ p["wq"] + p["bq"]
    k = x @ p["wk"] + p["bk"]
    v = src @ p["wv"] + p["bv"]

    def heads(t):
        return t.reshape(S, Bn, H, dh).transpose(1, 2, 0, 3)                   # (B, H, S, dh)

    qh = heads(q) * (float(dh) ** -0.5)
    kh = heads(k)
    vh = heads(v)
    s = jnp.einsum("bhqd,bhkd->bhqk", qh, kh)
    s = jnp.where(key_padding_mask[:, None, None, :], -jnp.inf, s)
    a = jax.nn.softmax(s, axis=-1)
    o = jnp.einsum("bhqk,bhkd->bhqd", a, vh)
    o = o.transpose(2, 0, 1, 3).reshape(S, Bn, Dd)
    attn_out = o @ p["wo"] + p["bo"]
    x1 = _layernorm_ref(src + attn_out, p["ln1_g"], p["ln1_b"])
    ff = jnp.maximum(x1 @ p["w1"] + p["b1"], 0.0) @ p["w2"] + p["b2"]
    return _layernorm_ref(x1 + ff, p["ln2_g"], p["ln2_b"])


# ---------------- deterministic parameter init ----------------
def init_params(key):
    ks = iter(jax.random.split(key, 16))

    def dense(fi, fo):
        w = jax.random.normal(next(ks), (fi, fo), jnp.float32) / math.sqrt(fi)
        b = 0.1 * jax.random.normal(next(ks), (fo,), jnp.float32)
        return w, b

    p = {}
    for name, (fi, fo) in [("wq", (D_MODEL, D_MODEL)), ("wk", (D_MODEL, D_MODEL)),
                           ("wv", (D_MODEL, D_MODEL)), ("wo", (D_MODEL, D_MODEL)),
                           ("w1", (D_MODEL, DIM_FF)), ("w2", (DIM_FF, D_MODEL))]:
        w, b = dense(fi, fo)
        p[name] = w
        p["b" + name[1:]] = b
    p["ln1_g"] = jnp.ones((D_MODEL,), jnp.float32)
    p["ln1_b"] = jnp.zeros((D_MODEL,), jnp.float32)
    p["ln2_g"] = jnp.ones((D_MODEL,), jnp.float32)
    p["ln2_b"] = jnp.zeros((D_MODEL,), jnp.float32)
    return p


if __name__ == "__main__":
    key = jax.random.PRNGKey(0)
    k_par, k_src, k_pos, k_mask = jax.random.split(key, 4)
    params = init_params(k_par)

    src = jax.random.normal(k_src, (S_LEN, BATCH, D_MODEL), jnp.float32)
    pos = jax.random.normal(k_pos, (S_LEN, BATCH, D_MODEL), jnp.float32)
    key_padding_mask = jax.random.uniform(k_mask, (BATCH, S_LEN)) < 0.2   # True = padded key
    key_padding_mask = key_padding_mask.at[:, 0].set(False)               # keep >=1 valid key

    fwd = jax.jit(transformer_encoder_layer_forward)
    out = jax.block_until_ready(fwd(params, src, key_padding_mask, pos))
    assert out.shape == (S_LEN, BATCH, D_MODEL)

    ref = reference_forward(params, src, key_padding_mask, pos)
    max_err = float(jnp.max(jnp.abs(out - ref)))
    assert bool(jnp.all(jnp.isfinite(out))), "non-finite output"
    # bf16 inputs / MXU operands with f32 accumulation + approx reciprocal -> loose tolerance
    assert max_err < 0.3, f"mismatch vs reference: max abs err = {max_err}"
    print("KERNEL_OK")
</pallas_src>

<mosaic_0001>
module attributes {stable_mosaic.version = 11 : i64} {
  func.func @_encoder_layer_kernel(%arg0: i32, %arg1: memref<1x128x128xbf16, #tpu.memory_space<vmem>>, %arg2: memref<1x128x128xbf16, #tpu.memory_space<vmem>>, %arg3: memref<1x1x128xf32, #tpu.memory_space<vmem>>, %arg4: memref<128x256xbf16, #tpu.memory_space<vmem>>, %arg5: memref<128x128xbf16, #tpu.memory_space<vmem>>, %arg6: memref<128x128xbf16, #tpu.memory_space<vmem>>, %arg7: memref<128x256xbf16, #tpu.memory_space<vmem>>, %arg8: memref<256x128xbf16, #tpu.memory_space<vmem>>, %arg9: memref<8x256xf32, #tpu.memory_space<vmem>>, %arg10: memref<1x128x128xf32, #tpu.memory_space<vmem>>) attributes {dimension_semantics = [#tpu.dimension_semantics<parallel>], iteration_bounds = array<i64: 2>, scalar_prefetch = 0 : i64, scratch_operands = 0 : i64, tpu.core_type = #tpu.core_type<tc>, window_params = [{transform_indices = @transform_0, window_bounds = array<i64: 1, 128, 128>}, {transform_indices = @transform_1, window_bounds = array<i64: 1, 128, 128>}, {transform_indices = @transform_2, window_bounds = array<i64: 1, 1, 128>}, {pipeline_mode = #tpu.pipeline_mode<synchronous>, transform_indices = @transform_3, window_bounds = array<i64: 128, 256>}, {pipeline_mode = #tpu.pipeline_mode<synchronous>, transform_indices = @transform_4, window_bounds = array<i64: 128, 128>}, {pipeline_mode = #tpu.pipeline_mode<synchronous>, transform_indices = @transform_5, window_bounds = array<i64: 128, 128>}, {pipeline_mode = #tpu.pipeline_mode<synchronous>, transform_indices = @transform_6, window_bounds = array<i64: 128, 256>}, {pipeline_mode = #tpu.pipeline_mode<synchronous>, transform_indices = @transform_7, window_bounds = array<i64: 256, 128>}, {pipeline_mode = #tpu.pipeline_mode<synchronous>, transform_indices = @transform_8, window_bounds = array<i64: 8, 256>}, {transform_indices = @transform_9, window_bounds = array<i64: 1, 128, 128>}]} {
    %c0 = arith.constant 0 : index
    %c0_0 = arith.constant 0 : index
    %c0_1 = arith.constant 0 : index
    %0 = vector.load %arg1[%c0, %c0_0, %c0_1] : memref<1x128x128xbf16, #tpu.memory_space<vmem>>, vector<1x128x128xbf16>
    %1 = vector.shape_cast %0 : vector<1x128x128xbf16> to vector<128x128xbf16>
    %2 = arith.extf %1 : vector<128x128xbf16> to vector<128x128xf32>
    %c0_2 = arith.constant 0 : index
    %c0_3 = arith.constant 0 : index
    %c0_4 = arith.constant 0 : index
    %3 = vector.load %arg3[%c0_2, %c0_3, %c0_4] : memref<1x1x128xf32, #tpu.memory_space<vmem>>, vector<1x1x128xf32>
    %4 = vector.shape_cast %3 : vector<1x1x128xf32> to vector<1x128xf32>
    %c0_5 = arith.constant 0 : index
    %c0_6 = arith.constant 0 : index
    %5 = vector.load %arg9[%c0_5, %c0_6] : memref<8x256xf32, #tpu.memory_space<vmem>>, vector<8x256xf32>
    %6 = vector.extract_strided_slice %5 {offsets = [0, 0], sizes = [1, 256], strides = [1, 1]} : vector<8x256xf32> to vector<1x256xf32>
    %7 = vector.extract_strided_slice %5 {offsets = [1, 0], sizes = [1, 256], strides = [1, 1]} : vector<8x256xf32> to vector<1x256xf32>
    %8 = vector.extract_strided_slice %5 {offsets = [2, 0], sizes = [1, 128], strides = [1, 1]} : vector<8x256xf32> to vector<1x128xf32>
    %9 = vector.extract_strided_slice %5 {offsets = [2, 128], sizes = [1, 128], strides = [1, 1]} : vector<8x256xf32> to vector<1x128xf32>
    %10 = vector.extract_strided_slice %5 {offsets = [3, 0], sizes = [1, 128], strides = [1, 1]} : vector<8x256xf32> to vector<1x128xf32>
    %11 = vector.extract_strided_slice %5 {offsets = [3, 128], sizes = [1, 128], strides = [1, 1]} : vector<8x256xf32> to vector<1x128xf32>
    %12 = vector.extract_strided_slice %5 {offsets = [4, 0], sizes = [1, 128], strides = [1, 1]} : vector<8x256xf32> to vector<1x128xf32>
    %13 = vector.extract_strided_slice %5 {offsets = [4, 128], sizes = [1, 128], strides = [1, 1]} : vector<8x256xf32> to vector<1x128xf32>
    %14 = vector.extract_strided_slice %5 {offsets = [5, 0], sizes = [1, 128], strides = [1, 1]} : vector<8x256xf32> to vector<1x128xf32>
    %c0_7 = arith.constant 0 : index
    %c0_8 = arith.constant 0 : index
    %c0_9 = arith.constant 0 : index
    %15 = vector.load %arg2[%c0_7, %c0_8, %c0_9] : memref<1x128x128xbf16, #tpu.memory_space<vmem>>, vector<1x128x128xbf16>
    %16 = vector.shape_cast %15 : vector<1x128x128xbf16> to vector<128x128xbf16>
    %17 = arith.addf %1, %16 : vector<128x128xbf16>
    %c0_10 = arith.constant 0 : index
    %c0_11 = arith.constant 0 : index
    %18 = vector.load %arg4[%c0_10, %c0_11] : memref<128x256xbf16, #tpu.memory_space<vmem>>, vector<128x256xbf16>
    %cst = arith.constant dense<0.000000e+00> : vector<128x256xf32>
    %19 = tpu.matmul %17, %18, %cst {dimension_numbers = #tpu.dot_dimension_numbers<[1], [0], [0], [1], [0, 0, 1, 1], [], []>} : vector<128x128xbf16>, vector<128x256xbf16>, vector<128x256xf32> -> vector<128x256xf32>
    %20 = vector.broadcast %6 : vector<1x256xf32> to vector<128x256xf32>
    %21 = arith.addf %19, %20 : vector<128x256xf32>
    %c0_12 = arith.constant 0 : index
    %c0_13 = arith.constant 0 : index
    %22 = vector.load %arg5[%c0_12, %c0_13] : memref<128x128xbf16, #tpu.memory_space<vmem>>, vector<128x128xbf16>
    %cst_14 = arith.constant dense<0.000000e+00> : vector<128x128xf32>
    %23 = tpu.matmul %1, %22, %cst_14 {dimension_numbers = #tpu.dot_dimension_numbers<[1], [0], [0], [1], [0, 0, 1, 1], [], []>} : vector<128x128xbf16>, vector<128x128xbf16>, vector<128x128xf32> -> vector<128x128xf32>
    %24 = vector.broadcast %8 : vector<1x128xf32> to vector<128x128xf32>
    %25 = arith.addf %23, %24 : vector<128x128xf32>
    %26 = vector.extract_strided_slice %21 {offsets = [0, 0], sizes = [128, 128], strides = [1, 1]} : vector<128x256xf32> to vector<128x128xf32>
    %27 = vector.extract_strided_slice %21 {offsets = [0, 128], sizes = [128, 128], strides = [1, 1]} : vector<128x256xf32> to vector<128x128xf32>
    %28 = vector.extract_strided_slice %26 {offsets = [0, 0], sizes = [128, 32], strides = [1, 1]} : vector<128x128xf32> to vector<128x32xf32>
    %29 = arith.truncf %28 : vector<128x32xf32> to vector<128x32xbf16>
    %30 = vector.extract_strided_slice %27 {offsets = [0, 0], sizes = [128, 32], strides = [1, 1]} : vector<128x128xf32> to vector<128x32xf32>
    %31 = arith.truncf %30 : vector<128x32xf32> to vector<128x32xbf16>
    %32 = vector.extract_strided_slice %25 {offsets = [0, 0], sizes = [128, 32], strides = [1, 1]} : vector<128x128xf32> to vector<128x32xf32>
    %33 = arith.truncf %32 : vector<128x32xf32> to vector<128x32xbf16>
    %cst_15 = arith.constant dense<0.000000e+00> : vector<128x128xf32>
    %34 = tpu.matmul %29, %31, %cst_15 {dimension_numbers = #tpu.dot_dimension_numbers<[1], [1], [0], [0], [0, 0, 1, 0], [], []>} : vector<128x32xbf16>, vector<128x32xbf16>, vector<128x128xf32> -> vector<128x128xf32>
    %35 = vector.broadcast %4 : vector<1x128xf32> to vector<128x128xf32>
    %36 = arith.addf %34, %35 : vector<128x128xf32>
    %cst_16 = arith.constant dense<0xFF800000> : vector<128xf32>
    %37 = vector.multi_reduction <maximumf>, %36, %cst_16 [1] : vector<128x128xf32> to vector<128xf32>
    %38 = vector.shape_cast %37 : vector<128xf32> to vector<128x1xf32>
    %39 = vector.broadcast %38 : vector<128x1xf32> to vector<128x128xf32>
    %40 = arith.subf %36, %39 : vector<128x128xf32>
    %41 = math.exp %40 : vector<128x128xf32>
    %cst_17 = arith.constant dense<0.000000e+00> : vector<128xf32>
    %42 = vector.multi_reduction <add>, %41, %cst_17 [1] : vector<128x128xf32> to vector<128xf32>
    %43 = vector.shape_cast %42 : vector<128xf32> to vector<128x1xf32>
    %44 = arith.truncf %41 : vector<128x128xf32> to vector<128x128xbf16>
    %cst_18 = arith.constant dense<0.000000e+00> : vector<128x32xf32>
    %45 = tpu.matmul %44, %33, %cst_18 {dimension_numbers = #tpu.dot_dimension_numbers<[1], [0], [0], [1], [0, 0, 1, 1], [], []>} : vector<128x128xbf16>, vector<128x32xbf16>, vector<128x32xf32> -> vector<128x32xf32>
    %46 = tpu.reciprocal %43 {approx = true} : vector<128x1xf32> -> vector<128x1xf32>
    %47 = vector.broadcast %46 : vector<128x1xf32> to vector<128x32xf32>
    %48 = arith.mulf %45, %47 : vector<128x32xf32>
    %49 = arith.truncf %48 : vector<128x32xf32> to vector<128x32xbf16>
    %50 = vector.extract_strided_slice %26 {offsets = [0, 32], sizes = [128, 32], strides = [1, 1]} : vector<128x128xf32> to vector<128x32xf32>
    %51 = arith.truncf %50 : vector<128x32xf32> to vector<128x32xbf16>
    %52 = vector.extract_strided_slice %27 {offsets = [0, 32], sizes = [128, 32], strides = [1, 1]} : vector<128x128xf32> to vector<128x32xf32>
    %53 = arith.truncf %52 : vector<128x32xf32> to vector<128x32xbf16>
    %54 = vector.extract_strided_slice %25 {offsets = [0, 32], sizes = [128, 32], strides = [1, 1]} : vector<128x128xf32> to vector<128x32xf32>
    %55 = arith.truncf %54 : vector<128x32xf32> to vector<128x32xbf16>
    %cst_19 = arith.constant dense<0.000000e+00> : vector<128x128xf32>
    %56 = tpu.matmul %51, %53, %cst_19 {dimension_numbers = #tpu.dot_dimension_numbers<[1], [1], [0], [0], [0, 0, 1, 0], [], []>} : vector<128x32xbf16>, vector<128x32xbf16>, vector<128x128xf32> -> vector<128x128xf32>
    %57 = vector.broadcast %4 : vector<1x128xf32> to vector<128x128xf32>
    %58 = arith.addf %56, %57 : vector<128x128xf32>
    %cst_20 = arith.constant dense<0xFF800000> : vector<128xf32>
    %59 = vector.multi_reduction <maximumf>, %58, %cst_20 [1] : vector<128x128xf32> to vector<128xf32>
    %60 = vector.shape_cast %59 : vector<128xf32> to vector<128x1xf32>
    %61 = vector.broadcast %60 : vector<128x1xf32> to vector<128x128xf32>
    %62 = arith.subf %58, %61 : vector<128x128xf32>
    %63 = math.exp %62 : vector<128x128xf32>
    %cst_21 = arith.constant dense<0.000000e+00> : vector<128xf32>
    %64 = vector.multi_reduction <add>, %63, %cst_21 [1] : vector<128x128xf32> to vector<128xf32>
    %65 = vector.shape_cast %64 : vector<128xf32> to vector<128x1xf32>
    %66 = arith.truncf %63 : vector<128x128xf32> to vector<128x128xbf16>
    %cst_22 = arith.constant dense<0.000000e+00> : vector<128x32xf32>
    %67 = tpu.matmul %66, %55, %cst_22 {dimension_numbers = #tpu.dot_dimension_numbers<[1], [0], [0], [1], [0, 0, 1, 1], [], []>} : vector<128x128xbf16>, vector<128x32xbf16>, vector<128x32xf32> -> vector<128x32xf32>
    %68 = tpu.reciprocal %65 {approx = true} : vector<128x1xf32> -> vector<128x1xf32>
    %69 = vector.broadcast %68 : vector<128x1xf32> to vector<128x32xf32>
    %70 = arith.mulf %67, %69 : vector<128x32xf32>
    %71 = arith.truncf %70 : vector<128x32xf32> to vector<128x32xbf16>
    %72 = vector.extract_strided_slice %26 {offsets = [0, 64], sizes = [128, 32], strides = [1, 1]} : vector<128x128xf32> to vector<128x32xf32>
    %73 = arith.truncf %72 : vector<128x32xf32> to vector<128x32xbf16>
    %74 = vector.extract_strided_slice %27 {offsets = [0, 64], sizes = [128, 32], strides = [1, 1]} : vector<128x128xf32> to vector<128x32xf32>
    %75 = arith.truncf %74 : vector<128x32xf32> to vector<128x32xbf16>
    %76 = vector.extract_strided_slice %25 {offsets = [0, 64], sizes = [128, 32], strides = [1, 1]} : vector<128x128xf32> to vector<128x32xf32>
    %77 = arith.truncf %76 : vector<128x32xf32> to vector<128x32xbf16>
    %cst_23 = arith.constant dense<0.000000e+00> : vector<128x128xf32>
    %78 = tpu.matmul %73, %75, %cst_23 {dimension_numbers = #tpu.dot_dimension_numbers<[1], [1], [0], [0], [0, 0, 1, 0], [], []>} : vector<128x32xbf16>, vector<128x32xbf16>, vector<128x128xf32> -> vector<128x128xf32>
    %79 = vector.broadcast %4 : vector<1x128xf32> to vector<128x128xf32>
    %80 = arith.addf %78, %79 : vector<128x128xf32>
    %cst_24 = arith.constant dense<0xFF800000> : vector<128xf32>
    %81 = vector.multi_reduction <maximumf>, %80, %cst_24 [1] : vector<128x128xf32> to vector<128xf32>
    %82 = vector.shape_cast %81 : vector<128xf32> to vector<128x1xf32>
    %83 = vector.broadcast %82 : vector<128x1xf32> to vector<128x128xf32>
    %84 = arith.subf %80, %83 : vector<128x128xf32>
    %85 = math.exp %84 : vector<128x128xf32>
    %cst_25 = arith.constant dense<0.000000e+00> : vector<128xf32>
    %86 = vector.multi_reduction <add>, %85, %cst_25 [1] : vector<128x128xf32> to vector<128xf32>
    %87 = vector.shape_cast %86 : vector<128xf32> to vector<128x1xf32>
    %88 = arith.truncf %85 : vector<128x128xf32> to vector<128x128xbf16>
    %cst_26 = arith.constant dense<0.000000e+00> : vector<128x32xf32>
    %89 = tpu.matmul %88, %77, %cst_26 {dimension_numbers = #tpu.dot_dimension_numbers<[1], [0], [0], [1], [0, 0, 1, 1], [], []>} : vector<128x128xbf16>, vector<128x32xbf16>, vector<128x32xf32> -> vector<128x32xf32>
    %90 = tpu.reciprocal %87 {approx = true} : vector<128x1xf32> -> vector<128x1xf32>
    %91 = vector.broadcast %90 : vector<128x1xf32> to vector<128x32xf32>
    %92 = arith.mulf %89, %91 : vector<128x32xf32>
    %93 = arith.truncf %92 : vector<128x32xf32> to vector<128x32xbf16>
    %94 = vector.extract_strided_slice %26 {offsets = [0, 96], sizes = [128, 32], strides = [1, 1]} : vector<128x128xf32> to vector<128x32xf32>
    %95 = arith.truncf %94 : vector<128x32xf32> to vector<128x32xbf16>
    %96 = vector.extract_strided_slice %27 {offsets = [0, 96], sizes = [128, 32], strides = [1, 1]} : vector<128x128xf32> to vector<128x32xf32>
    %97 = arith.truncf %96 : vector<128x32xf32> to vector<128x32xbf16>
    %98 = vector.extract_strided_slice %25 {offsets = [0, 96], sizes = [128, 32], strides = [1, 1]} : vector<128x128xf32> to vector<128x32xf32>
    %99 = arith.truncf %98 : vector<128x32xf32> to vector<128x32xbf16>
    %cst_27 = arith.constant dense<0.000000e+00> : vector<128x128xf32>
    %100 = tpu.matmul %95, %97, %cst_27 {dimension_numbers = #tpu.dot_dimension_numbers<[1], [1], [0], [0], [0, 0, 1, 0], [], []>} : vector<128x32xbf16>, vector<128x32xbf16>, vector<128x128xf32> -> vector<128x128xf32>
    %101 = vector.broadcast %4 : vector<1x128xf32> to vector<128x128xf32>
    %102 = arith.addf %100, %101 : vector<128x128xf32>
    %cst_28 = arith.constant dense<0xFF800000> : vector<128xf32>
    %103 = vector.multi_reduction <maximumf>, %102, %cst_28 [1] : vector<128x128xf32> to vector<128xf32>
    %104 = vector.shape_cast %103 : vector<128xf32> to vector<128x1xf32>
    %105 = vector.broadcast %104 : vector<128x1xf32> to vector<128x128xf32>
    %106 = arith.subf %102, %105 : vector<128x128xf32>
    %107 = math.exp %106 : vector<128x128xf32>
    %cst_29 = arith.constant dense<0.000000e+00> : vector<128xf32>
    %108 = vector.multi_reduction <add>, %107, %cst_29 [1] : vector<128x128xf32> to vector<128xf32>
    %109 = vector.shape_cast %108 : vector<128xf32> to vector<128x1xf32>
    %110 = arith.truncf %107 : vector<128x128xf32> to vector<128x128xbf16>
    %cst_30 = arith.constant dense<0.000000e+00> : vector<128x32xf32>
    %111 = tpu.matmul %110, %99, %cst_30 {dimension_numbers = #tpu.dot_dimension_numbers<[1], [0], [0], [1], [0, 0, 1, 1], [], []>} : vector<128x128xbf16>, vector<128x32xbf16>, vector<128x32xf32> -> vector<128x32xf32>
    %112 = tpu.reciprocal %109 {approx = true} : vector<128x1xf32> -> vector<128x1xf32>
    %113 = vector.broadcast %112 : vector<128x1xf32> to vector<128x32xf32>
    %114 = arith.mulf %111, %113 : vector<128x32xf32>
    %115 = arith.truncf %114 : vector<128x32xf32> to vector<128x32xbf16>
    %116 = tpu.concatenate %49, %71, %93, %115 in 1 : vector<128x32xbf16>, vector<128x32xbf16>, vector<128x32xbf16>, vector<128x32xbf16> -> vector<128x128xbf16>
    %c0_31 = arith.constant 0 : index
    %c0_32 = arith.constant 0 : index
    %117 = vector.load %arg6[%c0_31, %c0_32] : memref<128x128xbf16, #tpu.memory_space<vmem>>, vector<128x128xbf16>
    %cst_33 = arith.constant dense<0.000000e+00> : vector<128x128xf32>
    %118 = tpu.matmul %116, %117, %cst_33 {dimension_numbers = #tpu.dot_dimension_numbers<[1], [0], [0], [1], [0, 0, 1, 1], [], []>} : vector<128x128xbf16>, vector<128x128xbf16>, vector<128x128xf32> -> vector<128x128xf32>
    %119 = vector.broadcast %9 : vector<1x128xf32> to vector<128x128xf32>
    %120 = arith.addf %118, %119 : vector<128x128xf32>
    %121 = arith.addf %2, %120 : vector<128x128xf32>
    %cst_34 = arith.constant dense<0.000000e+00> : vector<128xf32>
    %122 = vector.multi_reduction <add>, %121, %cst_34 [1] : vector<128x128xf32> to vector<128xf32>
    %123 = vector.shape_cast %122 : vector<128xf32> to vector<128x1xf32>
    %cst_35 = arith.constant 1.280000e+02 : f32
    %124 = vector.broadcast %cst_35 : f32 to vector<128x1xf32>
    %125 = arith.divf %123, %124 : vector<128x1xf32>
    %126 = vector.broadcast %125 : vector<128x1xf32> to vector<128x128xf32>
    %127 = arith.subf %121, %126 : vector<128x128xf32>
    %128 = arith.mulf %127, %127 : vector<128x128xf32>
    %cst_36 = arith.constant dense<0.000000e+00> : vector<128xf32>
    %129 = vector.multi_reduction <add>, %128, %cst_36 [1] : vector<128x128xf32> to vector<128xf32>
    %130 = vector.shape_cast %129 : vector<128xf32> to vector<128x1xf32>
    %cst_37 = arith.constant 1.280000e+02 : f32
    %131 = vector.broadcast %cst_37 : f32 to vector<128x1xf32>
    %132 = arith.divf %130, %131 : vector<128x1xf32>
    %cst_38 = arith.constant 9.99999974E-6 : f32
    %133 = vector.broadcast %cst_38 : f32 to vector<128x1xf32>
    %134 = arith.addf %132, %133 : vector<128x1xf32>
    %135 = math.rsqrt %134 : vector<128x1xf32>
    %136 = vector.broadcast %135 : vector<128x1xf32> to vector<128x128xf32>
    %137 = arith.mulf %127, %136 : vector<128x128xf32>
    %138 = vector.broadcast %11 : vector<1x128xf32> to vector<128x128xf32>
    %139 = arith.mulf %137, %138 : vector<128x128xf32>
    %140 = vector.broadcast %12 : vector<1x128xf32> to vector<128x128xf32>
    %141 = arith.addf %139, %140 : vector<128x128xf32>
    %142 = arith.truncf %141 : vector<128x128xf32> to vector<128x128xbf16>
    %c0_39 = arith.constant 0 : index
    %c0_40 = arith.constant 0 : index
    %143 = vector.load %arg7[%c0_39, %c0_40] : memref<128x256xbf16, #tpu.memory_space<vmem>>, vector<128x256xbf16>
    %cst_41 = arith.constant dense<0.000000e+00> : vector<128x256xf32>
    %144 = tpu.matmul %142, %143, %cst_41 {dimension_numbers = #tpu.dot_dimension_numbers<[1], [0], [0], [1], [0, 0, 1, 1], [], []>} : vector<128x128xbf16>, vector<128x256xbf16>, vector<128x256xf32> -> vector<128x256xf32>
    %145 = vector.broadcast %7 : vector<1x256xf32> to vector<128x256xf32>
    %146 = arith.addf %144, %145 : vector<128x256xf32>
    %cst_42 = arith.constant 0.000000e+00 : f32
    %147 = vector.broadcast %cst_42 : f32 to vector<128x256xf32>
    %148 = arith.maximumf %146, %147 : vector<128x256xf32>
    %149 = arith.truncf %148 : vector<128x256xf32> to vector<128x256xbf16>
    %c0_43 = arith.constant 0 : index
    %c0_44 = arith.constant 0 : index
    %150 = vector.load %arg8[%c0_43, %c0_44] : memref<256x128xbf16, #tpu.memory_space<vmem>>, vector<256x128xbf16>
    %cst_45 = arith.constant dense<0.000000e+00> : vector<128x128xf32>
    %151 = tpu.matmul %149, %150, %cst_45 {dimension_numbers = #tpu.dot_dimension_numbers<[1], [0], [0], [1], [0, 0, 1, 1], [], []>} : vector<128x256xbf16>, vector<256x128xbf16>, vector<128x128xf32> -> vector<128x128xf32>
    %152 = vector.broadcast %10 : vector<1x128xf32> to vector<128x128xf32>
    %153 = arith.addf %151, %152 : vector<128x128xf32>
    %154 = arith.addf %141, %153 : vector<128x128xf32>
    %cst_46 = arith.constant dense<0.000000e+00> : vector<128xf32>
    %155 = vector.multi_reduction <add>, %154, %cst_46 [1] : vector<128x128xf32> to vector<128xf32>
    %156 = vector.shape_cast %155 : vector<128xf32> to vector<128x1xf32>
    %cst_47 = arith.constant 1.280000e+02 : f32
    %157 = vector.broadcast %cst_47 : f32 to vector<128x1xf32>
    %158 = arith.divf %156, %157 : vector<128x1xf32>
    %159 = vector.broadcast %158 : vector<128x1xf32> to vector<128x128xf32>
    %160 = arith.subf %154, %159 : vector<128x128xf32>
    %161 = arith.mulf %160, %160 : vector<128x128xf32>
    %cst_48 = arith.constant dense<0.000000e+00> : vector<128xf32>
    %162 = vector.multi_reduction <add>, %161, %cst_48 [1] : vector<128x128xf32> to vector<128xf32>
    %163 = vector.shape_cast %162 : vector<128xf32> to vector<128x1xf32>
    %cst_49 = arith.constant 1.280000e+02 : f32
    %164 = vector.broadcast %cst_49 : f32 to vector<128x1xf32>
    %165 = arith.divf %163, %164 : vector<128x1xf32>
    %cst_50 = arith.constant 9.99999974E-6 : f32
    %166 = vector.broadcast %cst_50 : f32 to vector<128x1xf32>
    %167 = arith.addf %165, %166 : vector<128x1xf32>
    %168 = math.rsqrt %167 : vector<128x1xf32>
    %169 = vector.broadcast %168 : vector<128x1xf32> to vector<128x128xf32>
    %170 = arith.mulf %160, %169 : vector<128x128xf32>
    %171 = vector.broadcast %13 : vector<1x128xf32> to vector<128x128xf32>
    %172 = arith.mulf %170, %171 : vector<128x128xf32>
    %173 = vector.broadcast %14 : vector<1x128xf32> to vector<128x128xf32>
    %174 = arith.addf %172, %173 : vector<128x128xf32>
    %c0_51 = arith.constant 0 : index
    %c0_52 = arith.constant 0 : index
    %c0_53 = arith.constant 0 : index
    %175 = vector.load %arg10[%c0_51, %c0_52, %c0_53] : memref<1x128x128xf32, #tpu.memory_space<vmem>>, vector<1x128x128xf32>
    %176 = vector.shape_cast %175 : vector<1x128x128xf32> to vector<128x128xf32>
    %177 = vector.shape_cast %174 : vector<128x128xf32> to vector<1x128x128xf32>
    tpu.vector_store %arg10[%c0_51, %c0_52, %c0_53], %177 {strides = array<i32>} : memref<1x128x128xf32, #tpu.memory_space<vmem>>, vector<1x128x128xf32>,
    return
  }
  func.func @transform_0(%arg0: i32) -> (i32, i32, i32) {
    %c0_i32 = arith.constant 0 : i32
    %c0_i32_0 = arith.constant 0 : i32
    %c0_i32_1 = arith.constant 0 : i32
    return %arg0, %c0_i32, %c0_i32_0 : i32, i32, i32
  }
  func.func @transform_1(%arg0: i32) -> (i32, i32, i32) {
    %c0_i32 = arith.constant 0 : i32
    %c0_i32_0 = arith.constant 0 : i32
    %c0_i32_1 = arith.constant 0 : i32
    return %arg0, %c0_i32, %c0_i32_0 : i32, i32, i32
  }
  func.func @transform_2(%arg0: i32) -> (i32, i32, i32) {
    %c0_i32 = arith.constant 0 : i32
    %c0_i32_0 = arith.constant 0 : i32
    %c0_i32_1 = arith.constant 0 : i32
    return %arg0, %c0_i32, %c0_i32_0 : i32, i32, i32
  }
  func.func @transform_3(%arg0: i32) -> (i32, i32) {
    %c0_i32 = arith.constant 0 : i32
    %c0_i32_0 = arith.constant 0 : i32
    %c0_i32_1 = arith.constant 0 : i32
    return %c0_i32, %c0_i32_0 : i32, i32
  }
  func.func @transform_4(%arg0: i32) -> (i32, i32) {
    %c0_i32 = arith.constant 0 : i32
    %c0_i32_0 = arith.constant 0 : i32
    %c0_i32_1 = arith.constant 0 : i32
    return %c0_i32, %c0_i32_0 : i32, i32
  }
  func.func @transform_5(%arg0: i32) -> (i32, i32) {
    %c0_i32 = arith.constant 0 : i32
    %c0_i32_0 = arith.constant 0 : i32
    %c0_i32_1 = arith.constant 0 : i32
    return %c0_i32, %c0_i32_0 : i32, i32
  }
  func.func @transform_6(%arg0: i32) -> (i32, i32) {
    %c0_i32 = arith.constant 0 : i32
    %c0_i32_0 = arith.constant 0 : i32
    %c0_i32_1 = arith.constant 0 : i32
    return %c0_i32, %c0_i32_0 : i32, i32
  }
  func.func @transform_7(%arg0: i32) -> (i32, i32) {
    %c0_i32 = arith.constant 0 : i32
    %c0_i32_0 = arith.constant 0 : i32
    %c0_i32_1 = arith.constant 0 : i32
    return %c0_i32, %c0_i32_0 : i32, i32
  }
  func.func @transform_8(%arg0: i32) -> (i32, i32) {
    %c0_i32 = arith.constant 0 : i32
    %c0_i32_0 = arith.constant 0 : i32
    %c0_i32_1 = arith.constant 0 : i32
    return %c0_i32, %c0_i32_0 : i32, i32
  }
  func.func @transform_9(%arg0: i32) -> (i32, i32, i32) {
    %c0_i32 = arith.constant 0 : i32
    %c0_i32_0 = arith.constant 0 : i32
    %c0_i32_1 = arith.constant 0 : i32
    return %arg0, %c0_i32, %c0_i32_0 : i32, i32, i32
  }
}

</mosaic_0001>

<bundles_post_ra>
// kernel: transformer_encoder_layer_forward.1
= control target key start
LH: loop header
LB: loop body
LE: loop exit
PB: predicated region body
PF: predicated region fallthrough
CT: control target
= control target key end

     0   :  { %s5329_s30 = smov 0   ;;  %s7554_s0 = inlined_call_operand.vmem [shape: bf16[2,128,128], index: 0, kind: input, shape index: {}]   ;;  %s7555_s1 = inlined_call_operand.vmem [shape: bf16[2,128,128], index: 1, kind: input, shape index: {}]   ;;  %s7556_s2 = inlined_call_operand.vmem [shape: f32[2,1,128], index: 2, kind: input, shape index: {}]   ;;  %s7557_s3 = inlined_call_operand.vmem [shape: bf16[128,256], index: 3, kind: input, shape index: {}]   ;;  %s7558_s4 = inlined_call_operand.vmem [shape: bf16[128,128], index: 4, kind: input, shape index: {}]   ;;  %s7559_s5 = inlined_call_operand.vmem [shape: bf16[128,128], index: 5, kind: input, shape index: {}]   ;;  %s7560_s6 = inlined_call_operand.vmem [shape: bf16[128,256], index: 6, kind: input, shape index: {}]   ;;  %s7561_s7 = inlined_call_operand.vmem [shape: bf16[256,128], index: 7, kind: input, shape index: {}]   ;;  %s7562_s8 = inlined_call_operand.vmem [shape: f32[8,256], index: 8, kind: input, shape index: {}]   ;;  %s7563_s9 = inlined_call_operand.vmem [shape: f32[2,128,128], index: 9, kind: output, shape index: {}]  }
   0x1 LB: > { %s4106_s10 = sadd.s32 4294967295, %s5273_s30   ;;  %p4110_p0 = scmp.ge.s32.totalorder %s5273_s30, 1  ;;  %s5273_s30 = sphi %s5329_s30, %s19_s30  }
   0x2   : > { %p305_p1 = scmp.lt.s32.totalorder %s5273_s30, 3 }
   0x4   : > { %p306_p2 = pnand %p4110_p0, %p305_p1 }
   0x6   : > { %309 = sbr.rel (%p306_p2) target bundleno = 3865 (0xf19), region = 56 }
   0xd   : > { %v4839_v0 = vld [vmem:[%s7557_s3 + $0x4] ss:$8 sps:$4 sm:$0xff]   ;;  %p349_p3 = scmp.lt.s32.totalorder %s4106_s10, 1  ;;  %v4841_v1 = vld [vmem:[%s7557_s3] ss:$8 sps:$4 sm:$0xff]   ;;  %v7565_v2 = vmov 0  }
   0xe   : > { %619 = vmatprep.mubr.bf16.mxu0 %v7565_v2  ;;  %587 = vmatprep.subr.bf16.mxu0 %v4839_v0  ;;  %v4842_v3 = vld [vmem:[%s7557_s3 + $0x14] ss:$8 sps:$4 sm:$0xff]   ;;  %v4844_v4 = vld [vmem:[%s7557_s3 + $0x10] ss:$8 sps:$4 sm:$0xff]   ;;  %v4845_v5 = vld [vmem:[%s7557_s3 + $0x24] ss:$8 sps:$4 sm:$0xff]  }
   0xf   : > { %s7683_s10 = smov (!%p349_p3, %s4106_s10), 1  ;;  %588 = vmatpush1.bf16.msra.mxu0 %v4841_v1  ;;  %v4847_v6 = vld [vmem:[%s7557_s3 + $0x20] ss:$8 sps:$4 sm:$0xff]   ;;  %v4848_v7 = vld [vmem:[%s7557_s3 + $0x34] ss:$8 sps:$4 sm:$0xff]   ;;  %vm943_vm0 = vcmask 261120  }
  0x10   : > { %589 = vmatprep.subr.bf16.mxu0 %v4842_v3  ;;  %s4232_s21 = sshll.u32 %s7683_s10, 6  ;;  %v4850_v8 = vld [vmem:[%s7557_s3 + $0x30] ss:$8 sps:$4 sm:$0xff]   ;;  %v4851_v11 = vld [vmem:[%s7557_s3 + $0x44] ss:$8 sps:$4 sm:$0xff]   ;;  %s5654_s18 = scalar_lea.vmem %s7556_s2, %s7683_s10  ;;  %vm2840_vm1 = vcmask 523264  }
  0x11   : > { %s5365_s28 = scalar_lea.vmem %s7554_s0, %s4232_s21  ;;  %v4853_v13 = vld [vmem:[%s7557_s3 + $0x40] ss:$8 sps:$4 sm:$0xff]   ;;  %v4854_v14 = vld [vmem:[%s7557_s3 + $0x54] ss:$8 sps:$4 sm:$0xff]   ;;  %v4856_v15 = vld [vmem:[%s7557_s3 + $0x50] ss:$8 sps:$4 sm:$0xff]   ;;  %s5387_s23 = scalar_lea.vmem %s7555_s1, %s4232_s21 }
  0x12   : > { %v368_v9 = vld [vmem:[%s5365_s28] sm:$0xf]  ;;  %v369_v10 = vld [vmem:[%s5365_s28 + $0x4] sm:$0xf]  ;;  %v4864_v21 = vld [vmem:[%s7558_s4 + $0x8] sm:$0xff]   ;;  %s5277_s19 = smov 64  }
  0x13   : > { %590 = vmatpush1.bf16.msra.mxu0 %v4844_v4  ;;  %v4141_v12 = vcombine.low %v368_v9, %v369_v10  ;;  %v4857_v16 = vld [vmem:[%s7557_s3 + $0x64] ss:$8 sps:$4 sm:$0xff]   ;;  %v4859_v17 = vld [vmem:[%s7557_s3 + $0x60] ss:$8 sps:$4 sm:$0xff]   ;;  %v4860_v22 = vld [vmem:[%s7557_s3 + $0x74] ss:$8 sps:$4 sm:$0xff]  }
  0x14   : > { %591 = vmatprep.subr.bf16.mxu0 %v4845_v5  ;;  %v4863_v18 = vld [vmem:[%s7558_s4] sm:$0xff]   ;;  %v4865_v23 = vld [vmem:[%s7558_s4 + $0x10] sm:$0xff]   ;;  %v370_v27 = vld [vmem:[%s5365_s28 + $0x8] sm:$0xf]  ;;  %s5278_s20 = smov 32   ;;  %vm2857_vm2 = vcmask 785408  }
  0x15   : > { %4475 = vmatprep.mubr.bf16.mxu1 %v4141_v12  ;;  %v403_v19 = vld [vmem:[%s5387_s23] sm:$0xf]  ;;  %v404_v20 = vld [vmem:[%s5387_s23 + $0x4] sm:$0xf]  ;;  %4459 = vmatprep.subr.bf16.mxu1 %v4863_v18  ;;  %v4862_v26 = vld [vmem:[%s7557_s3 + $0x70] ss:$8 sps:$4 sm:$0xff]  }
  0x16   : > { %4460 = vmatpush3.bf16.msra.mxu1 %v4863_v18  ;;  %v419_v24 = vadd.bf16 %v403_v19, %v368_v9  ;;  %v420_v25 = vadd.bf16 %v404_v20, %v369_v10  ;;  %v371_v28 = vld [vmem:[%s5365_s28 + $0xc] sm:$0xf]  ;;  %v405_v29 = vld [vmem:[%s5387_s23 + $0x8] sm:$0xf]  ;;  %v4866_v31 = vld [vmem:[%s7558_s4 + $0x18] sm:$0xff]   ;;  %s4234_s14 = sshll.u32 %s7683_s10, 7 }
  0x17   : > { %592 = vmatpush1.bf16.msra.mxu0 %v4847_v6  ;;  %4461 = vmatprep.subr.bf16.mxu1 %v4864_v21  ;;  %v406_v30 = vld [vmem:[%s5387_s23 + $0xc] sm:$0xf]  ;;  %v4867_v33 = vld [vmem:[%s7558_s4 + $0x20] sm:$0xff]   ;;  %v421_v34 = vadd.bf16 %v405_v29, %v370_v27  ;;  %v372_v37 = vld [vmem:[%s5365_s28 + $0x10] sm:$0xf]  ;;  %v4142_v53 = vcombine.low %v370_v27, %v371_v28  ;;  %s7488_s17 = scalar_lea.vmem %s7563_s9, %s4234_s14 }
  0x18   : > { %593 = vmatprep.subr.bf16.mxu0 %v4848_v7  ;;  %v4117_v32 = vcombine.low %v419_v24, %v420_v25  ;;  %v422_v35 = vadd.bf16 %v406_v30, %v371_v28  ;;  %v4868_v36 = vld [vmem:[%s7558_s4 + $0x28] sm:$0xff]   ;;  %v373_v38 = vld [vmem:[%s5365_s28 + $0x14] sm:$0xf]  ;;  %v407_v39 = vld [vmem:[%s5387_s23 + $0x10] sm:$0xf] }
  0x19   : > { %v408_v40 = vld [vmem:[%s5387_s23 + $0x14] sm:$0xf]  ;;  %v423_v43 = vadd.bf16 %v407_v39, %v372_v37  ;;  %v4870_v45 = vld [vmem:[%s7558_s4 + $0x38] sm:$0xff]   ;;  %v4143_v54 = vcombine.low %v372_v37, %v373_v38  ;;  %v376_v56 = vld [vmem:[%s5365_s28 + $0x20] sm:$0xf] }
  0x1a   : > { %4462 = vmatpush3.bf16.msra.mxu1 %v4864_v21  ;;  %v4118_v41 = vcombine.low %v421_v34, %v422_v35  ;;  %v4869_v42 = vld [vmem:[%s7558_s4 + $0x30] sm:$0xff]   ;;  %v424_v44 = vadd.bf16 %v408_v40, %v373_v38  ;;  %v374_v46 = vld [vmem:[%s5365_s28 + $0x18] sm:$0xf]  ;;  %v375_v47 = vld [vmem:[%s5365_s28 + $0x1c] sm:$0xf] }
  0x1b   : > { %594 = vmatpush1.bf16.msra.mxu0 %v4850_v8  ;;  %4463 = vmatprep.subr.bf16.mxu1 %v4865_v23  ;;  %v409_v48 = vld [vmem:[%s5387_s23 + $0x18] sm:$0xf]  ;;  %v410_v49 = vld [vmem:[%s5387_s23 + $0x1c] sm:$0xf]  ;;  %v377_v57 = vld [vmem:[%s5365_s28 + $0x24] sm:$0xf]  ;;  %v4144_v62 = vcombine.low %v374_v46, %v375_v47 }
  0x1c   : > { %595 = vmatprep.subr.bf16.mxu0 %v4851_v11  ;;  %v4119_v50 = vcombine.low %v423_v43, %v424_v44  ;;  %v425_v51 = vadd.bf16 %v409_v48, %v374_v46  ;;  %v426_v52 = vadd.bf16 %v410_v49, %v375_v47  ;;  %v411_v58 = vld [vmem:[%s5387_s23 + $0x20] sm:$0xf]  ;;  %v412_v59 = vld [vmem:[%s5387_s23 + $0x24] sm:$0xf]  ;;  %v4145_v63 = vcombine.low %v376_v56, %v377_v57  ;;  %v378_v1 = vld [vmem:[%s5365_s28 + $0x28] sm:$0xf] }
  0x1d   : > { %v427_v60 = vadd.bf16 %v411_v58, %v376_v56  ;;  %v428_v61 = vadd.bf16 %v412_v59, %v377_v57  ;;  %v379_v3 = vld [vmem:[%s5365_s28 + $0x2c] sm:$0xf]  ;;  %v413_v4 = vld [vmem:[%s5387_s23 + $0x28] sm:$0xf]  ;;  %v380_v8 = vld [vmem:[%s5365_s28 + $0x30] sm:$0xf] }
  0x1e   : > { %4464 = vmatpush3.bf16.msra.mxu1 %v4865_v23  ;;  %v4120_v55 = vcombine.low %v425_v51, %v426_v52  ;;  %v414_v5 = vld [vmem:[%s5387_s23 + $0x2c] sm:$0xf]  ;;  %v429_v6 = vadd.bf16 %v413_v4, %v378_v1  ;;  %v381_v9 = vld [vmem:[%s5365_s28 + $0x34] sm:$0xf]  ;;  %v4146_v10 = vcombine.low %v378_v1, %v379_v3  ;;  %v383_v18 = vld [vmem:[%s5365_s28 + $0x3c] sm:$0xf] }
  0x1f   : > { %596 = vmatpush1.bf16.msra.mxu0 %v4853_v13  ;;  %4465 = vmatprep.subr.bf16.mxu1 %v4866_v31  ;;  %v4121_v0 = vcombine.low %v427_v60, %v428_v61  ;;  %v430_v7 = vadd.bf16 %v414_v5, %v379_v3  ;;  %v4147_v11 = vcombine.low %v380_v8, %v381_v9  ;;  %v415_v13 = vld [vmem:[%s5387_s23 + $0x30] sm:$0xf]  ;;  %v417_v21 = vld [vmem:[%s5387_s23 + $0x38] sm:$0xf]  ;;  %v401_v29 = vld [vmem:[%s7562_s8] sm:$0xff] }
  0x20   : > { %597 = vmatprep.subr.bf16.mxu0 %v4854_v14  ;;  %v416_v14 = vld [vmem:[%s5387_s23 + $0x34] sm:$0xf]  ;;  %v402_v30 = vld [vmem:[%s7562_s8 + $0x8] sm:$0xff] }
  0x21   : > { %v4122_v12 = vcombine.low %v429_v6, %v430_v7 }
  0x22   : > { %4466 = vmatpush3.bf16.msra.mxu1 %v4866_v31 }
  0x23   : > { %598 = vmatpush1.bf16.msra.mxu0 %v4856_v15  ;;  %4467 = vmatprep.subr.bf16.mxu1 %v4867_v33  ;;  %v431_v15 = vadd.bf16 %v415_v13, %v380_v8 }
  0x24   : > { %599 = vmatprep.subr.bf16.mxu0 %v4857_v16  ;;  %v432_v16 = vadd.bf16 %v416_v14, %v381_v9 }
  0x26   : > { %4468 = vmatpush3.bf16.msra.mxu1 %v4867_v33  ;;  %v4123_v20 = vcombine.low %v431_v15, %v432_v16 }
  0x27   : > { %600 = vmatpush1.bf16.msra.mxu0 %v4859_v17  ;;  %4469 = vmatprep.subr.bf16.mxu1 %v4868_v36  ;;  %v382_v17 = vld [vmem:[%s5365_s28 + $0x38] sm:$0xf] }
  0x28   : > { %601 = vmatprep.subr.bf16.mxu0 %v4860_v22  ;;  %v4148_v19 = vcombine.low %v382_v17, %v383_v18  ;;  %v418_v22 = vld [vmem:[%s5387_s23 + $0x3c] sm:$0xf]  ;;  %v433_v23 = vadd.bf16 %v417_v21, %v382_v17  ;;  %s5276_s23 = smov 96  }
  0x29   : > { %v434_v24 = vadd.bf16 %v418_v22, %v383_v18 }
  0x2a   : > { %4470 = vmatpush3.bf16.msra.mxu1 %v4868_v36 }
  0x2b   : > { %602 = vmatpush1.bf16.msra.mxu0 %v4862_v26  ;;  %4471 = vmatprep.subr.bf16.mxu1 %v4869_v42  ;;  %v4124_v25 = vcombine.low %v433_v23, %v434_v24  ;;  %v451_v26 = vlaneseq }
  0x2d   : > { %v5462_v27 = vshrl.u32 %v451_v26, 7 }
  0x2e   : > { %620 = vmatmul.mubr.bf16.vlgmr.msra.gmra.mrb[0].mxu0 %v4117_v32  ;;  %4472 = vmatpush3.bf16.msra.mxu1 %v4869_v42 }
  0x2f   : > { %629 = vmatprep.mubr.bf16.mxu0 %v7565_v2  ;;  %4473 = vmatprep.subr.bf16.mxu1 %v4870_v45  ;;  %7583 = vst [vmem:[#allocation2_spill] sm:$0xff] %v5462_v27  ;;  %v453_v28 = vsub.s32 0, %v5462_v27 }
  0x31   : > { %v5471_v31 = vrot.slane %v401_v29, %v453_v28  ;;  %v5473_v33 = vrot.slane %v402_v30, %v453_v28 }
  0x32   : > { %4474 = vmatpush3.bf16.msra.mxu1 %v4870_v45 }
  0x35   : > { %4476 = vmatmul.mubr.bf16.vlgmr.msra.gmra.mrb[0].mxu1 %v4142_v53 }
  0x36   : > { %630 = vmatmul.mubr.bf16.gmra.mrb[4].mxu0 %v4118_v41  ;;  %4479 = vmatprep.mubr.bf16.mxu1 %v4143_v54  ;;  %v7564_v54 = vsub.s32 2, %v5462_v27 }
  0x37   : > { %639 = vmatprep.mubr.bf16.mxu0 %v7565_v2 }
  0x3d   : > { %4480 = vmatmul.mubr.bf16.gmra.mrb[4].mxu1 %v4144_v62  ;;  %v5510_v62 = vrot.slane %v401_v29, %v7564_v54 }
  0x3e   : > { %640 = vmatmul.mubr.bf16.gmra.mrb[8].mxu0 %v4119_v50  ;;  %4483 = vmatprep.mubr.bf16.mxu1 %v4145_v63 }
  0x3f   : > { %649 = vmatprep.mubr.bf16.mxu0 %v7565_v2 }
  0x45   : > { %4484 = vmatmul.mubr.bf16.gmra.mrb[8].mxu1 %v4146_v10 }
  0x46   : > { %650 = vmatmul.mubr.bf16.gmra.mrb[12].mxu0 %v4120_v55  ;;  %4487 = vmatprep.mubr.bf16.mxu1 %v4147_v11 }
  0x47   : > { %659 = vmatprep.mubr.bf16.mxu0 %v7565_v2 }
  0x4d   : > { %4488 = vmatmul.mubr.bf16.gmra.mrb[12].mxu1 %v4148_v19 }
  0x4e   : > { %660 = vmatmul.mubr.bf16.gmra.mrb[16].mxu0 %v4121_v0 }
  0x4f   : > { %669 = vmatprep.mubr.bf16.mxu0 %v7565_v2 }
  0x56   : > { %670 = vmatmul.mubr.bf16.gmra.mrb[20].mxu0 %v4122_v12 }
  0x57   : > { %679 = vmatprep.mubr.bf16.mxu0 %v7565_v2 }
  0x5e   : > { %680 = vmatmul.mubr.bf16.gmra.mrb[24].mxu0 %v4123_v20 }
  0x5f   : > { %689 = vmatprep.mubr.bf16.mxu0 %v7565_v2 }
  0x66   : > { %690 = vmatmul.mubr.bf16.gmra.mrb[28].mxu0 %v4124_v25 }
 0x101   : > { %v621_v32 = vpop.f32.mrb[0].mxu0 }
 0x102   : > { %v623_v34 = vpop.f32.mrb[1].mxu0  ;;  %v622_v36 = vadd.f32 %v621_v32, %v5471_v31 }
 0x103   : > { %v625_v35 = vpop.f32.mrb[2].mxu0  ;;  %v624_v39 = vadd.f32 %v623_v34, %v5473_v33 }
 0x104   : > { %v626_v37 = vadd.f32 %v625_v35, %v5471_v31  ;;  %v627_v38 = vpop.f32.mrb[3].mxu0 }
 0x105   : > { %v628_v40 = vadd.f32 %v627_v38, %v5473_v33 }
 0x106   : > { %v5479_v41 = vpack.c.bf16 %v626_v37, %v622_v36 }
 0x107   : > { %v5481_v42 = vpack.c.bf16 %v628_v40, %v624_v39 }
 0x108   : > { %4507 = vmatprep.mubr.msk.bf16.mxu0 %vm943_vm0, %v5479_v41  ;;  %v4477_v3 = vpop.f32.mrb[0].mxu1 }
 0x109   : > { %v631_v43 = vpop.f32.mrb[4].mxu0  ;;  %1378 = vrot.lane.b32.xlu0 %v5481_v42, %s5276_s23  ;;  %4795 = vmatprep.subr.msk.bf16.mxu0 %vm943_vm0, %v5481_v42  ;;  %v969_v44 = vsel %vm943_vm0, %v5481_v42, 0  ;;  %v859_v5 = vadd.f32 %v4477_v3, %v5510_v62  ;;  %v850_v6 = vpop.f32.mrb[1].mxu1 }
 0x10a   : > { %v632_v45 = vadd.f32 %v631_v43, %v5471_v31  ;;  %v633_v46 = vpop.f32.mrb[5].mxu0  ;;  %4492 = vmatpush3.bf16.xpose.msra.mxu0 %v969_v44  ;;  %v851_v7 = vadd.f32 %v850_v6, %v5510_v62  ;;  %v4478_v8 = vpop.f32.mrb[2].mxu1 }
 0x10b   : > { %v635_v47 = vpop.f32.mrb[6].mxu0  ;;  %v634_v50 = vadd.f32 %v633_v46, %v5473_v33  ;;  %v862_v11 = vadd.f32 %v4478_v8, %v5510_v62  ;;  %v853_v12 = vpop.f32.mrb[3].mxu1 }
 0x10c   : > { %v636_v48 = vadd.f32 %v635_v47, %v5471_v31  ;;  %v637_v49 = vpop.f32.mrb[7].mxu0  ;;  %v854_v15 = vadd.f32 %v853_v12, %v5510_v62 }
 0x10d   : > { %v638_v51 = vadd.f32 %v637_v49, %v5473_v33  ;;  %v5529_v17 = vpack.c.bf16 %v862_v11, %v859_v5 }
 0x10e   : > { %v5495_v52 = vpack.c.bf16 %v636_v48, %v632_v45  ;;  %v5532_v20 = vpack.c.bf16 %v854_v15, %v851_v7 }
 0x10f   : > { %v5497_v53 = vpack.c.bf16 %v638_v51, %v634_v50 }
 0x110   : > { %v4481_v24 = vpop.f32.mrb[4].mxu1  ;;  %4523 = vmatprep.subr.bf16.mxu1 %v5532_v20 }
 0x111   : > { %v641_v55 = vpop.f32.mrb[8].mxu0  ;;  %1380 = vrot.lane.b32.xlu1 %v5497_v53, %s5276_s23  ;;  %4796 = vmatprep.subr.msk.bf16.mxu0 %vm943_vm0, %v5497_v53  ;;  %v972_v56 = vsel %vm943_vm0, %v5497_v53, 0  ;;  %v875_v26 = vadd.f32 %v4481_v24, %v5510_v62  ;;  %v866_v28 = vpop.f32.mrb[5].mxu1 }
 0x112   : > { %v642_v57 = vadd.f32 %v641_v55, %v5471_v31  ;;  %v643_v58 = vpop.f32.mrb[9].mxu0  ;;  %4494 = vmatpush3.bf16.xpose.msra.mxu0 %v972_v56  ;;  %4524 = vmatpush3.bf16.msra.mxu1 %v5532_v20  ;;  %v867_v29 = vadd.f32 %v866_v28, %v5510_v62  ;;  %v4482_v30 = vpop.f32.mrb[6].mxu1 }
 0x113   : > { %v645_v59 = vpop.f32.mrb[10].mxu0  ;;  %v644_v63 = vadd.f32 %v643_v58, %v5473_v33  ;;  %4525 = vmatprep.subr.bf16.mxu1 %v5529_v17  ;;  %v878_v35 = vadd.f32 %v4482_v30, %v5510_v62  ;;  %v869_v36 = vpop.f32.mrb[7].mxu1 }
 0x114   : > { %v646_v60 = vadd.f32 %v645_v59, %v5471_v31  ;;  %v647_v61 = vpop.f32.mrb[11].mxu0  ;;  %v870_v39 = vadd.f32 %v869_v36, %v5510_v62 }
 0x115   : > { %v648_v0 = vadd.f32 %v647_v61, %v5473_v33  ;;  %v5552_v43 = vpack.c.bf16 %v878_v35, %v875_v26 }
 0x116   : > { %v5514_v1 = vpack.c.bf16 %v646_v60, %v642_v57  ;;  %4526 = vmatpush3.bf16.msra.mxu1 %v5529_v17  ;;  %v5556_v46 = vpack.c.bf16 %v870_v39, %v867_v29 }
 0x117   : > { %v5516_v4 = vpack.c.bf16 %v648_v0, %v644_v63 }
 0x118   : > { %v4485_v50 = vpop.f32.mrb[8].mxu1  ;;  %4527 = vmatprep.subr.bf16.mxu1 %v5556_v46 }
 0x119   : > { %v651_v9 = vpop.f32.mrb[12].mxu0  ;;  %1382 = vrot.lane.b32.xlu0 %v5516_v4, %s5276_s23  ;;  %4797 = vmatprep.subr.msk.bf16.mxu0 %vm943_vm0, %v5516_v4  ;;  %v975_v10 = vsel %vm943_vm0, %v5516_v4, 0  ;;  %v891_v55 = vadd.f32 %v4485_v50, %v5510_v62  ;;  %v882_v56 = vpop.f32.mrb[9].mxu1 }
 0x11a   : > { %v652_v13 = vadd.f32 %v651_v9, %v5471_v31  ;;  %v653_v14 = vpop.f32.mrb[13].mxu0  ;;  %4496 = vmatpush3.bf16.xpose.msra.mxu0 %v975_v10  ;;  %4528 = vmatpush3.bf16.msra.mxu1 %v5556_v46  ;;  %v883_v57 = vadd.f32 %v882_v56, %v5510_v62  ;;  %v4486_v58 = vpop.f32.mrb[10].mxu1 }
 0x11b   : > { %v655_v16 = vpop.f32.mrb[14].mxu0  ;;  %v654_v21 = vadd.f32 %v653_v14, %v5473_v33  ;;  %4529 = vmatprep.subr.bf16.mxu1 %v5552_v43  ;;  %v894_v61 = vadd.f32 %v4486_v58, %v5510_v62  ;;  %v885_v63 = vpop.f32.mrb[11].mxu1 }
 0x11c   : > { %v656_v18 = vadd.f32 %v655_v16, %v5471_v31  ;;  %v657_v19 = vpop.f32.mrb[15].mxu0  ;;  %v886_v5 = vadd.f32 %v885_v63, %v5510_v62 }
 0x11d   : > { %v658_v22 = vadd.f32 %v657_v19, %v5473_v33  ;;  %v5576_v7 = vpack.c.bf16 %v894_v61, %v891_v55 }
 0x11e   : > { %v5536_v23 = vpack.c.bf16 %v656_v18, %v652_v13  ;;  %4530 = vmatpush3.bf16.msra.mxu1 %v5552_v43  ;;  %v5580_v10 = vpack.c.bf16 %v886_v5, %v883_v57 }
 0x11f   : > { %v5539_v25 = vpack.c.bf16 %v658_v22, %v654_v21 }
 0x120   : > { %v4489_v14 = vpop.f32.mrb[12].mxu1  ;;  %4531 = vmatprep.subr.bf16.mxu1 %v5580_v10 }
 0x121   : > { %v661_v32 = vpop.f32.mrb[16].mxu0  ;;  %4798 = vmatprep.subr.msk.bf16.mxu0 %vm943_vm0, %v5539_v25  ;;  %v978_v34 = vsel %vm943_vm0, %v5539_v25, 0  ;;  %v907_v16 = vadd.f32 %v4489_v14, %v5510_v62  ;;  %v898_v18 = vpop.f32.mrb[13].mxu1 }
 0x122   : > { %v662_v37 = vadd.f32 %v661_v32, %v5471_v31  ;;  %v663_v38 = vpop.f32.mrb[17].mxu0  ;;  %4498 = vmatpush3.bf16.xpose.msra.mxu0 %v978_v34  ;;  %4532 = vmatpush3.bf16.msra.mxu1 %v5580_v10  ;;  %v899_v19 = vadd.f32 %v898_v18, %v5510_v62  ;;  %v4490_v21 = vpop.f32.mrb[14].mxu1 }
 0x123   : > { %v665_v40 = vpop.f32.mrb[18].mxu0  ;;  %v664_v47 = vadd.f32 %v663_v38, %v5473_v33  ;;  %4533 = vmatprep.subr.bf16.mxu1 %v5576_v7  ;;  %v910_v26 = vadd.f32 %v4490_v21, %v5510_v62  ;;  %v901_v28 = vpop.f32.mrb[15].mxu1 }
 0x124   : > { %v666_v44 = vadd.f32 %v665_v40, %v5471_v31  ;;  %v667_v45 = vpop.f32.mrb[19].mxu0  ;;  %v902_v32 = vadd.f32 %v901_v28, %v5510_v62 }
 0x125   : > { %v668_v48 = vadd.f32 %v667_v45, %v5473_v33  ;;  %v5600_v35 = vpack.c.bf16 %v910_v26, %v907_v16 }
 0x126   : > { %v5560_v49 = vpack.c.bf16 %v666_v44, %v662_v37  ;;  %4534 = vmatpush3.bf16.msra.mxu1 %v5576_v7  ;;  %v5604_v38 = vpack.c.bf16 %v902_v32, %v899_v19 }
 0x127   : > { %v5563_v51 = vpack.c.bf16 %v668_v48, %v664_v47 }
 0x128   : > { %4535 = vmatprep.subr.bf16.mxu1 %v5604_v38 }
 0x129   : > { %v671_v59 = vpop.f32.mrb[20].mxu0  ;;  %4799 = vmatprep.subr.msk.bf16.mxu0 %vm943_vm0, %v5563_v51  ;;  %v981_v60 = vsel %vm943_vm0, %v5563_v51, 0 }
 0x12a   : > { %v672_v0 = vadd.f32 %v671_v59, %v5471_v31  ;;  %v673_v3 = vpop.f32.mrb[21].mxu0  ;;  %4500 = vmatpush3.bf16.xpose.msra.mxu0 %v981_v60  ;;  %4536 = vmatpush3.bf16.msra.mxu1 %v5604_v38 }
 0x12b   : > { %v675_v6 = vpop.f32.mrb[22].mxu0  ;;  %v674_v11 = vadd.f32 %v673_v3, %v5473_v33  ;;  %4537 = vmatprep.subr.bf16.mxu1 %v5600_v35 }
 0x12c   : > { %v676_v8 = vadd.f32 %v675_v6, %v5471_v31  ;;  %v677_v9 = vpop.f32.mrb[23].mxu0 }
 0x12d   : > { %v678_v12 = vadd.f32 %v677_v9, %v5473_v33 }
 0x12e   : > { %v5584_v13 = vpack.c.bf16 %v676_v8, %v672_v0  ;;  %4538 = vmatpush3.bf16.msra.mxu1 %v5600_v35 }
 0x12f   : > { %v5587_v15 = vpack.c.bf16 %v678_v12, %v674_v11 }
 0x131   : > { %v681_v22 = vpop.f32.mrb[24].mxu0  ;;  %4800 = vmatprep.subr.msk.bf16.mxu0 %vm943_vm0, %v5587_v15  ;;  %v984_v24 = vsel %vm943_vm0, %v5587_v15, 0 }
 0x132   : > { %v682_v29 = vadd.f32 %v681_v22, %v5471_v31  ;;  %v683_v30 = vpop.f32.mrb[25].mxu0  ;;  %4502 = vmatpush3.bf16.xpose.msra.mxu0 %v984_v24 }
 0x133   : > { %v685_v34 = vpop.f32.mrb[26].mxu0  ;;  %v684_v39 = vadd.f32 %v683_v30, %v5473_v33 }
 0x134   : > { %v686_v36 = vadd.f32 %v685_v34, %v5471_v31  ;;  %v687_v37 = vpop.f32.mrb[27].mxu0 }
 0x135   : > { %v688_v40 = vadd.f32 %v687_v37, %v5473_v33 }
 0x136   : > { %v5608_v44 = vpack.c.bf16 %v686_v36, %v682_v29 }
 0x137   : > { %v5611_v45 = vpack.c.bf16 %v688_v40, %v684_v39 }
 0x139   : > { %v691_v62 = vpop.f32.mrb[28].mxu0  ;;  %4801 = vmatprep.subr.msk.bf16.mxu0 %vm943_vm0, %v5611_v45  ;;  %v987_v47 = vsel %vm943_vm0, %v5611_v45, 0 }
 0x13a   : > { %v692_v48 = vadd.f32 %v691_v62, %v5471_v31  ;;  %v693_v50 = vpop.f32.mrb[29].mxu0  ;;  %4504 = vmatpush3.bf16.xpose.msra.mxu0 %v987_v47 }
 0x13b   : > { %v695_v55 = vpop.f32.mrb[30].mxu0  ;;  %v694_v58 = vadd.f32 %v693_v50, %v5473_v33 }
 0x13c   : > { %v696_v56 = vadd.f32 %v695_v55, %v5471_v31  ;;  %v697_v57 = vpop.f32.mrb[31].mxu0 }
 0x13d   : > { %v698_v59 = vadd.f32 %v697_v57, %v5473_v33  ;;  %v5657_v33 = vld [vmem:[%s5654_s18] ss:$0 sm:$0xff] }
 0x13e   : > { %v5624_v60 = vpack.c.bf16 %v696_v56, %v692_v48 }
 0x13f   : > { %v5626_v61 = vpack.c.bf16 %v698_v59, %v694_v58 }
 0x141   : > { %4802 = vmatprep.subr.msk.bf16.mxu0 %vm943_vm0, %v5626_v61  ;;  %v990_v63 = vsel %vm943_vm0, %v5626_v61, 0 }
 0x142   : > { %4506 = vmatpush3.bf16.xpose.msra.mxu0 %v990_v63 }
 0x149   : > { %4508 = vmatmul.mubr.msk.bf16.vlgmr.msra.gmra.mrb[32].mxu0 %vm943_vm0, %v5495_v52 }
 0x14a   : > { %4511 = vmatprep.mubr.msk.bf16.mxu0 %vm943_vm0, %v5514_v1 }
 0x151   : > { %4512 = vmatmul.mubr.msk.bf16.gmra.mrb[36].mxu0 %vm943_vm0, %v5536_v23 }
 0x152   : > { %4515 = vmatprep.mubr.msk.bf16.mxu0 %vm943_vm0, %v5560_v49 }
 0x159   : > { %4516 = vmatmul.mubr.msk.bf16.gmra.mrb[40].mxu0 %vm943_vm0, %v5584_v13 }
 0x15a   : > { %4519 = vmatprep.mubr.msk.bf16.mxu0 %vm943_vm0, %v5608_v44 }
 0x161   : > { %4520 = vmatmul.mubr.msk.bf16.gmra.mrb[44].mxu0 %vm943_vm0, %v5624_v60 }
 0x17b   : > { %v5646_v31 = vpop.permute.xlu0 %1378 }
 0x17c   : > { %4803 = vmatprep.subr.msk.bf16.mxu1 %vm943_vm0, %v5646_v31 }
 0x183   : > { %v1381_v58 = vpop.permute.xlu1 %1380 }
 0x18b   : > { %v1383_v59 = vpop.permute.xlu0 %1382 }
 0x21c   : > { %v4509_v0 = vpop.f32.mrb[32].mxu0 }
 0x21d   : > { %v5660_v3 = vadd.f32 %v4509_v0, %v5657_v33  ;;  %v1026_v5 = vpop.f32.mrb[33].mxu0 }
 0x21e   : > { %v5663_v6 = vadd.f32 %v5657_v33, %v1026_v5  ;;  %v4510_v8 = vpop.f32.mrb[34].mxu0 }
 0x21f   : > { %1093 = vmax.xlane.f32.xlu1 %v5660_v3  ;;  %v1029_v9 = vpop.f32.mrb[35].mxu0  ;;  %v5668_v11 = vadd.f32 %v4510_v8, %v5657_v33 }
 0x220   : > { %1089 = vmax.xlane.f32.xlu0 %v5663_v6  ;;  %v5671_v12 = vadd.f32 %v5657_v33, %v1029_v9 }
 0x223   : > { %1095 = vmax.xlane.f32.xlu1 %v5668_v11 }
 0x224   : > { %v4513_v14 = vpop.f32.mrb[36].mxu0  ;;  %1091 = vmax.xlane.f32.xlu0 %v5671_v12 }
 0x225   : > { %v1042_v16 = vpop.f32.mrb[37].mxu0  ;;  %v5683_v36 = vadd.f32 %v4513_v14, %v5657_v33 }
 0x226   : > { %v4514_v18 = vpop.f32.mrb[38].mxu0  ;;  %v5680_v34 = vadd.f32 %v5657_v33, %v1042_v16 }
 0x227   : > { %v1045_v19 = vpop.f32.mrb[39].mxu0  ;;  %v5688_v37 = vadd.f32 %v4514_v18, %v5657_v33 }
 0x228   : > { %v5696_v40 = vadd.f32 %v5657_v33, %v1045_v19 }
 0x22c   : > { %v4517_v21 = vpop.f32.mrb[40].mxu0 }
 0x22d   : > { %v1058_v22 = vpop.f32.mrb[41].mxu0  ;;  %v5704_v47 = vadd.f32 %v4517_v21, %v5657_v33 }
 0x22e   : > { %v4518_v24 = vpop.f32.mrb[42].mxu0  ;;  %v5691_v39 = vadd.f32 %v5657_v33, %v1058_v22 }
 0x22f   : > { %v1061_v26 = vpop.f32.mrb[43].mxu0  ;;  %v5712_v50 = vadd.f32 %v4518_v24, %v5657_v33 }
 0x230   : > { %v5699_v62 = vadd.f32 %v5657_v33, %v1061_v26 }
 0x234   : > { %1384 = vrot.lane.b32.xlu1 %v5539_v25, %s5276_s23  ;;  %v4521_v28 = vpop.f32.mrb[44].mxu0 }
 0x235   : > { %v1074_v29 = vpop.f32.mrb[45].mxu0  ;;  %v5707_v48 = vadd.f32 %v4521_v28, %v5657_v33 }
 0x236   : > { %v4522_v30 = vpop.f32.mrb[46].mxu0  ;;  %v5716_v55 = vadd.f32 %v5657_v33, %v1074_v29  ;;  %v1419_v29 = vsel %vm943_vm0, %v5646_v31, 0 }
 0x237   : > { %v1077_v32 = vpop.f32.mrb[47].mxu0  ;;  %v5720_v56 = vadd.f32 %v4522_v30, %v5657_v33  ;;  %v1422_v30 = vsel %vm943_vm0, %v1381_v58, 0 }
 0x238   : > { %v5724_v57 = vadd.f32 %v5657_v33, %v1077_v32  ;;  %v1425_v32 = vsel %vm943_vm0, %v1383_v59, 0 }
 0x23a   : > { %1386 = vrot.lane.b32.xlu0 %v5563_v51, %s5276_s23 }
 0x258   : > { %1097 = vmax.xlane.f32.xlu1 %v5680_v34 }
 0x259   : > { %1101 = vmax.xlane.f32.xlu0 %v5683_v36 }
 0x25c   : > { %1103 = vmax.xlane.f32.xlu1 %v5688_v37 }
 0x25d   : > { %1105 = vmax.xlane.f32.xlu0 %v5691_v39 }
 0x260   : > { %1099 = vmax.xlane.f32.xlu1 %v5696_v40 }
 0x261   : > { %1107 = vmax.xlane.f32.xlu0 %v5699_v62 }
 0x264   : > { %1109 = vmax.xlane.f32.xlu1 %v5704_v47 }
 0x265   : > { %1117 = vmax.xlane.f32.xlu0 %v5707_v48 }
 0x268   : > { %1111 = vmax.xlane.f32.xlu1 %v5712_v50 }
 0x26c   : > { %1113 = vmax.xlane.f32.xlu1 %v5716_v55 }
 0x270   : > { %1119 = vmax.xlane.f32.xlu1 %v5720_v56 }
 0x274   : > { %1115 = vmax.xlane.f32.xlu1 %v5724_v57 }
 0x27b   : > { %1390 = vrot.lane.b32.xlu0 %v5611_v45, %s5276_s23 }
 0x27f   : > { %1392 = vrot.lane.b32.xlu0 %v5626_v61, %s5276_s23 }
 0x283   : > { %1354 = vrot.lane.b32.xlu0 %v5479_v41, %s5276_s23 }
 0x285   : > { %1388 = vrot.lane.b32.xlu1 %v5587_v15, %s5276_s23 }
 0x287   : > { %1358 = vrot.lane.b32.xlu0 %v5514_v1, %s5276_s23 }
 0x289   : > { %1356 = vrot.lane.b32.xlu1 %v5495_v52, %s5276_s23 }
 0x28b   : > { %1362 = vrot.lane.b32.xlu0 %v5560_v49, %s5276_s23 }
 0x28d   : > { %1360 = vrot.lane.b32.xlu1 %v5536_v23, %s5276_s23 }
 0x28f   : > { %1366 = vrot.lane.b32.xlu0 %v5608_v44, %s5276_s23 }
 0x291   : > { %1364 = vrot.lane.b32.xlu1 %v5584_v13, %s5276_s23 }
 0x293   : > { %1667 = vrot.lane.b32.xlu0 %v5532_v20, %s5276_s23 }
 0x295   : > { %1368 = vrot.lane.b32.xlu1 %v5624_v60, %s5276_s23 }
 0x297   : > { %1671 = vrot.lane.b32.xlu0 %v5556_v46, %s5276_s23 }
 0x299   : > { %1669 = vrot.lane.b32.xlu1 %v5529_v17, %s5276_s23 }
 0x29b   : > { %1679 = vrot.lane.b32.xlu0 %v5604_v38, %s5276_s23 }
 0x29d   : > { %1673 = vrot.lane.b32.xlu1 %v5552_v43, %s5276_s23 }
 0x29f   : > { %1844 = vrot.lane.b32.xlu0 %v5481_v42, %s5277_s19 }
 0x2a1   : > { %1675 = vrot.lane.b32.xlu1 %v5580_v10, %s5276_s23 }
 0x2a3   : > { %1846 = vrot.lane.b32.xlu0 %v5497_v53, %s5277_s19 }
 0x2a5   : > { %1677 = vrot.lane.b32.xlu1 %v5576_v7, %s5276_s23 }
 0x2a7   : > { %1850 = vrot.lane.b32.xlu0 %v5539_v25, %s5277_s19 }
 0x2a9   : > { %1681 = vrot.lane.b32.xlu1 %v5600_v35, %s5276_s23 }
 0x2ac   : > { %v1094_v63 = vpop.xlane.xlu1 %1093 }
 0x2ad   : > { %1848 = vrot.lane.b32.xlu1 %v5516_v4, %s5277_s19  ;;  %v1090_v0 = vpop.xlane.xlu0 %1089  ;;  %v1123_v8 = vsub.f32 %v5660_v3, %v1094_v63 }
 0x2ae   : > { %v1121_v5 = vsub.f32 %v5663_v6, %v1090_v0 }
 0x2af   : > { %v1141_v21 = vmul.f32 1.442695, %v1123_v8 }
 0x2b0   : > { %v1137_v9 = vmul.f32 1.442695, %v1121_v5  ;;  %v1096_v14 = vpop.xlane.xlu1 %1095 }
 0x2b1   : > { %v1124_v16 = vsub.f32 %v5668_v11, %v1096_v14  ;;  %v1092_v18 = vpop.xlane.xlu0 %1091 }
 0x2b2   : > { %v1122_v19 = vsub.f32 %v5671_v12, %v1092_v18  ;;  %4927 = vpow2.f32 %v1137_v9 }
 0x2b3   : > { %v1143_v22 = vmul.f32 1.442695, %v1124_v16 }
 0x2b4   : > { %v1139_v24 = vmul.f32 1.442695, %v1122_v19  ;;  %v1385_v63 = vpop.permute.xlu1 %1384 }
 0x2b5   : > { %4929 = vpow2.f32 %v1143_v22  ;;  %v1428_v0 = vsel %vm943_vm0, %v1385_v63, 0  ;;  %v1387_v5 = vpop.permute.xlu0 %1386 }
 0x2b6   : > { %4931 = vpow2.f32 %v1139_v24  ;;  %v1431_v31 = vsel %vm943_vm0, %v1387_v5, 0 }
 0x2b7   : > { %4933 = vpow2.f32 %v1141_v21 }
 0x2bc   : > { %v5777_v26 = vpop.eup %4927 }
 0x2bf   : > { %v5779_v28 = vpop.eup %4929 }
 0x2c0   : > { %7584 = vst [vmem:[#allocation3_spill] sm:$0xff] %v5779_v28  ;;  %v5781_v6 = vpop.eup %4931 }
 0x2c1   : > { %7585 = vst [vmem:[#allocation4_spill] sm:$0xff] %v5781_v6  ;;  %v5783_v3 = vpop.eup %4933  ;;  %v1201_v11 = vpack.c.bf16 %v5781_v6, %v5777_v26 }
 0x2c2   : > { %v1202_v12 = vpack.c.bf16 %v5779_v28, %v5783_v3 }
 0x2c3   : > { %4539 = vmatprep.mubr.bf16.mxu1 %v1201_v11 }
 0x2c4   : > { %4540 = vmatmul.mubr.bf16.vlgmr.msra.gmra.mrb[16].mxu1 %v1202_v12 }
 0x2c5   : > { %4556 = vmatpush3.bf16.xpose.msra.mxu1 %v1419_v29 }
 0x2c6   : > { %4804 = vmatprep.subr.msk.bf16.mxu1 %vm943_vm0, %v1381_v58 }
 0x2cd   : > { %4558 = vmatpush3.bf16.xpose.msra.mxu1 %v1422_v30 }
 0x2ce   : > { %4805 = vmatprep.subr.msk.bf16.mxu1 %vm943_vm0, %v1383_v59 }
 0x2d5   : > { %4560 = vmatpush3.bf16.xpose.msra.mxu1 %v1425_v32 }
 0x2d6   : > { %4806 = vmatprep.subr.msk.bf16.mxu1 %vm943_vm0, %v1385_v63 }
 0x2dd   : > { %4562 = vmatpush3.bf16.xpose.msra.mxu1 %v1428_v0 }
 0x2de   : > { %4807 = vmatprep.subr.msk.bf16.mxu1 %vm943_vm0, %v1387_v5 }
 0x2e5   : > { %4564 = vmatpush3.bf16.xpose.msra.mxu1 %v1431_v31  ;;  %v1098_v8 = vpop.xlane.xlu1 %1097 }
 0x2e6   : > { %v1125_v58 = vsub.f32 %v5680_v34, %v1098_v8  ;;  %v1102_v9 = vpop.xlane.xlu0 %1101 }
 0x2e7   : > { %v1127_v14 = vsub.f32 %v5683_v36, %v1102_v9 }
 0x2e8   : > { %v1145_v16 = vmul.f32 1.442695, %v1125_v58 }
 0x2e9   : > { %v1104_v59 = vpop.xlane.xlu1 %1103  ;;  %v1149_v21 = vmul.f32 1.442695, %v1127_v14 }
 0x2ea   : > { %v1128_v18 = vsub.f32 %v5688_v37, %v1104_v59  ;;  %v1106_v19 = vpop.xlane.xlu0 %1105  ;;  %4935 = vpow2.f32 %v1145_v16 }
 0x2eb   : > { %v1129_v22 = vsub.f32 %v5691_v39, %v1106_v19  ;;  %4937 = vpow2.f32 %v1149_v21 }
 0x2ec   : > { %v1151_v24 = vmul.f32 1.442695, %v1128_v18 }
 0x2ed   : > { %v1153_v11 = vmul.f32 1.442695, %v1129_v22  ;;  %v1100_v12 = vpop.xlane.xlu1 %1099 }
 0x2ee   : > { %v1126_v29 = vsub.f32 %v5696_v40, %v1100_v12  ;;  %v1108_v30 = vpop.xlane.xlu0 %1107  ;;  %4939 = vpow2.f32 %v1151_v24 }
 0x2ef   : > { %v1130_v34 = vsub.f32 %v5699_v62, %v1108_v30  ;;  %4941 = vpow2.f32 %v1153_v11 }
 0x2f0   : > { %v1147_v36 = vmul.f32 1.442695, %v1126_v29 }
 0x2f1   : > { %v1155_v32 = vmul.f32 1.442695, %v1130_v34  ;;  %v1110_v63 = vpop.xlane.xlu1 %1109 }
 0x2f2   : > { %4943 = vpow2.f32 %v1147_v36  ;;  %v1131_v37 = vsub.f32 %v5704_v47, %v1110_v63  ;;  %v1118_v0 = vpop.xlane.xlu0 %1117 }
 0x2f3   : > { %4945 = vpow2.f32 %v1155_v32  ;;  %v1135_v29 = vsub.f32 %v5707_v48, %v1118_v0 }
 0x2f4   : > { %v1157_v39 = vmul.f32 1.442695, %v1131_v37  ;;  %v5807_v40 = vpop.eup %4935 }
 0x2f5   : > { %v1112_v5 = vpop.xlane.xlu1 %1111  ;;  %7586 = vst [vmem:[#allocation5_spill] sm:$0xff] %v5807_v40  ;;  %v5809_v9 = vpop.eup %4937 }
 0x2f6   : > { %v1132_v31 = vsub.f32 %v5712_v50, %v1112_v5  ;;  %v1391_v8 = vpop.permute.xlu0 %1390  ;;  %7587 = vst [vmem:[#allocation6_spill] sm:$0xff] %v5809_v9  ;;  %4947 = vpow2.f32 %v1157_v39 }
 0x2f8   : > { %v1159_v58 = vmul.f32 1.442695, %v1132_v31  ;;  %v5811_v14 = vpop.eup %4939 }
 0x2f9   : > { %v1114_v62 = vpop.xlane.xlu1 %1113  ;;  %7588 = vst [vmem:[#allocation7_spill] sm:$0xff] %v5811_v14  ;;  %v5813_v16 = vpop.eup %4941  ;;  %v1204_v11 = vpack.c.bf16 %v5811_v14, %v5809_v9 }
 0x2fa   : > { %4949 = vpow2.f32 %v1159_v58  ;;  %v1393_v59 = vpop.permute.xlu0 %1392  ;;  %7589 = vst [vmem:[#allocation8_spill] sm:$0xff] %v5813_v16  ;;  %v1133_v18 = vsub.f32 %v5716_v55, %v1114_v62 }
 0x2fc   : > { %v5815_v47 = vpop.eup %4943  ;;  %v1161_v30 = vmul.f32 1.442695, %v1133_v18 }
 0x2fd   : > { %7590 = vst [vmem:[#allocation9_spill] sm:$0xff] %v5815_v47  ;;  %v5818_v19 = vpop.eup %4945  ;;  %v1120_v50 = vpop.xlane.xlu1 %1119  ;;  %v1203_v21 = vpack.c.bf16 %v5815_v47, %v5807_v40 }
 0x2fe   : > { %7591 = vst [vmem:[#allocation10_spill] sm:$0xff] %v5818_v19  ;;  %v1136_v22 = vsub.f32 %v5720_v56, %v1120_v50  ;;  %v1355_v24 = vpop.permute.xlu0 %1354  ;;  %v1205_v12 = vpack.c.bf16 %v5818_v19, %v5813_v16  ;;  %v1165_v56 = vmul.f32 1.442695, %v1135_v29  ;;  %4951 = vpow2.f32 %v1161_v30 }
 0x2ff   : > { %4543 = vmatprep.mubr.bf16.mxu1 %v1203_v21  ;;  %v1437_v21 = vsel %vm943_vm0, %v1391_v8, 0 }
 0x300   : > { %4544 = vmatmul.mubr.bf16.gmra.mrb[20].mxu1 %v1204_v11  ;;  %v1167_v55 = vmul.f32 1.442695, %v1136_v22  ;;  %v5829_v63 = vpop.eup %4947 }
 0x301   : > { %v1116_v34 = vpop.xlane.xlu1 %1115  ;;  %4547 = vmatprep.mubr.bf16.mxu1 %v1205_v12  ;;  %7592 = vst [vmem:[#allocation11_spill] sm:$0xff] %v5829_v63 }
 0x302   : > { %v1134_v36 = vsub.f32 %v5724_v57, %v1116_v34  ;;  %v1359_v32 = vpop.permute.xlu0 %1358  ;;  %4953 = vpow2.f32 %v1167_v55  ;;  %v1440_v34 = vsel %vm943_vm0, %v1393_v59, 0 }
 0x304   : > { %v5831_v37 = vpop.eup %4949  ;;  %v1163_v39 = vmul.f32 1.442695, %v1134_v36 }
 0x305   : > { %7593 = vst [vmem:[#allocation12_spill] sm:$0xff] %v5831_v37  ;;  %v1389_v5 = vpop.permute.xlu1 %1388  ;;  %v1206_v48 = vpack.c.bf16 %v5831_v37, %v5829_v63 }
 0x306   : > { %4955 = vpow2.f32 %v1163_v39  ;;  %4808 = vmatprep.subr.msk.bf16.mxu1 %vm943_vm0, %v1389_v5  ;;  %v1363_v0 = vpop.permute.xlu0 %1362  ;;  %v1434_v31 = vsel %vm943_vm0, %v1389_v5, 0 }
 0x307   : > { %4957 = vpow2.f32 %v1165_v56  ;;  %4566 = vmatpush3.bf16.xpose.msra.mxu1 %v1434_v31 }
 0x308   : > { %4548 = vmatmul.mubr.bf16.gmra.mrb[24].mxu1 %v1206_v48  ;;  %4809 = vmatprep.subr.msk.bf16.mxu1 %vm943_vm0, %v1391_v8  ;;  %v5838_v18 = vpop.eup %4951 }
 0x309   : > { %v1357_v57 = vpop.permute.xlu1 %1356  ;;  %7594 = vst [vmem:[#allocation13_spill] sm:$0xff] %v5838_v18 }
 0x30a   : > { %v1367_v58 = vpop.permute.xlu0 %1366 }
 0x30c   : > { %v5841_v22 = vpop.eup %4953 }
 0x30d   : > { %v1361_v62 = vpop.permute.xlu1 %1360  ;;  %7595 = vst [vmem:[#allocation14_spill] sm:$0xff] %v5841_v22 }
 0x30e   : > { %v1668_v50 = vpop.permute.xlu0 %1667 }
 0x30f   : > { %4568 = vmatpush3.bf16.xpose.msra.mxu1 %v1437_v21  ;;  %4587 = vmatprep.subr.bf16.mxu0 %v1668_v50 }
 0x310   : > { %v5843_v11 = vpop.eup %4955  ;;  %4810 = vmatprep.subr.msk.bf16.mxu1 %vm943_vm0, %v1393_v59  ;;  %4588 = vmatpush3.bf16.msra.mxu0 %v1668_v50 }
 0x311   : > { %7596 = vst [vmem:[#allocation15_spill] sm:$0xff] %v5843_v11  ;;  %v5846_v12 = vpop.eup %4957  ;;  %v1365_v29 = vpop.permute.xlu1 %1364  ;;  %v1207_v30 = vpack.c.bf16 %v5843_v11, %v5838_v18 }
 0x312   : > { %7597 = vst [vmem:[#allocation16_spill] sm:$0xff] %v5846_v12  ;;  %v1208_v55 = vpack.c.bf16 %v5841_v22, %v5846_v12  ;;  %v1672_v56 = vpop.permute.xlu0 %1671 }
 0x313   : > { %4551 = vmatprep.mubr.bf16.mxu1 %v1207_v30 }
 0x314   : > { %4552 = vmatmul.mubr.bf16.gmra.mrb[28].mxu1 %v1208_v55 }
 0x315   : > { %v1369_v8 = vpop.permute.xlu1 %1368  ;;  %4571 = vmatprep.mubr.msk.bf16.mxu1 %vm943_vm0, %v1355_v24 }
 0x316   : > { %v1680_v59 = vpop.permute.xlu0 %1679 }
 0x317   : > { %4570 = vmatpush3.bf16.xpose.msra.mxu1 %v1440_v34 }
 0x319   : > { %v1670_v36 = vpop.permute.xlu1 %1669 }
 0x31a   : > { %4589 = vmatprep.subr.bf16.mxu0 %v1670_v36 }
 0x31b   : > { %4590 = vmatpush3.bf16.msra.mxu0 %v1670_v36 }
 0x31c   : > { %4591 = vmatprep.subr.bf16.mxu0 %v1672_v56 }
 0x31d   : > { %v1674_v39 = vpop.permute.xlu1 %1673 }
 0x31e   : > { %4572 = vmatmul.mubr.msk.bf16.vlgmr.msra.gmra.mrb[32].mxu1 %vm943_vm0, %v1357_v57 }
 0x31f   : > { %4575 = vmatprep.mubr.msk.bf16.mxu1 %vm943_vm0, %v1359_v32  ;;  %4592 = vmatpush3.bf16.msra.mxu0 %v1672_v56  ;;  %v5860_v32 = vpop.permute.xlu0 %1844 }
 0x320   : > { %4593 = vmatprep.subr.bf16.mxu0 %v1674_v39 }
 0x321   : > { %v1676_v5 = vpop.permute.xlu1 %1675 }
 0x323   : > { %4594 = vmatpush3.bf16.msra.mxu0 %v1674_v39 }
 0x324   : > { %4595 = vmatprep.subr.bf16.mxu0 %v1676_v5 }
 0x325   : > { %v1678_v24 = vpop.permute.xlu1 %1677 }
 0x326   : > { %4576 = vmatmul.mubr.msk.bf16.gmra.mrb[36].mxu1 %vm943_vm0, %v1361_v62 }
 0x327   : > { %4579 = vmatprep.mubr.msk.bf16.mxu1 %vm943_vm0, %v1363_v0  ;;  %4596 = vmatpush3.bf16.msra.mxu0 %v1676_v5 }
 0x328   : > { %4597 = vmatprep.subr.bf16.mxu0 %v1678_v24 }
 0x329   : > { %v1682_v48 = vpop.permute.xlu1 %1681 }
 0x32b   : > { %4598 = vmatpush3.bf16.msra.mxu0 %v1678_v24 }
 0x32c   : > { %4599 = vmatprep.subr.bf16.mxu0 %v1680_v59 }
 0x32e   : > { %4580 = vmatmul.mubr.msk.bf16.gmra.mrb[40].mxu1 %vm943_vm0, %v1365_v29 }
 0x32f   : > { %4583 = vmatprep.mubr.msk.bf16.mxu1 %vm943_vm0, %v1367_v58  ;;  %4600 = vmatpush3.bf16.msra.mxu0 %v1680_v59 }
 0x330   : > { %4601 = vmatprep.subr.bf16.mxu0 %v1682_v48 }
 0x333   : > { %4602 = vmatpush3.bf16.msra.mxu0 %v1682_v48 }
 0x334   : > { %4811 = vmatprep.subr.msk.bf16.mxu0 %vm943_vm0, %v5860_v32 }
 0x336   : > { %4584 = vmatmul.mubr.msk.bf16.gmra.mrb[44].mxu1 %vm943_vm0, %v1369_v8 }
 0x397   : > { %v5865_v0 = vpop.f32.mrb[16].mxu1 }
 0x398   : > { %7598 = vst [vmem:[#allocation17_spill] sm:$0xff] %v5865_v0  ;;  %v5867_v31 = vpop.f32.mrb[17].mxu1 }
 0x399   : > { %7599 = vst [vmem:[#allocation18_spill] sm:$0xff] %v5867_v31  ;;  %v5869_v57 = vpop.f32.mrb[18].mxu1 }
 0x39a   : > { %7600 = vst [vmem:[#allocation19_spill] sm:$0xff] %v5869_v57  ;;  %v5871_v62 = vpop.f32.mrb[19].mxu1 }
 0x39b   : > { %7601 = vst [vmem:[#allocation20_spill] sm:$0xff] %v5871_v62 }
 0x3d3   : > { %v5873_v50 = vpop.f32.mrb[20].mxu1 }
 0x3d4   : > { %7602 = vst [vmem:[#allocation21_spill] sm:$0xff] %v5873_v50  ;;  %v5875_v58 = vpop.f32.mrb[21].mxu1 }
 0x3d5   : > { %7603 = vst [vmem:[#allocation22_spill] sm:$0xff] %v5875_v58  ;;  %v5877_v21 = vpop.f32.mrb[22].mxu1 }
 0x3d6   : > { %7604 = vst [vmem:[#allocation23_spill] sm:$0xff] %v5877_v21  ;;  %v5879_v29 = vpop.f32.mrb[23].mxu1 }
 0x3d7   : > { %7605 = vst [vmem:[#allocation24_spill] sm:$0xff] %v5879_v29 }
 0x3db   : > { %v5881_v30 = vpop.f32.mrb[24].mxu1 }
 0x3dc   : > { %7606 = vst [vmem:[#allocation25_spill] sm:$0xff] %v5881_v30  ;;  %v5883_v55 = vpop.f32.mrb[25].mxu1 }
 0x3dd   : > { %7607 = vst [vmem:[#allocation26_spill] sm:$0xff] %v5883_v55  ;;  %v5885_v8 = vpop.f32.mrb[26].mxu1 }
 0x3de   : > { %7608 = vst [vmem:[#allocation27_spill] sm:$0xff] %v5885_v8  ;;  %v5887_v34 = vpop.f32.mrb[27].mxu1 }
 0x3df   : > { %7609 = vst [vmem:[#allocation28_spill] sm:$0xff] %v5887_v34 }
 0x3e7   : > { %v5889_v36 = vpop.f32.mrb[28].mxu1 }
 0x3e8   : > { %7610 = vst [vmem:[#allocation29_spill] sm:$0xff] %v5889_v36  ;;  %v5891_v56 = vpop.f32.mrb[29].mxu1 }
 0x3e9   : > { %7611 = vst [vmem:[#allocation30_spill] sm:$0xff] %v5891_v56  ;;  %v5893_v39 = vpop.f32.mrb[30].mxu1 }
 0x3ea   : > { %7612 = vst [vmem:[#allocation31_spill] sm:$0xff] %v5893_v39  ;;  %v5895_v5 = vpop.f32.mrb[31].mxu1 }
 0x3eb   : > { %7613 = vst [vmem:[#allocation32_spill] sm:$0xff] %v5895_v5 }
 0x3f1   : > { %v4573_v24 = vpop.f32.mrb[32].mxu1 }
 0x3f2   : > { %v5898_v59 = vadd.f32 %v4573_v24, %v5657_v33  ;;  %v1476_v48 = vpop.f32.mrb[33].mxu1 }
 0x3f3   : > { %v4574_v54 = vpop.f32.mrb[34].mxu1  ;;  %v5905_v36 = vadd.f32 %v5657_v33, %v1476_v48 }
 0x3f4   : > { %1543 = vmax.xlane.f32.xlu0 %v5898_v59  ;;  %v1479_v2 = vpop.f32.mrb[35].mxu1  ;;  %v5910_v56 = vadd.f32 %v4574_v54, %v5657_v33 }
 0x3f5   : > { %v5902_v27 = vadd.f32 %v5657_v33, %v1479_v2 }
 0x3f7   : > { %1541 = vmax.xlane.f32.xlu1 %v5902_v27 }
 0x3f8   : > { %1539 = vmax.xlane.f32.xlu0 %v5905_v36 }
 0x3f9   : > { %v4577_v5 = vpop.f32.mrb[36].mxu1 }
 0x3fa   : > { %v5913_v24 = vadd.f32 %v4577_v5, %v5657_v33  ;;  %v1492_v39 = vpop.f32.mrb[37].mxu1 }
 0x3fb   : > { %v4578_v11 = vpop.f32.mrb[38].mxu1  ;;  %v5921_v8 = vadd.f32 %v5657_v33, %v1492_v39 }
 0x3fc   : > { %1545 = vmax.xlane.f32.xlu0 %v5910_v56  ;;  %1551 = vmax.xlane.f32.xlu1 %v5913_v24  ;;  %v1495_v2 = vpop.f32.mrb[39].mxu1  ;;  %v5926_v5 = vadd.f32 %v4578_v11, %v5657_v33 }
 0x3fd   : > { %v5918_v48 = vadd.f32 %v5657_v33, %v1495_v2 }
 0x400   : > { %1549 = vmax.xlane.f32.xlu0 %v5918_v48  ;;  %1547 = vmax.xlane.f32.xlu1 %v5921_v8 }
 0x401   : > { %v4581_v54 = vpop.f32.mrb[40].mxu1 }
 0x402   : > { %v5929_v30 = vadd.f32 %v4581_v54, %v5657_v33  ;;  %v1508_v34 = vpop.f32.mrb[41].mxu1 }
 0x403   : > { %v4582_v55 = vpop.f32.mrb[42].mxu1  ;;  %v5934_v39 = vadd.f32 %v5657_v33, %v1508_v34 }
 0x404   : > { %1553 = vmax.xlane.f32.xlu1 %v5926_v5  ;;  %1559 = vmax.xlane.f32.xlu0 %v5929_v30  ;;  %v1511_v2 = vpop.f32.mrb[43].mxu1  ;;  %v5938_v12 = vadd.f32 %v4582_v55, %v5657_v33 }
 0x405   : > { %v5946_v50 = vadd.f32 %v5657_v33, %v1511_v2 }
 0x408   : > { %1555 = vmax.xlane.f32.xlu1 %v5934_v39 }
 0x409   : > { %v4585_v22 = vpop.f32.mrb[44].mxu1 }
 0x40a   : > { %v1524_v11 = vpop.f32.mrb[45].mxu1  ;;  %v5950_v34 = vadd.f32 %v4585_v22, %v5657_v33  ;;  %v6009_v22 = vpop.permute.xlu1 %1848 }
 0x40b   : > { %v5941_v54 = vadd.f32 %v5657_v33, %v1524_v11  ;;  %v4586_v18 = vpop.f32.mrb[46].mxu1 }
 0x40c   : > { %1561 = vmax.xlane.f32.xlu1 %v5938_v12  ;;  %v1527_v21 = vpop.f32.mrb[47].mxu1  ;;  %v5954_v55 = vadd.f32 %v4586_v18, %v5657_v33 }
 0x40d   : > { %1563 = vmax.xlane.f32.xlu0 %v5941_v54  ;;  %v5972_v18 = vadd.f32 %v5657_v33, %v1527_v21 }
 0x410   : > { %1557 = vmax.xlane.f32.xlu1 %v5946_v50 }
 0x414   : > { %1567 = vmax.xlane.f32.xlu1 %v5950_v34 }
 0x418   : > { %1569 = vmax.xlane.f32.xlu1 %v5954_v55 }
 0x423   : > { %1854 = vrot.lane.b32.xlu0 %v5587_v15, %s5277_s19 }
 0x429   : > { %1852 = vrot.lane.b32.xlu1 %v5563_v51, %s5277_s19 }
 0x42d   : > { %1830 = vrot.lane.b32.xlu1 %v5495_v52, %s5277_s19 }
 0x431   : > { %1834 = vrot.lane.b32.xlu1 %v5536_v23, %s5277_s19 }
 0x435   : > { %1838 = vrot.lane.b32.xlu1 %v5584_v13, %s5277_s19 }
 0x439   : > { %1842 = vrot.lane.b32.xlu1 %v5624_v60, %s5277_s19 }
 0x43d   : > { %2127 = vrot.lane.b32.xlu1 %v5529_v17, %s5277_s19 }
 0x441   : > { %2131 = vrot.lane.b32.xlu1 %v5552_v43, %s5277_s19 }
 0x442   : > { %1565 = vmax.xlane.f32.xlu0 %v5972_v18 }
 0x445   : > { %2133 = vrot.lane.b32.xlu1 %v5580_v10, %s5277_s19 }
 0x449   : > { %2135 = vrot.lane.b32.xlu1 %v5576_v7, %s5277_s19 }
 0x44d   : > { %2139 = vrot.lane.b32.xlu1 %v5600_v35, %s5277_s19 }
 0x451   : > { %2306 = vrot.lane.b32.xlu1 %v5516_v4, %s5278_s20  ;;  %v6001_v4 = vpop.permute.xlu0 %1846 }
 0x455   : > { %v6007_v33 = vpop.permute.xlu0 %1850 }
 0x458   : > { %1856 = vrot.lane.b32.xlu0 %v5611_v45, %s5277_s19 }
 0x45c   : > { %1858 = vrot.lane.b32.xlu0 %v5626_v61, %s5277_s19 }
 0x460   : > { %1828 = vrot.lane.b32.xlu0 %v5479_v41, %s5277_s19 }
 0x464   : > { %1832 = vrot.lane.b32.xlu0 %v5514_v1, %s5277_s19 }
 0x468   : > { %1836 = vrot.lane.b32.xlu0 %v5560_v49, %s5277_s19 }
 0x46c   : > { %1840 = vrot.lane.b32.xlu0 %v5608_v44, %s5277_s19 }
 0x470   : > { %2125 = vrot.lane.b32.xlu0 %v5532_v20, %s5277_s19 }
 0x474   : > { %2129 = vrot.lane.b32.xlu0 %v5556_v46, %s5277_s19 }
 0x478   : > { %2137 = vrot.lane.b32.xlu0 %v5604_v38, %s5277_s19 }
 0x47c   : > { %2302 = vrot.lane.b32.xlu0 %v5481_v42, %s5278_s20 }
 0x480   : > { %2304 = vrot.lane.b32.xlu0 %v5497_v53, %s5278_s20 }
 0x481   : > { %v1544_v21 = vpop.xlane.xlu0 %1543 }
 0x482   : > { %v1573_v29 = vsub.f32 %v5898_v59, %v1544_v21 }
 0x484   : > { %v1542_v2 = vpop.xlane.xlu1 %1541  ;;  %2308 = vrot.lane.b32.xlu0 %v5539_v25, %s5278_s20  ;;  %v1591_v37 = vmul.f32 1.442695, %v1573_v29 }
 0x485   : > { %v1572_v11 = vsub.f32 %v5902_v27, %v1542_v2  ;;  %v1540_v58 = vpop.xlane.xlu0 %1539 }
 0x486   : > { %v1571_v0 = vsub.f32 %v5905_v36, %v1540_v58 }
 0x487   : > { %v1589_v42 = vmul.f32 1.442695, %v1572_v11 }
 0x488   : > { %v1587_v57 = vmul.f32 1.442695, %v1571_v0 }
 0x489   : > { %4959 = vpow2.f32 %v1589_v42  ;;  %v1552_v62 = vpop.xlane.xlu1 %1551  ;;  %v1546_v31 = vpop.xlane.xlu0 %1545 }
 0x48a   : > { %4961 = vpow2.f32 %v1587_v57  ;;  %v1574_v53 = vsub.f32 %v5910_v56, %v1546_v31  ;;  %v1577_v16 = vsub.f32 %v5913_v24, %v1552_v62 }
 0x48b   : > { %4963 = vpow2.f32 %v1591_v37 }
 0x48c   : > { %v1593_v63 = vmul.f32 1.442695, %v1574_v53  ;;  %v1599_v36 = vmul.f32 1.442695, %v1577_v16  ;;  %v1885_v53 = vsel %vm943_vm0, %v5860_v32, 0 }
 0x48d   : > { %v1548_v25 = vpop.xlane.xlu1 %1547  ;;  %v1550_v19 = vpop.xlane.xlu0 %1549 }
 0x48e   : > { %v1575_v27 = vsub.f32 %v5921_v8, %v1548_v25  ;;  %v1576_v59 = vsub.f32 %v5918_v48, %v1550_v19  ;;  %4965 = vpow2.f32 %v1593_v63 }
 0x490   : > { %v1595_v58 = vmul.f32 1.442695, %v1575_v27  ;;  %v1597_v0 = vmul.f32 1.442695, %v1576_v59 }
 0x491   : > { %v1554_v21 = vpop.xlane.xlu1 %1553  ;;  %v1560_v16 = vpop.xlane.xlu0 %1559 }
 0x492   : > { %4967 = vpow2.f32 %v1595_v58  ;;  %v1578_v57 = vsub.f32 %v5926_v5, %v1554_v21  ;;  %v1581_v2 = vsub.f32 %v5929_v30, %v1560_v16 }
 0x493   : > { %v6023_v29 = vpop.eup %4959  ;;  %4969 = vpow2.f32 %v1597_v0 }
 0x494   : > { %v6025_v31 = vpop.eup %4961  ;;  %v1601_v62 = vmul.f32 1.442695, %v1578_v57  ;;  %4971 = vpow2.f32 %v1599_v36  ;;  %v1607_v58 = vmul.f32 1.442695, %v1581_v2 }
 0x495   : > { %v1556_v37 = vpop.xlane.xlu1 %1555  ;;  %v1651_v8 = vpack.c.bf16 %v6023_v29, %v6025_v31  ;;  %v6029_v19 = vpop.eup %4963 }
 0x496   : > { %4973 = vpow2.f32 %v1601_v62  ;;  %v1579_v63 = vsub.f32 %v5934_v39, %v1556_v37 }
 0x497   : > { %4603 = vmatprep.mubr.bf16.mxu0 %v1651_v8  ;;  %v1891_v8 = vsel %vm943_vm0, %v6009_v22, 0 }
 0x498   : > { %v6032_v56 = vpop.eup %4965  ;;  %v1603_v42 = vmul.f32 1.442695, %v1579_v63 }
 0x499   : > { %v1562_v24 = vpop.xlane.xlu1 %1561  ;;  %v1652_v5 = vpack.c.bf16 %v6032_v56, %v6029_v19 }
 0x49a   : > { %v1582_v48 = vsub.f32 %v5938_v12, %v1562_v24  ;;  %4975 = vpow2.f32 %v1603_v42 }
 0x49b   : > { %4604 = vmatmul.mubr.bf16.vlgmr.msra.gmra.mrb[48].mxu0 %v1652_v5 }
 0x49c   : > { %v6038_v11 = vpop.eup %4967  ;;  %v1609_v39 = vmul.f32 1.442695, %v1582_v48  ;;  %4620 = vmatpush3.bf16.xpose.msra.mxu0 %v1885_v53  ;;  %v1894_v48 = vsel %vm943_vm0, %v6007_v33, 0 }
 0x49d   : > { %v6042_v25 = vpop.eup %4969  ;;  %v1558_v27 = vpop.xlane.xlu1 %1557  ;;  %4812 = vmatprep.subr.msk.bf16.mxu0 %vm943_vm0, %v6001_v4 }
 0x49e   : > { %v1580_v12 = vsub.f32 %v5946_v50, %v1558_v27  ;;  %v1653_v30 = vpack.c.bf16 %v6042_v25, %v6038_v11  ;;  %v6049_v59 = vpop.eup %4971  ;;  %4977 = vpow2.f32 %v1609_v39  ;;  %v1888_v50 = vsel %vm943_vm0, %v6001_v4, 0 }
 0x4a0   : > { %v6051_v0 = vpop.eup %4973  ;;  %v1605_v32 = vmul.f32 1.442695, %v1580_v12  ;;  %4607 = vmatprep.mubr.bf16.mxu0 %v1653_v30 }
 0x4a1   : > { %v1654_v36 = vpack.c.bf16 %v6051_v0, %v6049_v59  ;;  %v1568_v21 = vpop.xlane.xlu1 %1567 }
 0x4a2   : > { %4979 = vpow2.f32 %v1605_v32 }
 0x4a3   : > { %4981 = vpow2.f32 %v1607_v58  ;;  %4608 = vmatmul.mubr.bf16.gmra.mrb[52].mxu0 %v1654_v36 }
 0x4a4   : > { %4622 = vmatpush3.bf16.xpose.msra.mxu0 %v1888_v50  ;;  %v6059_v57 = vpop.eup %4975 }
 0x4a5   : > { %4813 = vmatprep.subr.msk.bf16.mxu0 %vm943_vm0, %v6009_v22  ;;  %v1570_v24 = vpop.xlane.xlu1 %1569  ;;  %v1564_v22 = vpop.xlane.xlu0 %1563 }
 0x4a6   : > { %v1583_v39 = vsub.f32 %v5941_v54, %v1564_v22  ;;  %v1586_v27 = vsub.f32 %v5954_v55, %v1570_v24 }
 0x4a8   : > { %v6061_v62 = vpop.eup %4977  ;;  %v1611_v12 = vmul.f32 1.442695, %v1583_v39  ;;  %v1617_v30 = vmul.f32 1.442695, %v1586_v27 }
 0x4a9   : > { %v1853_v5 = vpop.permute.xlu1 %1852  ;;  %v1855_v42 = vpop.permute.xlu0 %1854 }
 0x4aa   : > { %v1897_v2 = vsel %vm943_vm0, %v1853_v5, 0  ;;  %v1900_v53 = vsel %vm943_vm0, %v1855_v42, 0  ;;  %4983 = vpow2.f32 %v1611_v12 }
 0x4ab   : > { %4985 = vpow2.f32 %v1617_v30 }
 0x4ac   : > { %v6063_v37 = vpop.eup %4979  ;;  %4624 = vmatpush3.bf16.xpose.msra.mxu0 %v1891_v8 }
 0x4ad   : > { %v6067_v16 = vpop.eup %4981  ;;  %v1655_v4 = vpack.c.bf16 %v6063_v37, %v6059_v57  ;;  %4814 = vmatprep.subr.msk.bf16.mxu0 %vm943_vm0, %v6007_v33  ;;  %v1585_v33 = vsub.f32 %v5950_v34, %v1568_v21  ;;  %v1831_v8 = vpop.permute.xlu1 %1830 }
 0x4ae   : > { %v1656_v63 = vpack.c.bf16 %v6061_v62, %v6067_v16 }
 0x4af   : > { %4611 = vmatprep.mubr.bf16.mxu0 %v1655_v4  ;;  %v1615_v36 = vmul.f32 1.442695, %v1585_v33 }
 0x4b0   : > { %4612 = vmatmul.mubr.bf16.gmra.mrb[56].mxu0 %v1656_v63 }
 0x4b1   : > { %v1835_v34 = vpop.permute.xlu1 %1834 }
 0x4b4   : > { %4626 = vmatpush3.bf16.xpose.msra.mxu0 %v1894_v48  ;;  %v6088_v63 = vpop.eup %4983 }
 0x4b5   : > { %4815 = vmatprep.subr.msk.bf16.mxu0 %vm943_vm0, %v1853_v5  ;;  %v6091_v24 = vpop.eup %4985  ;;  %v1839_v22 = vpop.permute.xlu1 %1838 }
 0x4b9   : > { %v1843_v27 = vpop.permute.xlu1 %1842 }
 0x4bc   : > { %4628 = vmatpush3.bf16.xpose.msra.mxu0 %v1897_v2 }
 0x4bd   : > { %4816 = vmatprep.subr.msk.bf16.mxu0 %vm943_vm0, %v1855_v42  ;;  %v2128_v12 = vpop.permute.xlu1 %2127 }
 0x4c4   : > { %4630 = vmatpush3.bf16.xpose.msra.mxu0 %v1900_v53 }
 0x4cf   : > { %v1566_v58 = vpop.xlane.xlu0 %1565 }
 0x4d0   : > { %v1584_v32 = vsub.f32 %v5972_v18, %v1566_v58  ;;  %v2132_v58 = vpop.permute.xlu1 %2131 }
 0x4d2   : > { %v1613_v50 = vmul.f32 1.442695, %v1584_v32 }
 0x4d3   : > { %v1857_v4 = vpop.permute.xlu0 %1856 }
 0x4d4   : > { %4987 = vpow2.f32 %v1613_v50  ;;  %4817 = vmatprep.subr.msk.bf16.mxu0 %vm943_vm0, %v1857_v4  ;;  %v1903_v54 = vsel %vm943_vm0, %v1857_v4, 0 }
 0x4d5   : > { %4989 = vpow2.f32 %v1615_v36  ;;  %4632 = vmatpush3.bf16.xpose.msra.mxu0 %v1903_v54  ;;  %v2134_v36 = vpop.permute.xlu1 %2133 }
 0x4d7   : > { %v1859_v55 = vpop.permute.xlu0 %1858 }
 0x4d8   : > { %4818 = vmatprep.subr.msk.bf16.mxu0 %vm943_vm0, %v1859_v55  ;;  %v1906_v18 = vsel %vm943_vm0, %v1859_v55, 0 }
 0x4d9   : > { %v2136_v50 = vpop.permute.xlu1 %2135 }
 0x4db   : > { %v1829_v21 = vpop.permute.xlu0 %1828 }
 0x4dd   : > { %4634 = vmatpush3.bf16.xpose.msra.mxu0 %v1906_v18  ;;  %v2140_v4 = vpop.permute.xlu1 %2139 }
 0x4de   : > { %v6093_v48 = vpop.eup %4987 }
 0x4df   : > { %v6095_v5 = vpop.eup %4989  ;;  %v1833_v2 = vpop.permute.xlu0 %1832  ;;  %v1657_v42 = vpack.c.bf16 %v6093_v48, %v6088_v63 }
 0x4e0   : > { %v1658_v53 = vpack.c.bf16 %v6091_v24, %v6095_v5 }
 0x4e1   : > { %4615 = vmatprep.mubr.bf16.mxu0 %v1657_v42 }
 0x4e2   : > { %4616 = vmatmul.mubr.bf16.gmra.mrb[60].mxu0 %v1658_v53 }
 0x4e3   : > { %4635 = vmatprep.mubr.msk.bf16.mxu0 %vm943_vm0, %v1829_v21  ;;  %v1837_v39 = vpop.permute.xlu0 %1836 }
 0x4e7   : > { %v1841_v33 = vpop.permute.xlu0 %1840 }
 0x4ea   : > { %4636 = vmatmul.mubr.msk.bf16.vlgmr.msra.gmra.mrb[64].mxu0 %vm943_vm0, %v1831_v8 }
 0x4eb   : > { %4639 = vmatprep.mubr.msk.bf16.mxu0 %vm943_vm0, %v1833_v2  ;;  %v2126_v30 = vpop.permute.xlu0 %2125 }
 0x4ec   : > { %4651 = vmatprep.subr.bf16.mxu1 %v2126_v30 }
 0x4ed   : > { %4652 = vmatpush3.bf16.msra.mxu1 %v2126_v30 }
 0x4ee   : > { %4653 = vmatprep.subr.bf16.mxu1 %v2128_v12 }
 0x4ef   : > { %v2130_v32 = vpop.permute.xlu0 %2129 }
 0x4f1   : > { %4654 = vmatpush3.bf16.msra.mxu1 %v2128_v12 }
 0x4f2   : > { %4640 = vmatmul.mubr.msk.bf16.gmra.mrb[68].mxu0 %vm943_vm0, %v1835_v34  ;;  %4655 = vmatprep.subr.bf16.mxu1 %v2130_v32 }
 0x4f3   : > { %4643 = vmatprep.mubr.msk.bf16.mxu0 %vm943_vm0, %v1837_v39  ;;  %v2138_v8 = vpop.permute.xlu0 %2137 }
 0x4f5   : > { %4656 = vmatpush3.bf16.msra.mxu1 %v2130_v32 }
 0x4f6   : > { %4657 = vmatprep.subr.bf16.mxu1 %v2132_v58 }
 0x4f7   : > { %v6109_v54 = vpop.permute.xlu0 %2302 }
 0x4f9   : > { %4658 = vmatpush3.bf16.msra.mxu1 %v2132_v58 }
 0x4fa   : > { %4644 = vmatmul.mubr.msk.bf16.gmra.mrb[72].mxu0 %vm943_vm0, %v1839_v22  ;;  %4659 = vmatprep.subr.bf16.mxu1 %v2134_v36 }
 0x4fb   : > { %4647 = vmatprep.mubr.msk.bf16.mxu0 %vm943_vm0, %v1841_v33 }
 0x4fd   : > { %4660 = vmatpush3.bf16.msra.mxu1 %v2134_v36 }
 0x4fe   : > { %4661 = vmatprep.subr.bf16.mxu1 %v2136_v50 }
 0x501   : > { %4662 = vmatpush3.bf16.msra.mxu1 %v2136_v50 }
 0x502   : > { %4648 = vmatmul.mubr.msk.bf16.gmra.mrb[76].mxu0 %vm943_vm0, %v1843_v27  ;;  %4663 = vmatprep.subr.bf16.mxu1 %v2138_v8 }
 0x505   : > { %4664 = vmatpush3.bf16.msra.mxu1 %v2138_v8  ;;  %v6146_v8 = vld [vmem:[%s5654_s18] ss:$0 sm:$0xff] }
 0x506   : > { %4665 = vmatprep.subr.bf16.mxu1 %v2140_v4 }
 0x509   : > { %4666 = vmatpush3.bf16.msra.mxu1 %v2140_v4 }
 0x50a   : > { %4819 = vmatprep.subr.msk.bf16.mxu1 %vm943_vm0, %v6109_v54 }
 0x56e   : > { %v6113_v55 = vpop.f32.mrb[48].mxu0 }
 0x56f   : > { %v6115_v34 = vpop.f32.mrb[49].mxu0 }
 0x570   : > { %v6117_v21 = vpop.f32.mrb[50].mxu0 }
 0x571   : > { %v6119_v18 = vpop.f32.mrb[51].mxu0 }
 0x576   : > { %v6121_v22 = vpop.f32.mrb[52].mxu0 }
 0x577   : > { %7614 = vst [vmem:[#allocation33_spill] sm:$0xff] %v6121_v22  ;;  %v6123_v2 = vpop.f32.mrb[53].mxu0 }
 0x578   : > { %7615 = vst [vmem:[#allocation34_spill] sm:$0xff] %v6123_v2  ;;  %v6125_v42 = vpop.f32.mrb[54].mxu0 }
 0x579   : > { %7616 = vst [vmem:[#allocation35_spill] sm:$0xff] %v6125_v42  ;;  %v6127_v53 = vpop.f32.mrb[55].mxu0 }
 0x57a   : > { %7617 = vst [vmem:[#allocation36_spill] sm:$0xff] %v6127_v53 }
 0x583   : > { %v6129_v39 = vpop.f32.mrb[56].mxu0 }
 0x584   : > { %7618 = vst [vmem:[#allocation37_spill] sm:$0xff] %v6129_v39  ;;  %v6131_v27 = vpop.f32.mrb[57].mxu0 }
 0x585   : > { %7619 = vst [vmem:[#allocation38_spill] sm:$0xff] %v6131_v27  ;;  %v6133_v33 = vpop.f32.mrb[58].mxu0 }
 0x586   : > { %7620 = vst [vmem:[#allocation39_spill] sm:$0xff] %v6133_v33  ;;  %v6135_v12 = vpop.f32.mrb[59].mxu0 }
 0x587   : > { %7621 = vst [vmem:[#allocation40_spill] sm:$0xff] %v6135_v12 }
 0x5b5   : > { %v6137_v30 = vpop.f32.mrb[60].mxu0 }
 0x5b6   : > { %7622 = vst [vmem:[#allocation41_spill] sm:$0xff] %v6137_v30  ;;  %v6139_v58 = vpop.f32.mrb[61].mxu0 }
 0x5b7   : > { %7623 = vst [vmem:[#allocation42_spill] sm:$0xff] %v6139_v58  ;;  %v6141_v32 = vpop.f32.mrb[62].mxu0 }
 0x5b8   : > { %7624 = vst [vmem:[#allocation43_spill] sm:$0xff] %v6141_v32  ;;  %v6143_v36 = vpop.f32.mrb[63].mxu0 }
 0x5b9   : > { %7625 = vst [vmem:[#allocation44_spill] sm:$0xff] %v6143_v36 }
 0x5bd   : > { %v4637_v50 = vpop.f32.mrb[64].mxu0 }
 0x5be   : > { %v6149_v4 = vadd.f32 %v6146_v8, %v4637_v50  ;;  %v1942_v39 = vpop.f32.mrb[65].mxu0 }
 0x5bf   : > { %v4638_v27 = vpop.f32.mrb[66].mxu0  ;;  %v6156_v30 = vadd.f32 %v6146_v8, %v1942_v39 }
 0x5c0   : > { %2009 = vmax.xlane.f32.xlu0 %v6149_v4  ;;  %v1945_v33 = vpop.f32.mrb[67].mxu0  ;;  %v6161_v36 = vadd.f32 %v6146_v8, %v4638_v27 }
 0x5c1   : > { %v6153_v12 = vadd.f32 %v6146_v8, %v1945_v33 }
 0x5c3   : > { %2007 = vmax.xlane.f32.xlu1 %v6153_v12 }
 0x5c4   : > { %2005 = vmax.xlane.f32.xlu0 %v6156_v30 }
 0x5c5   : > { %v4641_v32 = vpop.f32.mrb[68].mxu0 }
 0x5c6   : > { %v6164_v50 = vadd.f32 %v6146_v8, %v4641_v32  ;;  %v1958_v58 = vpop.f32.mrb[69].mxu0 }
 0x5c7   : > { %v4642_v42 = vpop.f32.mrb[70].mxu0  ;;  %v6172_v22 = vadd.f32 %v6146_v8, %v1958_v58 }
 0x5c8   : > { %2011 = vmax.xlane.f32.xlu0 %v6161_v36  ;;  %2017 = vmax.xlane.f32.xlu1 %v6164_v50  ;;  %v1961_v33 = vpop.f32.mrb[71].mxu0  ;;  %v6177_v32 = vadd.f32 %v6146_v8, %v4642_v42 }
 0x5c9   : > { %v6169_v39 = vadd.f32 %v6146_v8, %v1961_v33 }
 0x5cc   : > { %2015 = vmax.xlane.f32.xlu0 %v6169_v39  ;;  %2013 = vmax.xlane.f32.xlu1 %v6172_v22 }
 0x5cd   : > { %v4645_v27 = vpop.f32.mrb[72].mxu0 }
 0x5ce   : > { %v6180_v53 = vadd.f32 %v6146_v8, %v4645_v27  ;;  %v1974_v2 = vpop.f32.mrb[73].mxu0 }
 0x5cf   : > { %v4646_v14 = vpop.f32.mrb[74].mxu0  ;;  %v6185_v58 = vadd.f32 %v6146_v8, %v1974_v2 }
 0x5d0   : > { %2019 = vmax.xlane.f32.xlu1 %v6177_v32  ;;  %2025 = vmax.xlane.f32.xlu0 %v6180_v53  ;;  %v1977_v33 = vpop.f32.mrb[75].mxu0  ;;  %v6189_v9 = vadd.f32 %v6146_v8, %v4646_v14 }
 0x5d1   : > { %v6197_v6 = vadd.f32 %v6146_v8, %v1977_v33 }
 0x5d4   : > { %2021 = vmax.xlane.f32.xlu1 %v6185_v58 }
 0x5d5   : > { %v4649_v47 = vpop.f32.mrb[76].mxu0 }
 0x5d6   : > { %v1990_v42 = vpop.f32.mrb[77].mxu0  ;;  %v6201_v2 = vadd.f32 %v6146_v8, %v4649_v47 }
 0x5d7   : > { %v6192_v27 = vadd.f32 %v6146_v8, %v1990_v42  ;;  %v4650_v28 = vpop.f32.mrb[78].mxu0 }
 0x5d8   : > { %2027 = vmax.xlane.f32.xlu1 %v6189_v9  ;;  %v1993_v40 = vpop.f32.mrb[79].mxu0  ;;  %v6205_v14 = vadd.f32 %v6146_v8, %v4650_v28 }
 0x5d9   : > { %2029 = vmax.xlane.f32.xlu0 %v6192_v27 }
 0x5dc   : > { %2023 = vmax.xlane.f32.xlu1 %v6197_v6 }
 0x5e0   : > { %2033 = vmax.xlane.f32.xlu1 %v6201_v2 }
 0x5e4   : > { %2035 = vmax.xlane.f32.xlu1 %v6205_v14 }
 0x5ef   : > { %2312 = vrot.lane.b32.xlu0 %v5587_v15, %s5278_s20  ;;  %v6223_v15 = vadd.f32 %v6146_v8, %v1993_v40 }
 0x5f5   : > { %2310 = vrot.lane.b32.xlu1 %v5563_v51, %s5278_s20 }
 0x5f9   : > { %2288 = vrot.lane.b32.xlu1 %v5495_v52, %s5278_s20 }
 0x5fd   : > { %2292 = vrot.lane.b32.xlu1 %v5536_v23, %s5278_s20 }
 0x601   : > { %2296 = vrot.lane.b32.xlu1 %v5584_v13, %s5278_s20 }
 0x605   : > { %2300 = vrot.lane.b32.xlu1 %v5624_v60, %s5278_s20 }
 0x609   : > { %2585 = vrot.lane.b32.xlu1 %v5529_v17, %s5278_s20 }
 0x60d   : > { %2593 = vrot.lane.b32.xlu1 %v5576_v7, %s5278_s20 }
 0x60e   : > { %2031 = vmax.xlane.f32.xlu0 %v6223_v15 }
 0x624   : > { %2314 = vrot.lane.b32.xlu0 %v5611_v45, %s5278_s20 }
 0x628   : > { %2316 = vrot.lane.b32.xlu0 %v5626_v61, %s5278_s20 }
 0x62c   : > { %2286 = vrot.lane.b32.xlu0 %v5479_v41, %s5278_s20  ;;  %v6246_v41 = vpop.permute.xlu0 %2304 }
 0x630   : > { %2290 = vrot.lane.b32.xlu0 %v5514_v1, %s5278_s20  ;;  %v6252_v52 = vpop.permute.xlu0 %2308  ;;  %v6254_v1 = vpop.permute.xlu1 %2306 }
 0x631   : > { %1621 = vadd.xlane.f32.xlu1 %v6023_v29 }
 0x634   : > { %2294 = vrot.lane.b32.xlu0 %v5560_v49, %s5278_s20 }
 0x635   : > { %1625 = vadd.xlane.f32.xlu1 %v6032_v56 }
 0x638   : > { %2298 = vrot.lane.b32.xlu0 %v5608_v44, %s5278_s20 }
 0x63c   : > { %2583 = vrot.lane.b32.xlu0 %v5532_v20, %s5278_s20 }
 0x640   : > { %2587 = vrot.lane.b32.xlu0 %v5556_v46, %s5278_s20 }
 0x644   : > { %2589 = vrot.lane.b32.xlu0 %v5552_v43, %s5278_s20 }
 0x648   : > { %2591 = vrot.lane.b32.xlu0 %v5580_v10, %s5278_s20 }
 0x64c   : > { %2595 = vrot.lane.b32.xlu0 %v5604_v38, %s5278_s20 }
 0x64d   : > { %v2010_v17 = vpop.xlane.xlu0 %2009 }
 0x64e   : > { %v2039_v43 = vsub.f32 %v6149_v4, %v2010_v17 }
 0x650   : > { %v2008_v20 = vpop.xlane.xlu1 %2007  ;;  %2597 = vrot.lane.b32.xlu0 %v5600_v35, %s5278_s20  ;;  %v2057_v44 = vmul.f32 1.442695, %v2039_v43 }
 0x651   : > { %v2038_v23 = vsub.f32 %v6153_v12, %v2008_v20  ;;  %v2006_v46 = vpop.xlane.xlu0 %2005 }
 0x652   : > { %v2037_v49 = vsub.f32 %v6156_v30, %v2006_v46 }
 0x653   : > { %v2055_v51 = vmul.f32 1.442695, %v2038_v23 }
 0x654   : > { %v2053_v7 = vmul.f32 1.442695, %v2037_v49 }
 0x655   : > { %4991 = vpow2.f32 %v2055_v51  ;;  %v2018_v10 = vpop.xlane.xlu1 %2017  ;;  %v2012_v13 = vpop.xlane.xlu0 %2011 }
 0x656   : > { %4993 = vpow2.f32 %v2053_v7  ;;  %v2040_v38 = vsub.f32 %v6161_v36, %v2012_v13  ;;  %v2043_v60 = vsub.f32 %v6164_v50, %v2018_v10  ;;  %v2343_v7 = vsel %vm943_vm0, %v6109_v54, 0 }
 0x657   : > { %4995 = vpow2.f32 %v2057_v44 }
 0x658   : > { %v2059_v45 = vmul.f32 1.442695, %v2040_v38  ;;  %v2065_v56 = vmul.f32 1.442695, %v2043_v60 }
 0x659   : > { %v2014_v35 = vpop.xlane.xlu1 %2013  ;;  %v2016_v61 = vpop.xlane.xlu0 %2015 }
 0x65a   : > { %v2041_v28 = vsub.f32 %v6172_v22, %v2014_v35  ;;  %v2042_v40 = vsub.f32 %v6169_v39, %v2016_v61  ;;  %4997 = vpow2.f32 %v2059_v45 }
 0x65c   : > { %v2061_v47 = vmul.f32 1.442695, %v2041_v28  ;;  %v2063_v29 = vmul.f32 1.442695, %v2042_v40 }
 0x65d   : > { %v2020_v12 = vpop.xlane.xlu1 %2019  ;;  %v2026_v42 = vpop.xlane.xlu0 %2025 }
 0x65e   : > { %4999 = vpow2.f32 %v2061_v47  ;;  %v2044_v30 = vsub.f32 %v6177_v32, %v2020_v12  ;;  %v2047_v43 = vsub.f32 %v6180_v53, %v2026_v42 }
 0x65f   : > { %v6268_v4 = vpop.eup %4991  ;;  %5001 = vpow2.f32 %v2063_v29 }
 0x660   : > { %v6270_v36 = vpop.eup %4993  ;;  %v2067_v50 = vmul.f32 1.442695, %v2044_v30  ;;  %5003 = vpow2.f32 %v2065_v56  ;;  %v2073_v38 = vmul.f32 1.442695, %v2047_v43  ;;  %v2352_v56 = vsel %vm943_vm0, %v6252_v52, 0 }
 0x661   : > { %v2022_v33 = vpop.xlane.xlu1 %2021  ;;  %v2117_v22 = vpack.c.bf16 %v6268_v4, %v6270_v36  ;;  %v6274_v39 = vpop.eup %4995 }
 0x662   : > { %5005 = vpow2.f32 %v2067_v50  ;;  %v2045_v17 = vsub.f32 %v6185_v58, %v2022_v33 }
 0x663   : > { %4667 = vmatprep.mubr.bf16.mxu1 %v2117_v22 }
 0x664   : > { %v6277_v20 = vpop.eup %4997  ;;  %v2069_v51 = vmul.f32 1.442695, %v2045_v17 }
 0x665   : > { %v2028_v32 = vpop.xlane.xlu1 %2027  ;;  %v2118_v46 = vpack.c.bf16 %v6277_v20, %v6274_v39 }
 0x666   : > { %v2048_v23 = vsub.f32 %v6189_v9, %v2028_v32  ;;  %5007 = vpow2.f32 %v2069_v51 }
 0x667   : > { %4668 = vmatmul.mubr.bf16.vlgmr.msra.gmra.mrb[48].mxu1 %v2118_v46 }
 0x668   : > { %v6283_v49 = vpop.eup %4999  ;;  %v2075_v58 = vmul.f32 1.442695, %v2048_v23  ;;  %4684 = vmatpush3.bf16.xpose.msra.mxu1 %v2343_v7 }
 0x669   : > { %v6287_v10 = vpop.eup %5001  ;;  %v2024_v13 = vpop.xlane.xlu1 %2023  ;;  %4820 = vmatprep.subr.msk.bf16.mxu1 %vm943_vm0, %v6246_v41 }
 0x66a   : > { %v2046_v9 = vsub.f32 %v6197_v6, %v2024_v13  ;;  %v2119_v53 = vpack.c.bf16 %v6287_v10, %v6283_v49  ;;  %v6294_v44 = vpop.eup %5003  ;;  %5009 = vpow2.f32 %v2075_v58  ;;  %v2346_v6 = vsel %vm943_vm0, %v6246_v41, 0 }
 0x66c   : > { %v6296_v45 = vpop.eup %5005  ;;  %v2071_v54 = vmul.f32 1.442695, %v2046_v9  ;;  %4671 = vmatprep.mubr.bf16.mxu1 %v2119_v53 }
 0x66d   : > { %v2120_v60 = vpack.c.bf16 %v6296_v45, %v6294_v44  ;;  %v2034_v35 = vpop.xlane.xlu1 %2033 }
 0x66e   : > { %5011 = vpow2.f32 %v2071_v54 }
 0x66f   : > { %5013 = vpow2.f32 %v2073_v38  ;;  %1619 = vadd.xlane.f32.xlu0 %v6025_v31  ;;  %4672 = vmatmul.mubr.bf16.gmra.mrb[52].mxu1 %v2120_v60  ;;  %v2349_v31 = vsel %vm943_vm0, %v6254_v1, 0 }
 0x670   : > { %4686 = vmatpush3.bf16.xpose.msra.mxu1 %v2346_v6  ;;  %v6306_v61 = vpop.eup %5007 }
 0x671   : > { %4821 = vmatprep.subr.msk.bf16.mxu1 %vm943_vm0, %v6254_v1  ;;  %v2036_v29 = vpop.xlane.xlu1 %2035  ;;  %v2030_v1 = vpop.xlane.xlu0 %2029 }
 0x672   : > { %v2049_v22 = vsub.f32 %v6192_v27, %v2030_v1  ;;  %v2052_v42 = vsub.f32 %v6205_v14, %v2036_v29 }
 0x673   : > { %1623 = vadd.xlane.f32.xlu0 %v6029_v19 }
 0x674   : > { %v6308_v28 = vpop.eup %5009  ;;  %v2077_v17 = vmul.f32 1.442695, %v2049_v22  ;;  %v2083_v32 = vmul.f32 1.442695, %v2052_v42  ;;  %v7626_v42 = vmov 0  }
 0x675   : > { %v2311_v12 = vpop.permute.xlu1 %2310  ;;  %v2313_v50 = vpop.permute.xlu0 %2312 }
 0x676   : > { %v2355_v30 = vsel %vm943_vm0, %v2311_v12, 0  ;;  %v2358_v33 = vsel %vm943_vm0, %v2313_v50, 0  ;;  %5015 = vpow2.f32 %v2077_v17 }
 0x677   : > { %5017 = vpow2.f32 %v2083_v32 }
 0x678   : > { %v6310_v40 = vpop.eup %5011  ;;  %4688 = vmatpush3.bf16.xpose.msra.mxu1 %v2349_v31 }
 0x679   : > { %v6314_v47 = vpop.eup %5013  ;;  %v2121_v41 = vpack.c.bf16 %v6310_v40, %v6306_v61  ;;  %4822 = vmatprep.subr.msk.bf16.mxu1 %vm943_vm0, %v6252_v52  ;;  %v2051_v52 = vsub.f32 %v6201_v2, %v2034_v35  ;;  %v2289_v27 = vpop.permute.xlu1 %2288 }
 0x67a   : > { %v2122_v19 = vpack.c.bf16 %v6308_v28, %v6314_v47 }
 0x67b   : > { %4675 = vmatprep.mubr.bf16.mxu1 %v2121_v41  ;;  %v2081_v43 = vmul.f32 1.442695, %v2051_v52 }
 0x67c   : > { %4676 = vmatmul.mubr.bf16.gmra.mrb[56].mxu1 %v2122_v19 }
 0x67d   : > { %v2293_v2 = vpop.permute.xlu1 %2292 }
 0x680   : > { %4690 = vmatpush3.bf16.xpose.msra.mxu1 %v2352_v56  ;;  %v6335_v9 = vpop.eup %5015 }
 0x681   : > { %4823 = vmatprep.subr.msk.bf16.mxu1 %vm943_vm0, %v2311_v12  ;;  %v6338_v53 = vpop.eup %5017  ;;  %v2297_v31 = vpop.permute.xlu1 %2296 }
 0x685   : > { %v2301_v19 = vpop.permute.xlu1 %2300 }
 0x688   : > { %4692 = vmatpush3.bf16.xpose.msra.mxu1 %v2355_v30 }
 0x689   : > { %4824 = vmatprep.subr.msk.bf16.mxu1 %vm943_vm0, %v2313_v50  ;;  %v2586_v12 = vpop.permute.xlu1 %2585 }
 0x690   : > { %4694 = vmatpush3.bf16.xpose.msra.mxu1 %v2358_v33  ;;  %v2594_v33 = vpop.permute.xlu1 %2593 }
 0x69b   : > { %v2032_v23 = vpop.xlane.xlu0 %2031 }
 0x69c   : > { %v2050_v46 = vsub.f32 %v6223_v15, %v2032_v23 }
 0x69e   : > { %v2079_v51 = vmul.f32 1.442695, %v2050_v46 }
 0x69f   : > { %v2315_v7 = vpop.permute.xlu0 %2314 }
 0x6a0   : > { %5019 = vpow2.f32 %v2079_v51  ;;  %4825 = vmatprep.subr.msk.bf16.mxu1 %vm943_vm0, %v2315_v7  ;;  %v2361_v58 = vsel %vm943_vm0, %v2315_v7, 0 }
 0x6a1   : > { %5021 = vpow2.f32 %v2081_v43  ;;  %4696 = vmatpush3.bf16.xpose.msra.mxu1 %v2361_v58 }
 0x6a3   : > { %v2317_v14 = vpop.permute.xlu0 %2316 }
 0x6a4   : > { %4826 = vmatprep.subr.msk.bf16.mxu1 %vm943_vm0, %v2317_v14  ;;  %v2364_v15 = vsel %vm943_vm0, %v2317_v14, 0 }
 0x6a7   : > { %v2287_v13 = vpop.permute.xlu0 %2286 }
 0x6a9   : > { %4698 = vmatpush3.bf16.xpose.msra.mxu1 %v2364_v15 }
 0x6aa   : > { %v6340_v38 = vpop.eup %5019 }
 0x6ab   : > { %v6342_v54 = vpop.eup %5021  ;;  %v2291_v60 = vpop.permute.xlu0 %2290  ;;  %v2123_v6 = vpack.c.bf16 %v6340_v38, %v6335_v9 }
 0x6ac   : > { %v2124_v35 = vpack.c.bf16 %v6338_v53, %v6342_v54 }
 0x6ad   : > { %4679 = vmatprep.mubr.bf16.mxu1 %v2123_v6 }
 0x6ae   : > { %4680 = vmatmul.mubr.bf16.gmra.mrb[60].mxu1 %v2124_v35 }
 0x6af   : > { %4699 = vmatprep.mubr.msk.bf16.mxu1 %vm943_vm0, %v2287_v13  ;;  %v2295_v41 = vpop.permute.xlu0 %2294 }
 0x6b3   : > { %v2299_v29 = vpop.permute.xlu0 %2298 }
 0x6b6   : > { %4700 = vmatmul.mubr.msk.bf16.vlgmr.msra.gmra.mrb[64].mxu1 %vm943_vm0, %v2289_v27 }
 0x6b7   : > { %4703 = vmatprep.mubr.msk.bf16.mxu1 %vm943_vm0, %v2291_v60  ;;  %v2584_v56 = vpop.permute.xlu0 %2583 }
 0x6b8   : > { %4715 = vmatprep.subr.bf16.mxu0 %v2584_v56 }
 0x6b9   : > { %4716 = vmatpush3.bf16.msra.mxu0 %v2584_v56 }
 0x6ba   : > { %4717 = vmatprep.subr.bf16.mxu0 %v2586_v12 }
 0x6bb   : > { %v2588_v1 = vpop.permute.xlu0 %2587 }
 0x6bd   : > { %4718 = vmatpush3.bf16.msra.mxu0 %v2586_v12 }
 0x6be   : > { %4704 = vmatmul.mubr.msk.bf16.gmra.mrb[68].mxu1 %vm943_vm0, %v2293_v2  ;;  %4719 = vmatprep.subr.bf16.mxu0 %v2588_v1  ;;  %v1622_v17 = vpop.xlane.xlu1 %1621 }
 0x6bf   : > { %4707 = vmatprep.mubr.msk.bf16.mxu1 %vm943_vm0, %v2295_v41  ;;  %v2590_v30 = vpop.permute.xlu0 %2589  ;;  %5023 = vrcp.f32 %v1622_v17 }
 0x6c1   : > { %4720 = vmatpush3.bf16.msra.mxu0 %v2588_v1 }
 0x6c2   : > { %4721 = vmatprep.subr.bf16.mxu0 %v2590_v30  ;;  %v1626_v32 = vpop.xlane.xlu1 %1625 }
 0x6c3   : > { %v2592_v50 = vpop.permute.xlu0 %2591 }
 0x6c5   : > { %4722 = vmatpush3.bf16.msra.mxu0 %v2590_v30 }
 0x6c6   : > { %4708 = vmatmul.mubr.msk.bf16.gmra.mrb[72].mxu1 %vm943_vm0, %v2297_v31  ;;  %4723 = vmatprep.subr.bf16.mxu0 %v2592_v50 }
 0x6c7   : > { %4711 = vmatprep.mubr.msk.bf16.mxu1 %vm943_vm0, %v2299_v29  ;;  %v2596_v22 = vpop.permute.xlu0 %2595 }
 0x6c9   : > { %4724 = vmatpush3.bf16.msra.mxu0 %v2592_v50  ;;  %v5024_v43 = vpop.eup %5023 }
 0x6ca   : > { %4725 = vmatprep.subr.bf16.mxu0 %v2594_v33  ;;  %v6361_v58 = vmul.f32 %v5024_v43, %v6119_v18 }
 0x6cb   : > { %v2598_v52 = vpop.permute.xlu0 %2597 }
 0x6cd   : > { %4726 = vmatpush3.bf16.msra.mxu0 %v2594_v33 }
 0x6ce   : > { %4712 = vmatmul.mubr.msk.bf16.gmra.mrb[76].mxu1 %vm943_vm0, %v2301_v19  ;;  %4727 = vmatprep.subr.bf16.mxu0 %v2596_v22 }
 0x6cf   : > { %3424 = vmatprep.mubr.bf16.mxu1 %v7626_v42 }
 0x6d1   : > { %4728 = vmatpush3.bf16.msra.mxu0 %v2596_v22 }
 0x6d2   : > { %4729 = vmatprep.subr.bf16.mxu0 %v2598_v52 }
 0x6d5   : > { %4730 = vmatpush3.bf16.msra.mxu0 %v2598_v52 }
 0x6fc   : > { %v1620_v23 = vpop.xlane.xlu0 %1619 }
 0x6fd   : > { %5025 = vrcp.f32 %v1620_v23 }
 0x6fe   : > { %5027 = vrcp.f32 %v1626_v32 }
 0x700   : > { %v1624_v46 = vpop.xlane.xlu0 %1623 }
 0x701   : > { %5029 = vrcp.f32 %v1624_v46 }
 0x707   : > { %v5026_v51 = vpop.eup %5025 }
 0x708   : > { %v6358_v7 = vmul.f32 %v5026_v51, %v6115_v34  ;;  %v5028_v27 = vpop.eup %5027 }
 0x709   : > { %v6369_v15 = vmul.f32 %v5028_v27, %v6117_v21 }
 0x70b   : > { %v5030_v2 = vpop.eup %5029 }
 0x70c   : > { %v6366_v13 = vmul.f32 %v5030_v2, %v6113_v55 }
 0x73a   : > { %v6373_v6 = vpop.f32.mrb[48].mxu1 }
 0x73b   : > { %v6375_v34 = vpop.f32.mrb[49].mxu1 }
 0x73c   : > { %v6377_v18 = vpop.f32.mrb[50].mxu1 }
 0x73d   : > { %v6379_v35 = vpop.f32.mrb[51].mxu1 }
 0x742   : > { %v6381_v31 = vpop.f32.mrb[52].mxu1 }
 0x743   : > { %v6383_v41 = vpop.f32.mrb[53].mxu1 }
 0x744   : > { %v6385_v55 = vpop.f32.mrb[54].mxu1 }
 0x745   : > { %v6387_v19 = vpop.f32.mrb[55].mxu1 }
 0x74f   : > { %v6389_v21 = vpop.f32.mrb[56].mxu1 }
 0x750   : > { %v6391_v29 = vpop.f32.mrb[57].mxu1 }
 0x751   : > { %v6393_v56 = vpop.f32.mrb[58].mxu1 }
 0x752   : > { %v6395_v12 = vpop.f32.mrb[59].mxu1 }
 0x781   : > { %v6397_v1 = vpop.f32.mrb[60].mxu1 }
 0x782   : > { %v6399_v30 = vpop.f32.mrb[61].mxu1 }
 0x783   : > { %v6401_v50 = vpop.f32.mrb[62].mxu1 }
 0x784   : > { %7627 = vst [vmem:[#allocation45_spill] sm:$0xff] %v6401_v50  ;;  %v6403_v33 = vpop.f32.mrb[63].mxu1 }
 0x789   : > { %v4701_v22 = vpop.f32.mrb[64].mxu1 }
 0x78a   : > { %v6406_v52 = vadd.f32 %v6146_v8, %v4701_v22  ;;  %v2400_v17 = vpop.f32.mrb[65].mxu1 }
 0x78b   : > { %v6409_v32 = vadd.f32 %v6146_v8, %v2400_v17  ;;  %v4702_v23 = vpop.f32.mrb[66].mxu1 }
 0x78c   : > { %2467 = vmax.xlane.f32.xlu1 %v6406_v52  ;;  %v2403_v46 = vpop.f32.mrb[67].mxu1  ;;  %v6418_v22 = vadd.f32 %v6146_v8, %v4702_v23 }
 0x78d   : > { %2463 = vmax.xlane.f32.xlu0 %v6409_v32 }
 0x790   : > { %2087 = vadd.xlane.f32.xlu1 %v6268_v4  ;;  %v6423_v4 = vadd.f32 %v6146_v8, %v2403_v46 }
 0x791   : > { %2085 = vadd.xlane.f32.xlu0 %v6270_v36  ;;  %v4705_v43 = vpop.f32.mrb[68].mxu1 }
 0x792   : > { %v2416_v51 = vpop.f32.mrb[69].mxu1 }
 0x793   : > { %v4706_v27 = vpop.f32.mrb[70].mxu1  ;;  %v6426_v60 = vadd.f32 %v6146_v8, %v2416_v51 }
 0x794   : > { %2091 = vadd.xlane.f32.xlu1 %v6277_v20  ;;  %v2419_v2 = vpop.f32.mrb[71].mxu1  ;;  %v6441_v50 = vadd.f32 %v6146_v8, %v4706_v27 }
 0x795   : > { %2089 = vadd.xlane.f32.xlu0 %v6274_v39 }
 0x798   : > { %2469 = vmax.xlane.f32.xlu1 %v6418_v22 }
 0x799   : > { %1627 = vadd.xlane.f32.xlu0 %v6038_v11  ;;  %v4709_v17 = vpop.f32.mrb[72].mxu1  ;;  %v6433_v11 = vadd.f32 %v6146_v8, %v4705_v43 }
 0x79a   : > { %v2432_v36 = vpop.f32.mrb[73].mxu1  ;;  %v6436_v46 = vadd.f32 %v6146_v8, %v4709_v17 }
 0x79b   : > { %v4710_v14 = vpop.f32.mrb[74].mxu1 }
 0x79c   : > { %2465 = vmax.xlane.f32.xlu1 %v6423_v4  ;;  %v2435_v20 = vpop.f32.mrb[75].mxu1  ;;  %v6452_v43 = vadd.f32 %v6146_v8, %v4710_v14 }
 0x79d   : > { %2471 = vmax.xlane.f32.xlu0 %v6426_v60  ;;  %v6466_v14 = vadd.f32 %v6146_v8, %v2435_v20 }
 0x7a0   : > { %1629 = vadd.xlane.f32.xlu1 %v6042_v25  ;;  %v6444_v25 = vadd.f32 %v6146_v8, %v2432_v36 }
 0x7a1   : > { %1631 = vadd.xlane.f32.xlu0 %v6049_v59  ;;  %v4713_v39 = vpop.f32.mrb[76].mxu1  ;;  %v6449_v59 = vadd.f32 %v6146_v8, %v2419_v2 }
 0x7a2   : > { %v2448_v23 = vpop.f32.mrb[77].mxu1  ;;  %v6461_v27 = vadd.f32 %v6146_v8, %v4713_v39 }
 0x7a3   : > { %v4714_v51 = vpop.f32.mrb[78].mxu1  ;;  %v6469_v2 = vadd.f32 %v6146_v8, %v2448_v23 }
 0x7a4   : > { %2475 = vmax.xlane.f32.xlu1 %v6433_v11  ;;  %v2451_v42 = vpop.f32.mrb[79].mxu1 }
 0x7a5   : > { %2483 = vmax.xlane.f32.xlu0 %v6436_v46 }
 0x7a8   : > { %2477 = vmax.xlane.f32.xlu1 %v6441_v50 }
 0x7a9   : > { %2479 = vmax.xlane.f32.xlu0 %v6444_v25 }
 0x7ac   : > { %2473 = vmax.xlane.f32.xlu1 %v6449_v59 }
 0x7ad   : > { %2485 = vmax.xlane.f32.xlu0 %v6452_v43 }
 0x7b0   : > { %1633 = vadd.xlane.f32.xlu1 %v6051_v0  ;;  %v6478_v0 = vadd.f32 %v6146_v8, %v4714_v51 }
 0x7b1   : > { %2093 = vadd.xlane.f32.xlu0 %v6283_v49  ;;  %v6483_v49 = vadd.f32 %v6146_v8, %v2451_v42 }
 0x7b4   : > { %2095 = vadd.xlane.f32.xlu1 %v6287_v10 }
 0x7b5   : > { %2097 = vadd.xlane.f32.xlu0 %v6294_v44 }
 0x7b8   : > { %2099 = vadd.xlane.f32.xlu1 %v6296_v45  ;;  %v7636_v45 = vld [vmem:[#allocation10_spill] sm:$0xff] }
 0x7b9   : > { %2491 = vmax.xlane.f32.xlu0 %v6461_v27 }
 0x7bc   : > { %2481 = vmax.xlane.f32.xlu1 %v6466_v14 }
 0x7bd   : > { %2487 = vmax.xlane.f32.xlu0 %v6469_v2 }
 0x7c0   : > { %1637 = vadd.xlane.f32.xlu1 %v6063_v37  ;;  %v7630_v37 = vld [vmem:[#allocation3_spill] sm:$0xff] }
 0x7c1   : > { %1635 = vadd.xlane.f32.xlu0 %v6059_v57  ;;  %v7628_v57 = vld [vmem:[#allocation4_spill] sm:$0xff] }
 0x7c4   : > { %1641 = vadd.xlane.f32.xlu1 %v6061_v62  ;;  %v7629_v62 = vld [vmem:[#allocation5_spill] sm:$0xff] }
 0x7c5   : > { %1639 = vadd.xlane.f32.xlu0 %v6067_v16  ;;  %v7631_v16 = vld [vmem:[#allocation6_spill] sm:$0xff] }
 0x7c8   : > { %2493 = vmax.xlane.f32.xlu1 %v6478_v0 }
 0x7c9   : > { %2101 = vadd.xlane.f32.xlu0 %v6306_v61 }
 0x7cc   : > { %2489 = vmax.xlane.f32.xlu1 %v6483_v49 }
 0x7cd   : > { %2105 = vadd.xlane.f32.xlu0 %v6314_v47 }
 0x7d0   : > { %2103 = vadd.xlane.f32.xlu1 %v6310_v40 }
 0x7d1   : > { %1643 = vadd.xlane.f32.xlu0 %v6088_v63  ;;  %v7632_v63 = vld [vmem:[#allocation9_spill] sm:$0xff] }
 0x7d4   : > { %2107 = vadd.xlane.f32.xlu1 %v6308_v28 }
 0x7d5   : > { %1647 = vadd.xlane.f32.xlu0 %v6095_v5 }
 0x7d8   : > { %1645 = vadd.xlane.f32.xlu1 %v6093_v48 }
 0x7d9   : > { %2109 = vadd.xlane.f32.xlu0 %v6335_v9 }
 0x7dc   : > { %1649 = vadd.xlane.f32.xlu1 %v6091_v24  ;;  %v7633_v24 = vld [vmem:[#allocation7_spill] sm:$0xff] }
 0x7dd   : > { %2113 = vadd.xlane.f32.xlu0 %v6342_v54 }
 0x7e0   : > { %2111 = vadd.xlane.f32.xlu1 %v6340_v38 }
 0x7e1   : > { %1169 = vadd.xlane.f32.xlu0 %v5777_v26  ;;  %v7634_v26 = vpack.c.bf16 %v6361_v58, %v6358_v7 }
 0x7e4   : > { %2115 = vadd.xlane.f32.xlu1 %v6338_v53 }
 0x7e5   : > { %1173 = vadd.xlane.f32.xlu0 %v5783_v3  ;;  %v7635_v3 = vpack.c.bf16 %v6369_v15, %v6366_v13 }
 0x7e8   : > { %1171 = vadd.xlane.f32.xlu1 %v7628_v57 }
 0x7e9   : > { %1177 = vadd.xlane.f32.xlu0 %v7629_v62 }
 0x7ec   : > { %1175 = vadd.xlane.f32.xlu1 %v7630_v37 }
 0x7ed   : > { %1181 = vadd.xlane.f32.xlu0 %v7631_v16 }
 0x7f0   : > { %1179 = vadd.xlane.f32.xlu1 %v7632_v63 }
 0x7f4   : > { %1183 = vadd.xlane.f32.xlu1 %v7633_v24 }
 0x803   : > { %2752 = vrot.lane.b32.xlu0 %v7634_v26, %s5278_s20 }
 0x805   : > { %2754 = vrot.lane.b32.xlu1 %v7635_v3, %s5278_s20 }
 0x819   : > { %v2468_v48 = vpop.xlane.xlu1 %2467 }
 0x81a   : > { %v2464_v5 = vpop.xlane.xlu0 %2463  ;;  %v2497_v53 = vsub.f32 %v6406_v52, %v2468_v48 }
 0x81b   : > { %v2495_v28 = vsub.f32 %v6409_v32, %v2464_v5 }
 0x81c   : > { %v2515_v17 = vmul.f32 1.442695, %v2497_v53 }
 0x81d   : > { %v2088_v8 = vpop.xlane.xlu1 %2087  ;;  %v2511_v38 = vmul.f32 1.442695, %v2495_v28 }
 0x81e   : > { %v2086_v10 = vpop.xlane.xlu0 %2085  ;;  %5031 = vrcp.f32 %v2088_v8 }
 0x81f   : > { %5033 = vrcp.f32 %v2086_v10 }
 0x821   : > { %v2092_v44 = vpop.xlane.xlu1 %2091 }
 0x822   : > { %5035 = vrcp.f32 %v2092_v44  ;;  %1187 = vadd.xlane.f32.xlu0 %v7636_v45  ;;  %v2090_v61 = vpop.xlane.xlu0 %2089 }
 0x823   : > { %5037 = vrcp.f32 %v2090_v61 }
 0x824   : > { %5039 = vpow2.f32 %v2511_v38 }
 0x825   : > { %v2470_v40 = vpop.xlane.xlu1 %2469 }
 0x826   : > { %v2498_v47 = vsub.f32 %v6418_v22, %v2470_v40  ;;  %v1628_v9 = vpop.xlane.xlu0 %1627 }
 0x827   : > { %5041 = vrcp.f32 %v1628_v9  ;;  %v7638_v9 = vld [vmem:[#allocation36_spill] sm:$0xff] }
 0x828   : > { %v2517_v54 = vmul.f32 1.442695, %v2498_v47  ;;  %v5032_v7 = vpop.eup %5031 }
 0x829   : > { %v2466_v42 = vpop.xlane.xlu1 %2465  ;;  %v5034_v15 = vpop.eup %5033  ;;  %v2263_v36 = vmul.f32 %v5032_v7, %v6379_v35 }
 0x82a   : > { %v2496_v58 = vsub.f32 %v6423_v4, %v2466_v42  ;;  %v2472_v13 = vpop.xlane.xlu0 %2471  ;;  %v2262_v22 = vmul.f32 %v5034_v15, %v6375_v34  ;;  %5043 = vpow2.f32 %v2517_v54 }
 0x82b   : > { %v2499_v16 = vsub.f32 %v6426_v60, %v2472_v13 }
 0x82c   : > { %v5036_v32 = vpop.eup %5035  ;;  %v2513_v20 = vmul.f32 1.442695, %v2496_v58  ;;  %v2278_v51 = vpack.c.bf16 %v2263_v36, %v2262_v22 }
 0x82d   : > { %v5038_v39 = vpop.eup %5037  ;;  %v1630_v52 = vpop.xlane.xlu1 %1629  ;;  %v2265_v23 = vmul.f32 %v5036_v32, %v6377_v18 }
 0x82e   : > { %5045 = vpow2.f32 %v2513_v20  ;;  %v1632_v57 = vpop.xlane.xlu0 %1631  ;;  %v2264_v4 = vmul.f32 %v5038_v39, %v6373_v6  ;;  %2776 = vrot.lane.b32.xlu1 %v2278_v51, %s5277_s19  ;;  %v6525_v34 = vpop.eup %5039  ;;  %v2519_v6 = vmul.f32 1.442695, %v2499_v16 }
 0x82f   : > { %5047 = vpow2.f32 %v2515_v17 }
 0x830   : > { %5049 = vrcp.f32 %v1630_v52  ;;  %v2279_v35 = vpack.c.bf16 %v2265_v23, %v2264_v4 }
 0x831   : > { %v2476_v62 = vpop.xlane.xlu1 %2475  ;;  %v5042_v18 = vpop.eup %5041  ;;  %5051 = vpow2.f32 %v2519_v6 }
 0x832   : > { %v2484_v37 = vpop.xlane.xlu0 %2483  ;;  %2778 = vrot.lane.b32.xlu1 %v2279_v35, %s5277_s19  ;;  %v2501_v48 = vsub.f32 %v6433_v11, %v2476_v62  ;;  %v7637_v11 = vld [vmem:[#allocation34_spill] sm:$0xff]  ;;  %5053 = vrcp.f32 %v1632_v57 }
 0x833   : > { %v6541_v47 = vmul.f32 %v5042_v18, %v7637_v11  ;;  %v2505_v39 = vsub.f32 %v6436_v46, %v2484_v37  ;;  %v7639_v46 = vld [vmem:[#allocation33_spill] sm:$0xff] }
 0x834   : > { %v6528_v3 = vpop.eup %5043  ;;  %v2523_v40 = vmul.f32 1.442695, %v2501_v48 }
 0x835   : > { %v2478_v63 = vpop.xlane.xlu1 %2477  ;;  %v2531_v18 = vmul.f32 1.442695, %v2505_v39 }
 0x836   : > { %v2502_v24 = vsub.f32 %v6441_v50, %v2478_v63  ;;  %v2480_v26 = vpop.xlane.xlu0 %2479 }
 0x837   : > { %v2503_v13 = vsub.f32 %v6444_v25, %v2480_v26 }
 0x838   : > { %v6531_v5 = vpop.eup %5045  ;;  %v2525_v10 = vmul.f32 1.442695, %v2502_v24  ;;  %v7640_v24 = vld [vmem:[#allocation35_spill] sm:$0xff] }
 0x839   : > { %v6533_v8 = vpop.eup %5047  ;;  %v2474_v60 = vpop.xlane.xlu1 %2473  ;;  %v2575_v44 = vpack.c.bf16 %v6531_v5, %v6525_v34  ;;  %v2527_v23 = vmul.f32 1.442695, %v2503_v13 }
 0x83a   : > { %v5050_v45 = vpop.eup %5049  ;;  %v2500_v61 = vsub.f32 %v6449_v59, %v2474_v60  ;;  %v2486_v28 = vpop.xlane.xlu0 %2485  ;;  %v2576_v50 = vpack.c.bf16 %v6528_v3, %v6533_v8  ;;  %5055 = vpow2.f32 %v2525_v10 }
 0x83b   : > { %4731 = vmatprep.mubr.bf16.mxu0 %v2575_v44  ;;  %v6544_v53 = vmul.f32 %v5050_v45, %v7638_v9  ;;  %v6549_v15 = vpop.eup %5051  ;;  %v2506_v17 = vsub.f32 %v6452_v43, %v2486_v28 }
 0x83c   : > { %v2521_v38 = vmul.f32 1.442695, %v2500_v61  ;;  %4732 = vmatmul.mubr.bf16.vlgmr.msra.gmra.mrb[80].mxu0 %v2576_v50  ;;  %v5054_v32 = vpop.eup %5053 }
 0x83d   : > { %v1634_v54 = vpop.xlane.xlu1 %1633  ;;  %v1822_v59 = vpack.c.bf16 %v6544_v53, %v6541_v47  ;;  %v2533_v57 = vmul.f32 1.442695, %v2506_v17  ;;  %v1810_v37 = vmul.f32 %v5054_v32, %v7639_v46  ;;  %v7650_v47 = vld [vmem:[#allocation41_spill] sm:$0xff] }
 0x83e   : > { %5057 = vpow2.f32 %v2521_v38  ;;  %v2094_v42 = vpop.xlane.xlu0 %2093 }
 0x83f   : > { %5059 = vpow2.f32 %v2523_v40 }
 0x840   : > { %5061 = vrcp.f32 %v1634_v54 }
 0x841   : > { %5063 = vrcp.f32 %v2094_v42  ;;  %v2096_v7 = vpop.xlane.xlu1 %2095 }
 0x842   : > { %5065 = vrcp.f32 %v2096_v7  ;;  %v2098_v58 = vpop.xlane.xlu0 %2097 }
 0x843   : > { %5067 = vrcp.f32 %v2098_v58 }
 0x844   : > { %v6552_v22 = vpop.eup %5055 }
 0x845   : > { %v2100_v36 = vpop.xlane.xlu1 %2099 }
 0x846   : > { %5069 = vrcp.f32 %v2100_v36  ;;  %v2492_v20 = vpop.xlane.xlu0 %2491  ;;  %v7641_v36 = vld [vmem:[#allocation8_spill] sm:$0xff] }
 0x847   : > { %5071 = vpow2.f32 %v2527_v23 }
 0x848   : > { %v6555_v52 = vpop.eup %5057  ;;  %5073 = vpow2.f32 %v2533_v57 }
 0x849   : > { %v6557_v51 = vpop.eup %5059  ;;  %v2482_v25 = vpop.xlane.xlu1 %2481  ;;  %v2577_v4 = vpack.c.bf16 %v6555_v52, %v6549_v15 }
 0x84a   : > { %v5062_v35 = vpop.eup %5061  ;;  %v2504_v43 = vsub.f32 %v6466_v14, %v2482_v25  ;;  %v2488_v62 = vpop.xlane.xlu0 %2487  ;;  %v2578_v16 = vpack.c.bf16 %v6552_v22, %v6557_v51 }
 0x84b   : > { %v5064_v63 = vpop.eup %5063  ;;  %4735 = vmatprep.mubr.bf16.mxu0 %v2577_v4  ;;  %v1811_v26 = vmul.f32 %v5062_v35, %v7640_v24  ;;  %v2507_v38 = vsub.f32 %v6469_v2, %v2488_v62  ;;  %v7642_v35 = vld [vmem:[#allocation40_spill] sm:$0xff]  ;;  %v7645_v24 = vld [vmem:[#allocation39_spill] sm:$0xff] }
 0x84c   : > { %v5066_v6 = vpop.eup %5065  ;;  %v2529_v48 = vmul.f32 1.442695, %v2504_v43  ;;  %4736 = vmatmul.mubr.bf16.gmra.mrb[84].mxu0 %v2578_v16  ;;  %v2266_v14 = vmul.f32 %v5064_v63, %v6383_v41  ;;  %v2509_v41 = vsub.f32 %v6461_v27, %v2492_v20  ;;  %v7643_v63 = vld [vmem:[#allocation11_spill] sm:$0xff] }
 0x84d   : > { %v1638_v10 = vpop.xlane.xlu1 %1637  ;;  %v1823_v60 = vpack.c.bf16 %v1811_v26, %v1810_v37  ;;  %v2267_v44 = vmul.f32 %v5066_v6, %v6387_v19  ;;  %v5068_v45 = vpop.eup %5067  ;;  %v2535_v27 = vmul.f32 1.442695, %v2507_v38 }
 0x84e   : > { %5075 = vpow2.f32 %v2529_v48  ;;  %v1636_v61 = vpop.xlane.xlu0 %1635  ;;  %v6570_v11 = vmul.f32 %v5068_v45, %v6381_v31  ;;  %v2539_v31 = vmul.f32 1.442695, %v2509_v41 }
 0x84f   : > { %5077 = vpow2.f32 %v2531_v18  ;;  %2758 = vrot.lane.b32.xlu0 %v1823_v60, %s5278_s20  ;;  %v2280_v28 = vpack.c.bf16 %v2267_v44, %v2266_v14  ;;  %v7644_v18 = vld [vmem:[#allocation38_spill] sm:$0xff]  ;;  %v7647_v14 = vld [vmem:[#allocation12_spill] sm:$0xff] }
 0x850   : > { %v5070_v50 = vpop.eup %5069  ;;  %5079 = vrcp.f32 %v1638_v10  ;;  %v7646_v10 = vld [vmem:[#allocation37_spill] sm:$0xff] }
 0x851   : > { %5081 = vrcp.f32 %v1636_v61  ;;  %v1642_v40 = vpop.xlane.xlu1 %1641  ;;  %v6573_v9 = vmul.f32 %v5070_v50, %v6385_v55  ;;  %v6580_v7 = vpop.eup %5071 }
 0x852   : > { %5083 = vrcp.f32 %v1642_v40  ;;  %v1640_v19 = vpop.xlane.xlu0 %1639  ;;  %v6583_v13 = vpop.eup %5073 }
 0x853   : > { %2780 = vrot.lane.b32.xlu0 %v2280_v28, %s5277_s19  ;;  %5085 = vrcp.f32 %v1640_v19  ;;  %v2281_v54 = vpack.c.bf16 %v6573_v9, %v6570_v11 }
 0x854   : > { %5087 = vpow2.f32 %v2539_v31 }
 0x855   : > { %v2494_v42 = vpop.xlane.xlu1 %2493  ;;  %5089 = vpow2.f32 %v2535_v27 }
 0x856   : > { %v2510_v58 = vsub.f32 %v6478_v0, %v2494_v42  ;;  %v2102_v55 = vpop.xlane.xlu0 %2101  ;;  %1185 = vadd.xlane.f32.xlu1 %v7641_v36 }
 0x857   : > { %5091 = vrcp.f32 %v2102_v55 }
 0x858   : > { %v6585_v17 = vpop.eup %5075  ;;  %v2541_v32 = vmul.f32 1.442695, %v2510_v58 }
 0x859   : > { %v6588_v2 = vpop.eup %5077  ;;  %v2490_v20 = vpop.xlane.xlu1 %2489  ;;  %v2579_v39 = vpack.c.bf16 %v6585_v17, %v6580_v7 }
 0x85a   : > { %v5080_v23 = vpop.eup %5079  ;;  %v2508_v57 = vsub.f32 %v6483_v49, %v2490_v20  ;;  %v2106_v0 = vpop.xlane.xlu0 %2105  ;;  %v2580_v25 = vpack.c.bf16 %v6583_v13, %v6588_v2  ;;  %1189 = vadd.xlane.f32.xlu1 %v7643_v63  ;;  %5093 = vpow2.f32 %v2541_v32  ;;  %v7648_v63 = vld [vmem:[#allocation42_spill] sm:$0xff] }
 0x85b   : > { %v5082_v4 = vpop.eup %5081  ;;  %4739 = vmatprep.mubr.bf16.mxu0 %v2579_v39  ;;  %v6596_v43 = vmul.f32 %v5080_v23, %v7642_v35 }
 0x85c   : > { %v5084_v62 = vpop.eup %5083  ;;  %v2537_v16 = vmul.f32 1.442695, %v2508_v57  ;;  %4740 = vmatmul.mubr.bf16.gmra.mrb[88].mxu0 %v2580_v25  ;;  %v6600_v46 = vmul.f32 %v5082_v4, %v7644_v18  ;;  %v7649_v18 = vld [vmem:[#allocation44_spill] sm:$0xff] }
 0x85d   : > { %v5086_v49 = vpop.eup %5085  ;;  %v2104_v37 = vpop.xlane.xlu1 %2103  ;;  %v6603_v26 = vmul.f32 %v5084_v62, %v7645_v24 }
 0x85e   : > { %5095 = vpow2.f32 %v2537_v16  ;;  %v1644_v6 = vpop.xlane.xlu0 %1643  ;;  %v1824_v48 = vpack.c.bf16 %v6596_v43, %v6600_v46  ;;  %v6608_v60 = vmul.f32 %v5086_v49, %v7646_v10  ;;  %1191 = vadd.xlane.f32.xlu1 %v7647_v14  ;;  %v6613_v28 = vpop.eup %5087  ;;  %v4881_v43 = vld [vmem:[%s7559_s5 + $0x10] sm:$0xff]  }
 0x85f   : > { %5097 = vrcp.f32 %v2104_v37  ;;  %v6615_v50 = vpop.eup %5089 }
 0x860   : > { %5099 = vrcp.f32 %v2106_v0  ;;  %v1825_v44 = vpack.c.bf16 %v6603_v26, %v6608_v60 }
 0x861   : > { %v2108_v45 = vpop.xlane.xlu1 %2107  ;;  %v5092_v41 = vpop.eup %5091 }
 0x862   : > { %5101 = vrcp.f32 %v2108_v45  ;;  %v1648_v61 = vpop.xlane.xlu0 %1647  ;;  %v6626_v20 = vmul.f32 %v5092_v41, %v6391_v29 }
 0x863   : > { %5103 = vrcp.f32 %v1644_v6 }
 0x864   : > { %v6617_v38 = vpop.eup %5093 }
 0x865   : > { %v1646_v40 = vpop.xlane.xlu1 %1645  ;;  %v2582_v32 = vpack.c.bf16 %v6617_v38, %v6613_v28 }
 0x866   : > { %5105 = vrcp.f32 %v1646_v40  ;;  %v2110_v19 = vpop.xlane.xlu0 %2109 }
 0x867   : > { %5107 = vrcp.f32 %v1648_v61 }
 0x868   : > { %v6619_v42 = vpop.eup %5095 }
 0x869   : > { %v5098_v31 = vpop.eup %5097  ;;  %v1650_v58 = vpop.xlane.xlu1 %1649  ;;  %v2581_v55 = vpack.c.bf16 %v6619_v42, %v6615_v50 }
 0x86a   : > { %v5100_v27 = vpop.eup %5099  ;;  %5109 = vrcp.f32 %v1650_v58  ;;  %v2114_v36 = vpop.xlane.xlu0 %2113  ;;  %v6629_v39 = vmul.f32 %v5098_v31, %v6395_v12 }
 0x86b   : > { %4743 = vmatprep.mubr.bf16.mxu0 %v2581_v55  ;;  %5111 = vrcp.f32 %v2110_v19  ;;  %v6634_v25 = vmul.f32 %v5100_v27, %v6389_v21 }
 0x86c   : > { %v5102_v23 = vpop.eup %5101  ;;  %4744 = vmatmul.mubr.bf16.gmra.mrb[92].mxu0 %v2582_v32  ;;  %v2282_v57 = vpack.c.bf16 %v6629_v39, %v6626_v20  ;;  %v7670_v39 = vld [vmem:[#allocation31_spill] sm:$0xff] }
 0x86d   : > { %v2112_v0 = vpop.xlane.xlu1 %2111  ;;  %v6637_v4 = vmul.f32 %v5102_v23, %v6393_v56  ;;  %v5104_v35 = vpop.eup %5103  ;;  %v7652_v23 = vld [vmem:[#allocation45_spill] sm:$0xff] }
 0x86e   : > { %5113 = vrcp.f32 %v2112_v0  ;;  %v1170_v29 = vpop.xlane.xlu0 %1169  ;;  %v6646_v21 = vmul.f32 %v5104_v35, %v7648_v63  ;;  %v7653_v35 = vld [vmem:[#allocation18_spill] sm:$0xff] }
 0x86f   : > { %v2283_v12 = vpack.c.bf16 %v6637_v4, %v6634_v25  ;;  %5115 = vrcp.f32 %v2114_v36  ;;  %2756 = vrot.lane.b32.xlu1 %v1822_v59, %s5278_s20  ;;  %v7651_v59 = vld [vmem:[#allocation43_spill] sm:$0xff]  ;;  %v4882_v25 = vld [vmem:[%s7559_s5 + $0x18] sm:$0xff]  }
 0x870   : > { %v5106_v62 = vpop.eup %5105 }
 0x871   : > { %v2116_v16 = vpop.xlane.xlu1 %2115  ;;  %v6649_v56 = vmul.f32 %v5106_v62, %v7649_v18  ;;  %v5108_v49 = vpop.eup %5107  ;;  %v7654_v62 = vld [vmem:[#allocation20_spill] sm:$0xff] }
 0x872   : > { %2547 = vadd.xlane.f32.xlu0 %v6533_v8  ;;  %5117 = vrcp.f32 %v2116_v16  ;;  %v1174_v37 = vpop.xlane.xlu0 %1173  ;;  %v6655_v53 = vmul.f32 %v5108_v49, %v7650_v47  ;;  %v7655_v49 = vld [vmem:[#allocation19_spill] sm:$0xff] }
 0x873   : > { %v1826_v24 = vpack.c.bf16 %v6649_v56, %v6646_v21  ;;  %5119 = vrcp.f32 %v1170_v29 }
 0x874   : > { %v5110_v6 = vpop.eup %5109 }
 0x875   : > { %v1172_v10 = vpop.xlane.xlu1 %1171  ;;  %v6658_v14 = vmul.f32 %v5110_v6, %v7651_v59  ;;  %v5112_v45 = vpop.eup %5111  ;;  %v7656_v6 = vld [vmem:[#allocation17_spill] sm:$0xff] }
 0x876   : > { %2543 = vadd.xlane.f32.xlu0 %v6525_v34  ;;  %5121 = vrcp.f32 %v1172_v10  ;;  %v1178_v61 = vpop.xlane.xlu0 %1177  ;;  %v6664_v19 = vmul.f32 %v5112_v45, %v6399_v30 }
 0x877   : > { %v1827_v8 = vpack.c.bf16 %v6658_v14, %v6655_v53  ;;  %5123 = vrcp.f32 %v1174_v37 }
 0x878   : > { %v5114_v40 = vpop.eup %5113 }
 0x879   : > { %v1176_v41 = vpop.xlane.xlu1 %1175  ;;  %v6667_v31 = vmul.f32 %v5114_v40, %v6403_v33  ;;  %v5116_v58 = vpop.eup %5115  ;;  %v7658_v40 = vld [vmem:[#allocation22_spill] sm:$0xff] }
 0x87a   : > { %2555 = vadd.xlane.f32.xlu0 %v6557_v51  ;;  %5125 = vrcp.f32 %v1176_v41  ;;  %v1182_v27 = vpop.xlane.xlu0 %1181  ;;  %v6673_v32 = vmul.f32 %v5116_v58, %v6397_v1 }
 0x87b   : > { %v2284_v34 = vpack.c.bf16 %v6667_v31, %v6664_v19  ;;  %5127 = vrcp.f32 %v1178_v61  ;;  %v7657_v61 = vld [vmem:[#allocation24_spill] sm:$0xff] }
 0x87c   : > { %v5118_v55 = vpop.eup %5117 }
 0x87d   : > { %v1180_v36 = vpop.xlane.xlu1 %1179  ;;  %v6676_v30 = vmul.f32 %v5118_v55, %v7652_v23  ;;  %v5120_v0 = vpop.eup %5119 }
 0x87e   : > { %2551 = vadd.xlane.f32.xlu0 %v6549_v15  ;;  %5129 = vrcp.f32 %v1180_v36  ;;  %v6682_v29 = vmul.f32 %v5120_v0, %v7653_v35  ;;  %v7659_v36 = vld [vmem:[#allocation21_spill] sm:$0xff]  ;;  %v7664_v35 = vld [vmem:[#allocation26_spill] sm:$0xff] }
 0x87f   : > { %v2285_v33 = vpack.c.bf16 %v6676_v30, %v6673_v32  ;;  %5131 = vrcp.f32 %v1182_v27 }
 0x880   : > { %v5122_v51 = vpop.eup %5121 }
 0x881   : > { %v6685_v16 = vmul.f32 %v5122_v51, %v7654_v62  ;;  %v1184_v1 = vpop.xlane.xlu1 %1183  ;;  %v5124_v63 = vpop.eup %5123 }
 0x882   : > { %2563 = vadd.xlane.f32.xlu0 %v6588_v2  ;;  %5133 = vrcp.f32 %v1184_v1  ;;  %v6694_v10 = vmul.f32 %v5124_v63, %v7656_v6  ;;  %v7665_v1 = vld [vmem:[#allocation28_spill] sm:$0xff] }
 0x883   : > { %v7671_v21 = vpack.c.bf16 %v6685_v16, %v6682_v29 }
 0x884   : > { %v5126_v18 = vpop.eup %5125 }
 0x885   : > { %v6691_v37 = vmul.f32 %v5126_v18, %v7655_v49  ;;  %v5128_v47 = vpop.eup %5127 }
 0x886   : > { %2559 = vadd.xlane.f32.xlu0 %v6580_v7  ;;  %v6703_v41 = vmul.f32 %v5128_v47, %v7658_v40  ;;  %v7660_v7 = vld [vmem:[#allocation23_spill] sm:$0xff]  ;;  %v7666_v47 = vld [vmem:[#allocation25_spill] sm:$0xff] }
 0x888   : > { %v5130_v45 = vpop.eup %5129 }
 0x889   : > { %v6700_v2 = vmul.f32 %v5130_v45, %v7657_v61  ;;  %v5132_v58 = vpop.eup %5131  ;;  %v7667_v61 = vld [vmem:[#allocation27_spill] sm:$0xff] }
 0x88a   : > { %2571 = vadd.xlane.f32.xlu0 %v6613_v28  ;;  %v6709_v23 = vmul.f32 %v5132_v58, %v7659_v36  ;;  %v7661_v28 = vld [vmem:[#allocation13_spill] sm:$0xff]  ;;  %v4879_v36 = vld [vmem:[%s7559_s5] sm:$0xff]  }
 0x88b   : > { %4747 = vmatprep.subr.bf16.mxu0 %v4879_v36 }
 0x88c   : > { %v5134_v27 = vpop.eup %5133  ;;  %4748 = vmatpush3.bf16.msra.mxu0 %v4879_v36 }
 0x88d   : > { %v6712_v0 = vmul.f32 %v5134_v27, %v7660_v7  ;;  %v4880_v7 = vld [vmem:[%s7559_s5 + $0x8] sm:$0xff]  }
 0x88e   : > { %2567 = vadd.xlane.f32.xlu0 %v6615_v50  ;;  %4749 = vmatprep.subr.bf16.mxu0 %v4880_v7 }
 0x890   : > { %4750 = vmatpush3.bf16.msra.mxu0 %v4880_v7 }
 0x891   : > { %4751 = vmatprep.subr.bf16.mxu0 %v4881_v43 }
 0x893   : > { %2549 = vadd.xlane.f32.xlu1 %v6528_v3  ;;  %v6729_v3 = vpop.permute.xlu1 %2754 }
 0x894   : > { %4752 = vmatpush3.bf16.msra.mxu0 %v4881_v43 }
 0x895   : > { %4753 = vmatprep.subr.bf16.mxu0 %v4882_v25 }
 0x897   : > { %2545 = vadd.xlane.f32.xlu1 %v6531_v5 }
 0x898   : > { %4754 = vmatpush3.bf16.msra.mxu0 %v4882_v25 }
 0x89b   : > { %2557 = vadd.xlane.f32.xlu1 %v6552_v22  ;;  %v6733_v22 = vpop.permute.xlu0 %2752 }
 0x89c   : > { %v2818_v56 = vsel %vm943_vm0, %v7671_v21, %v6733_v22 }
 0x89f   : > { %2553 = vadd.xlane.f32.xlu1 %v6555_v52 }
 0x8a0   : > { %v6731_v5 = vpop.permute.xlu1 %2776 }
 0x8a1   : > { %v2842_v31 = vsel %vm2840_vm1, %v2818_v56, %v6731_v5 }
 0x8a3   : > { %2565 = vadd.xlane.f32.xlu1 %v6583_v13 }
 0x8a4   : > { %v6735_v52 = vpop.permute.xlu1 %2778 }
 0x8a7   : > { %2561 = vadd.xlane.f32.xlu1 %v6585_v17 }
 0x8ab   : > { %2573 = vadd.xlane.f32.xlu1 %v6617_v38  ;;  %v7662_v38 = vld [vmem:[#allocation16_spill] sm:$0xff] }
 0x8af   : > { %2569 = vadd.xlane.f32.xlu1 %v6619_v42  ;;  %v1188_v13 = vpop.xlane.xlu0 %1187 }
 0x8b0   : > { %5135 = vrcp.f32 %v1188_v13 }
 0x8ba   : > { %v5136_v9 = vpop.eup %5135 }
 0x8bb   : > { %v6744_v63 = vmul.f32 %v5136_v9, %v7665_v1 }
 0x8c0   : > { %2782 = vrot.lane.b32.xlu1 %v2281_v54, %s5277_s19  ;;  %v7663_v54 = vld [vmem:[#allocation14_spill] sm:$0xff] }
 0x8c1   : > { %v6764_v27 = vpop.permute.xlu0 %2758 }
 0x8c5   : > { %v6775_v46 = vpop.permute.xlu0 %2780 }
 0x8e3   : > { %v1186_v17 = vpop.xlane.xlu1 %1185 }
 0x8e4   : > { %5137 = vrcp.f32 %v1186_v17  ;;  %1193 = vadd.xlane.f32.xlu1 %v7661_v28  ;;  %v4883_v28 = vld [vmem:[%s7559_s5 + $0x20] sm:$0xff]  }
 0x8e5   : > { %4755 = vmatprep.subr.bf16.mxu0 %v4883_v28 }
 0x8e6   : > { %4756 = vmatpush3.bf16.msra.mxu0 %v4883_v28 }
 0x8e7   : > { %v1190_v50 = vpop.xlane.xlu1 %1189 }
 0x8e8   : > { %1197 = vadd.xlane.f32.xlu1 %v7662_v38  ;;  %5139 = vrcp.f32 %v1190_v50  ;;  %v4884_v38 = vld [vmem:[%s7559_s5 + $0x28] sm:$0xff]  }
 0x8e9   : > { %4757 = vmatprep.subr.bf16.mxu0 %v4884_v38 }
 0x8ea   : > { %4758 = vmatpush3.bf16.msra.mxu0 %v4884_v38 }
 0x8eb   : > { %v1192_v11 = vpop.xlane.xlu1 %1191 }
 0x8ec   : > { %5141 = vrcp.f32 %v1192_v11  ;;  %1199 = vadd.xlane.f32.xlu1 %v7663_v54  ;;  %v4885_v11 = vld [vmem:[%s7559_s5 + $0x30] sm:$0xff]  }
 0x8ed   : > { %4759 = vmatprep.subr.bf16.mxu0 %v4885_v11 }
 0x8ee   : > { %v5138_v42 = vpop.eup %5137  ;;  %4760 = vmatpush3.bf16.msra.mxu0 %v4885_v11 }
 0x8ef   : > { %v6741_v62 = vmul.f32 %v5138_v42, %v7664_v35  ;;  %v6789_v54 = vpop.permute.xlu1 %2756 }
 0x8f2   : > { %v5140_v49 = vpop.eup %5139 }
 0x8f3   : > { %v6749_v45 = vmul.f32 %v5140_v49, %v7666_v47 }
 0x8f6   : > { %v5142_v6 = vpop.eup %5141 }
 0x8f7   : > { %v6752_v40 = vmul.f32 %v5142_v6, %v7667_v61  ;;  %v4886_v61 = vld [vmem:[%s7559_s5 + $0x38] sm:$0xff]  }
 0x8f8   : > { %4761 = vmatprep.subr.bf16.mxu0 %v4886_v61 }
 0x8f9   : > { %4762 = vmatpush3.bf16.msra.mxu0 %v4886_v61 }
 0x8fd   : > { %2760 = vrot.lane.b32.xlu1 %v1824_v48, %s5278_s20 }
 0x901   : > { %2786 = vrot.lane.b32.xlu1 %v2283_v12, %s5277_s19  ;;  %v2548_v12 = vpop.xlane.xlu0 %2547 }
 0x902   : > { %5143 = vrcp.f32 %v2548_v12 }
 0x905   : > { %v2544_v50 = vpop.xlane.xlu0 %2543 }
 0x909   : > { %v2556_v9 = vpop.xlane.xlu0 %2555 }
 0x90c   : > { %v5144_v25 = vpop.eup %5143 }
 0x90d   : > { %v2552_v47 = vpop.xlane.xlu0 %2551 }
 0x90f   : > { %v4733_v48 = vpop.f32.mrb[80].mxu0 }
 0x910   : > { %v2641_v4 = vpop.f32.mrb[81].mxu0  ;;  %v2722_v28 = vmul.f32 %v5144_v25, %v4733_v48 }
 0x911   : > { %v4734_v13 = vpop.f32.mrb[82].mxu0  ;;  %v2564_v7 = vpop.xlane.xlu0 %2563 }
 0x912   : > { %v2644_v17 = vpop.f32.mrb[83].mxu0 }
 0x91f   : > { %v4737_v42 = vpop.f32.mrb[84].mxu0 }
 0x920   : > { %v2657_v35 = vpop.f32.mrb[85].mxu0  ;;  %v2550_v49 = vpop.xlane.xlu1 %2549 }
 0x921   : > { %v4738_v1 = vpop.f32.mrb[86].mxu0  ;;  %5145 = vrcp.f32 %v2550_v49  ;;  %v2560_v49 = vpop.xlane.xlu0 %2559 }
 0x922   : > { %v2660_v6 = vpop.f32.mrb[87].mxu0  ;;  %5147 = vrcp.f32 %v2544_v50 }
 0x924   : > { %v2546_v36 = vpop.xlane.xlu1 %2545 }
 0x925   : > { %5149 = vrcp.f32 %v2546_v36 }
 0x926   : > { %5151 = vrcp.f32 %v2556_v9 }
 0x928   : > { %v2558_v43 = vpop.xlane.xlu1 %2557 }
 0x929   : > { %5153 = vrcp.f32 %v2558_v43 }
 0x92a   : > { %5155 = vrcp.f32 %v2552_v47 }
 0x92b   : > { %v5146_v12 = vpop.eup %5145 }
 0x92c   : > { %v2554_v38 = vpop.xlane.xlu1 %2553  ;;  %v2723_v11 = vmul.f32 %v5146_v12, %v4734_v13  ;;  %v5148_v58 = vpop.eup %5147 }
 0x92d   : > { %5157 = vrcp.f32 %v2554_v38  ;;  %v2720_v61 = vmul.f32 %v5148_v58, %v2641_v4  ;;  %v2572_v13 = vpop.xlane.xlu0 %2571 }
 0x92e   : > { %v2737_v50 = vpack.c.bf16 %v2723_v11, %v2722_v28  ;;  %5159 = vrcp.f32 %v2564_v7 }
 0x92f   : > { %v4741_v18 = vpop.f32.mrb[88].mxu0  ;;  %v5150_v55 = vpop.eup %5149 }
 0x930   : > { %v2673_v51 = vpop.f32.mrb[89].mxu0  ;;  %v2566_v59 = vpop.xlane.xlu1 %2565  ;;  %2802 = vrot.lane.b32.xlu0 %v2737_v50, %s5276_s23  ;;  %v2721_v43 = vmul.f32 %v5150_v55, %v2644_v17 }
 0x931   : > { %v4742_v36 = vpop.f32.mrb[90].mxu0  ;;  %5161 = vrcp.f32 %v2566_v59  ;;  %v5152_v47 = vpop.eup %5151 }
 0x932   : > { %v2676_v9 = vpop.f32.mrb[91].mxu0  ;;  %v2736_v48 = vpack.c.bf16 %v2721_v43, %v2720_v61  ;;  %5163 = vrcp.f32 %v2560_v49  ;;  %v2726_v12 = vmul.f32 %v5152_v47, %v4737_v42  ;;  %v2568_v55 = vpop.xlane.xlu0 %2567 }
 0x933   : > { %v5154_v25 = vpop.eup %5153 }
 0x934   : > { %v2562_v38 = vpop.xlane.xlu1 %2561  ;;  %2800 = vrot.lane.b32.xlu0 %v2736_v48, %s5276_s23  ;;  %v2727_v28 = vmul.f32 %v5154_v25, %v4738_v1  ;;  %v5156_v11 = vpop.eup %5155 }
 0x935   : > { %5165 = vrcp.f32 %v2562_v38  ;;  %v2724_v4 = vmul.f32 %v5156_v11, %v2657_v35 }
 0x936   : > { %v2739_v7 = vpack.c.bf16 %v2727_v28, %v2726_v12  ;;  %5167 = vrcp.f32 %v2572_v13 }
 0x937   : > { %v5158_v58 = vpop.eup %5157 }
 0x938   : > { %v2574_v50 = vpop.xlane.xlu1 %2573  ;;  %v2725_v15 = vmul.f32 %v5158_v58, %v2660_v6  ;;  %v5160_v59 = vpop.eup %5159 }
 0x939   : > { %5169 = vrcp.f32 %v2574_v50  ;;  %v2730_v49 = vmul.f32 %v5160_v59, %v4741_v18 }
 0x93a   : > { %v2738_v17 = vpack.c.bf16 %v2725_v15, %v2724_v4  ;;  %5171 = vrcp.f32 %v2568_v55 }
 0x93b   : > { %v5162_v61 = vpop.eup %5161 }
 0x93c   : > { %v2731_v42 = vmul.f32 %v5162_v61, %v4742_v36  ;;  %v2570_v43 = vpop.xlane.xlu1 %2569  ;;  %v5164_v1 = vpop.eup %5163 }
 0x93d   : > { %5173 = vrcp.f32 %v2570_v43  ;;  %v2728_v13 = vmul.f32 %v5164_v1, %v2673_v51 }
 0x93e   : > { %v2741_v48 = vpack.c.bf16 %v2731_v42, %v2730_v49 }
 0x93f   : > { %v4745_v47 = vpop.f32.mrb[92].mxu0  ;;  %v5166_v12 = vpop.eup %5165 }
 0x940   : > { %v2689_v25 = vpop.f32.mrb[93].mxu0  ;;  %2810 = vrot.lane.b32.xlu1 %v2741_v48, %s5276_s23  ;;  %v2729_v6 = vmul.f32 %v5166_v12, %v2676_v9  ;;  %v5168_v28 = vpop.eup %5167  ;;  %v7668_v9 = vld [vmem:[#allocation15_spill] sm:$0xff] }
 0x941   : > { %v4746_v38 = vpop.f32.mrb[94].mxu0  ;;  %v2734_v58 = vmul.f32 %v5168_v28, %v4745_v47  ;;  %v2783_v61 = vpop.permute.xlu1 %2782 }
 0x942   : > { %v2692_v35 = vpop.f32.mrb[95].mxu0  ;;  %v2740_v11 = vpack.c.bf16 %v2729_v6, %v2728_v13 }
 0x943   : > { %v5170_v15 = vpop.eup %5169 }
 0x944   : > { %v2735_v4 = vmul.f32 %v5170_v15, %v4746_v38  ;;  %2766 = vrot.lane.b32.xlu1 %v1827_v8, %s5278_s20  ;;  %v5172_v18 = vpop.eup %5171 }
 0x945   : > { %v2732_v55 = vmul.f32 %v5172_v18, %v2689_v25  ;;  %v7676_v25 = vld [vmem:[#allocation32_spill] sm:$0xff] }
 0x946   : > { %v2743_v36 = vpack.c.bf16 %v2735_v4, %v2734_v58 }
 0x947   : > { %v5174_v50 = vpop.eup %5173 }
 0x948   : > { %v2733_v59 = vmul.f32 %v5174_v50, %v2692_v35  ;;  %2790 = vrot.lane.b32.xlu1 %v2285_v33, %s5277_s19  ;;  %v7678_v35 = vpack.c.bf16 %v6744_v63, %v6741_v62 }
 0x94a   : > { %v2742_v51 = vpack.c.bf16 %v2733_v59, %v2732_v55 }
 0x94c   : > { %2814 = vrot.lane.b32.xlu1 %v2743_v36, %s5276_s23 }
 0x953   : > { %1195 = vadd.xlane.f32.xlu0 %v7668_v9 }
 0x969   : > { %2804 = vrot.lane.b32.xlu0 %v2738_v17, %s5276_s23  ;;  %v7674_v17 = vpack.c.bf16 %v6712_v0, %v6709_v23  ;;  %v7677_v23 = vpack.c.bf16 %v6752_v40, %v6749_v45 }
 0x96b   : > { %v2827_v49 = vsel %vm943_vm0, %v7674_v17, %v6764_v27 }
 0x96c   : > { %v2848_v42 = vsel %vm2840_vm1, %v2827_v49, %v2783_v61 }
 0x96d   : > { %2806 = vrot.lane.b32.xlu0 %v2739_v7, %s5276_s23 }
 0x971   : > { %v1194_v53 = vpop.xlane.xlu1 %1193  ;;  %2762 = vrot.lane.b32.xlu0 %v1825_v44, %s5278_s20  ;;  %v7669_v44 = vld [vmem:[#allocation29_spill] sm:$0xff] }
 0x975   : > { %v1198_v14 = vpop.xlane.xlu1 %1197  ;;  %2784 = vrot.lane.b32.xlu0 %v2282_v57, %s5277_s19 }
 0x976   : > { %5175 = vrcp.f32 %v1198_v14  ;;  %v7679_v14 = vld [vmem:[#allocation2_spill] sm:$0xff] }
 0x979   : > { %v1200_v8 = vpop.xlane.xlu1 %1199  ;;  %2808 = vrot.lane.b32.xlu0 %v2740_v11, %s5276_s23 }
 0x97a   : > { %5177 = vrcp.f32 %v1200_v8  ;;  %v7680_v8 = vsub.s32 2, %v7679_v14 }
 0x97b   : > { %5179 = vrcp.f32 %v1194_v53  ;;  %v6883_v53 = vld [vmem:[%s7562_s8 + $0x8] sm:$0xff] }
 0x97d   : > { %2764 = vrot.lane.b32.xlu0 %v1826_v24, %s5278_s20  ;;  %v7672_v24 = vpack.c.bf16 %v6691_v37, %v6694_v10  ;;  %v7673_v37 = vpack.c.bf16 %v6700_v2, %v6703_v41 }
 0x97f   : > { %v2821_v19 = vsel %vm943_vm0, %v7672_v24, %v6729_v3  ;;  %v2824_v10 = vsel %vm943_vm0, %v7673_v37, %v6789_v54  ;;  %v2761_v3 = vpop.permute.xlu1 %2760  ;;  %v5251_v24 = vld [vmem:[%s5365_s28 + $0x8] sm:$0xf] }
 0x980   : > { %v5176_v26 = vpop.eup %5175  ;;  %v2844_v33 = vsel %vm2840_vm1, %v2821_v19, %v6735_v52  ;;  %v2846_v22 = vsel %vm2840_vm1, %v2824_v10, %v6775_v46  ;;  %v7675_v46 = vld [vmem:[#allocation30_spill] sm:$0xff]  ;;  %v2830_v6 = vsel %vm943_vm0, %v7678_v35, %v2761_v3  ;;  %v386_v19 = vunpack.c.l.bf16 %v5251_v24 }
 0x981   : > { %2788 = vrot.lane.b32.xlu0 %v2284_v34, %s5277_s19  ;;  %v1336_v20 = vmul.f32 %v5176_v26, %v7669_v44  ;;  %v6888_v26 = vrot.slane %v6883_v53, %v7680_v8  ;;  %v5249_v44 = vld [vmem:[%s5365_s28] sm:$0xf] }
 0x982   : > { %v5257_v35 = vld [vmem:[%s5365_s28 + $0x20] sm:$0xf] }
 0x983   : > { %v2787_v54 = vpop.permute.xlu1 %2786 }
 0x984   : > { %v5178_v60 = vpop.eup %5177 }
 0x985   : > { %2812 = vrot.lane.b32.xlu0 %v2742_v51, %s5276_s23  ;;  %v1337_v57 = vmul.f32 %v5178_v60, %v7670_v39  ;;  %v5180_v41 = vpop.eup %5179 }
 0x986   : > { %v1334_v48 = vmul.f32 %v5180_v41, %v7675_v46 }
 0x987   : > { %v1345_v32 = vpack.c.bf16 %v1337_v57, %v1336_v20  ;;  %v384_v20 = vunpack.c.l.bf16 %v5249_v44 }
 0x9a2   : > { %v2803_v30 = vpop.permute.xlu0 %2802 }
 0x9a3   : > { %v2862_v29 = vsel %vm2857_vm2, %v2844_v33, %v2803_v30  ;;  %v5250_v30 = vld [vmem:[%s5365_s28 + $0x4] sm:$0xf] }
 0x9a4   : > { %v385_v21 = vunpack.c.l.bf16 %v5250_v30 }
 0x9a6   : > { %v2801_v34 = vpop.permute.xlu0 %2800 }
 0x9a7   : > { %v2859_v7 = vsel %vm2857_vm2, %v2842_v31, %v2801_v34 }
 0x9a8   : > { %4763 = vmatprep.mubr.bf16.mxu0 %v2859_v7 }
 0x9a9   : > { %4764 = vmatmul.mubr.bf16.vlgmr.msra.gmra.mrb[96].mxu0 %v2862_v29 }
 0x9b2   : > { %v2811_v38 = vpop.permute.xlu1 %2810 }
 0x9b6   : > { %v2767_v28 = vpop.permute.xlu1 %2766 }
 0x9b7   : > { %v2839_v63 = vsel %vm943_vm0, %v1345_v32, %v2767_v28 }
 0x9ba   : > { %v2791_v40 = vpop.permute.xlu1 %2790 }
 0x9bb   : > { %v2856_v51 = vsel %vm2840_vm1, %v2839_v63, %v2791_v40  ;;  %v5260_v63 = vld [vmem:[%s5365_s28 + $0x2c] sm:$0xf] }
 0x9be   : > { %v2815_v50 = vpop.permute.xlu1 %2814 }
 0x9bf   : > { %v2880_v61 = vsel %vm2857_vm2, %v2856_v51, %v2815_v50 }
 0x9e0   : > { %v1196_v16 = vpop.xlane.xlu0 %1195 }
 0x9e1   : > { %5181 = vrcp.f32 %v1196_v16  ;;  %v5252_v16 = vld [vmem:[%s5365_s28 + $0xc] sm:$0xf] }
 0x9e2   : > { %v387_v37 = vunpack.c.l.bf16 %v5252_v16  ;;  %v5264_v16 = vld [vmem:[%s5365_s28 + $0x3c] sm:$0xf] }
 0x9e4   : > { %v2805_v5 = vpop.permute.xlu0 %2804 }
 0x9e5   : > { %v2865_v52 = vsel %vm2857_vm2, %v2846_v22, %v2805_v5  ;;  %v5253_v22 = vld [vmem:[%s5365_s28 + $0x10] sm:$0xf] }
 0x9e6   : > { %4767 = vmatprep.mubr.bf16.mxu0 %v2865_v52  ;;  %v388_v52 = vunpack.c.l.bf16 %v5253_v22 }
 0x9e8   : > { %v2807_v2 = vpop.permute.xlu0 %2806 }
 0x9e9   : > { %v2868_v43 = vsel %vm2857_vm2, %v2848_v42, %v2807_v2  ;;  %v5254_v2 = vld [vmem:[%s5365_s28 + $0x14] sm:$0xf] }
 0x9ea   : > { %4768 = vmatmul.mubr.bf16.gmra.mrb[100].mxu0 %v2868_v43  ;;  %v389_v41 = vunpack.c.l.bf16 %v5254_v2  ;;  %v5255_v43 = vld [vmem:[%s5365_s28 + $0x18] sm:$0xf] }
 0x9eb   : > { %v5182_v47 = vpop.eup %5181 }
 0x9ec   : > { %v2763_v1 = vpop.permute.xlu0 %2762  ;;  %v1335_v12 = vmul.f32 %v5182_v47, %v7676_v25  ;;  %v390_v47 = vunpack.c.l.bf16 %v5255_v43  ;;  %v5256_v25 = vld [vmem:[%s5365_s28 + $0x1c] sm:$0xf] }
 0x9ed   : > { %v2833_v0 = vsel %vm943_vm0, %v7677_v23, %v2763_v1 }
 0x9ee   : > { %v1344_v13 = vpack.c.bf16 %v1335_v12, %v1334_v48  ;;  %v2852_v11 = vsel %vm2840_vm1, %v2833_v0, %v2787_v54  ;;  %v391_v12 = vunpack.c.l.bf16 %v5256_v25 }
 0x9ef   : > { %v2874_v18 = vsel %vm2857_vm2, %v2852_v11, %v2811_v38 }
 0x9f0   : > { %v2785_v27 = vpop.permute.xlu0 %2784 }
 0x9f1   : > { %v2850_v15 = vsel %vm2840_vm1, %v2830_v6, %v2785_v27  ;;  %v392_v6 = vunpack.c.l.bf16 %v5257_v35 }
 0x9f4   : > { %v2809_v58 = vpop.permute.xlu0 %2808 }
 0x9f5   : > { %v2871_v4 = vsel %vm2857_vm2, %v2850_v15, %v2809_v58  ;;  %v5258_v58 = vld [vmem:[%s5365_s28 + $0x24] sm:$0xf] }
 0x9f6   : > { %4771 = vmatprep.mubr.bf16.mxu0 %v2871_v4  ;;  %v393_v4 = vunpack.c.l.bf16 %v5258_v58  ;;  %v4901_v58 = vld [vmem:[%s7560_s6 + $0x44] ss:$8 sps:$4 sm:$0xff]  }
 0x9f7   : > { %4772 = vmatmul.mubr.bf16.gmra.mrb[104].mxu0 %v2874_v18 }
 0x9f8   : > { %v2765_v45 = vpop.permute.xlu0 %2764 }
 0x9f9   : > { %v2836_v62 = vsel %vm943_vm0, %v1344_v13, %v2765_v45  ;;  %v5259_v45 = vld [vmem:[%s5365_s28 + $0x28] sm:$0xf] }
 0x9fa   : > { %v394_v40 = vunpack.c.l.bf16 %v5259_v45  ;;  %v4902_v45 = vld [vmem:[%s7560_s6 + $0x50] ss:$8 sps:$4 sm:$0xff]  }
 0x9fc   : > { %v2789_v36 = vpop.permute.xlu0 %2788 }
 0x9fd   : > { %v2854_v55 = vsel %vm2840_vm1, %v2836_v62, %v2789_v36 }
 0xa00   : > { %v2813_v59 = vpop.permute.xlu0 %2812 }
 0xa01   : > { %v2877_v9 = vsel %vm2857_vm2, %v2854_v55, %v2813_v59  ;;  %v395_v55 = vunpack.c.l.bf16 %v5260_v63  ;;  %v4910_v63 = vld [vmem:[%s7560_s6 + $0x74] ss:$8 sps:$4 sm:$0xff]  }
 0xa02   : > { %4775 = vmatprep.mubr.bf16.mxu0 %v2877_v9 }
 0xa03   : > { %4776 = vmatmul.mubr.bf16.gmra.mrb[108].mxu0 %v2880_v61 }
 0xa7c   : > { %v4765_v60 = vpop.f32.mrb[96].mxu0 }
 0xa7d   : > { %v2984_v39 = vpop.f32.mrb[97].mxu0  ;;  %v2993_v31 = vadd.f32 %v4765_v60, %v6888_v26  ;;  %v5261_v60 = vld [vmem:[%s5365_s28 + $0x30] sm:$0xf] }
 0xa7e   : > { %v2985_v57 = vadd.f32 %v2984_v39, %v6888_v26  ;;  %v4766_v32 = vpop.f32.mrb[98].mxu0  ;;  %v396_v44 = vunpack.c.l.bf16 %v5261_v60 }
 0xa7f   : > { %v2987_v56 = vpop.f32.mrb[99].mxu0  ;;  %v6901_v29 = vadd.f32 %v2993_v31, %v386_v19  ;;  %v2996_v10 = vadd.f32 %v4766_v32, %v6888_v26  ;;  %v5262_v32 = vld [vmem:[%s5365_s28 + $0x34] sm:$0xf] }
 0xa80   : > { %v6895_v34 = vadd.f32 %v2985_v57, %v384_v20  ;;  %v2988_v33 = vadd.f32 %v2987_v56, %v6888_v26  ;;  %v397_v30 = vunpack.c.l.bf16 %v5262_v32  ;;  %v5263_v56 = vld [vmem:[%s5365_s28 + $0x38] sm:$0xf] }
 0xa81   : > { %v6907_v3 = vadd.f32 %v2996_v10, %v387_v37  ;;  %v398_v24 = vunpack.c.l.bf16 %v5263_v56  ;;  %v399_v37 = vunpack.c.l.bf16 %v5264_v16 }
 0xa82   : > { %v6898_v7 = vadd.f32 %v2988_v33, %v385_v21  ;;  %3063 = vadd.xlane.f32.xlu0 %v6895_v34 }
 0xa84   : > { %3065 = vadd.xlane.f32.xlu1 %v6898_v7 }
 0xa86   : > { %3067 = vadd.xlane.f32.xlu0 %v6901_v29 }
 0xa8a   : > { %3069 = vadd.xlane.f32.xlu0 %v6907_v3 }
 0xabd   : > { %v4769_v5 = vpop.f32.mrb[100].mxu0 }
 0xabe   : > { %v3000_v17 = vpop.f32.mrb[101].mxu0  ;;  %v3009_v1 = vadd.f32 %v4769_v5, %v6888_v26 }
 0xabf   : > { %v3001_v49 = vadd.f32 %v3000_v17, %v6888_v26  ;;  %v4770_v42 = vpop.f32.mrb[102].mxu0  ;;  %v4887_v17 = vld [vmem:[%s7560_s6] ss:$8 sps:$4 sm:$0xff]  }
 0xac0   : > { %v3003_v54 = vpop.f32.mrb[103].mxu0  ;;  %v3012_v38 = vadd.f32 %v4770_v42, %v6888_v26  ;;  %v6923_v23 = vadd.f32 %v3009_v1, %v390_v47  ;;  %v4890_v42 = vld [vmem:[%s7560_s6 + $0x10] ss:$8 sps:$4 sm:$0xff]  }
 0xac1   : > { %v6915_v46 = vadd.f32 %v3001_v49, %v388_v52  ;;  %v3004_v48 = vadd.f32 %v3003_v54, %v6888_v26  ;;  %v4892_v49 = vld [vmem:[%s7560_s6 + $0x14] ss:$8 sps:$4 sm:$0xff]  }
 0xac2   : > { %v6926_v0 = vadd.f32 %v3012_v38, %v391_v12 }
 0xac3   : > { %v6920_v13 = vadd.f32 %v3004_v48, %v389_v41  ;;  %3071 = vadd.xlane.f32.xlu0 %v6915_v46 }
 0xac5   : > { %3073 = vadd.xlane.f32.xlu1 %v6920_v13 }
 0xac7   : > { %3075 = vadd.xlane.f32.xlu0 %v6923_v23 }
 0xac9   : > { %3077 = vadd.xlane.f32.xlu1 %v6926_v0 }
 0xaca   : > { %v4773_v27 = vpop.f32.mrb[104].mxu0 }
 0xacb   : > { %v3016_v28 = vpop.f32.mrb[105].mxu0  ;;  %v3025_v36 = vadd.f32 %v4773_v27, %v6888_v26 }
 0xacc   : > { %v3017_v11 = vadd.f32 %v3016_v28, %v6888_v26  ;;  %v4774_v15 = vpop.f32.mrb[106].mxu0 }
 0xacd   : > { %v3019_v18 = vpop.f32.mrb[107].mxu0  ;;  %v3028_v59 = vadd.f32 %v4774_v15, %v6888_v26  ;;  %v6943_v9 = vadd.f32 %v3025_v36, %v394_v40  ;;  %v4896_v15 = vld [vmem:[%s7560_s6 + $0x30] ss:$8 sps:$4 sm:$0xff]   ;;  %v4907_v40 = vld [vmem:[%s7560_s6 + $0x64] ss:$8 sps:$4 sm:$0xff]  }
 0xace   : > { %v6935_v50 = vadd.f32 %v3017_v11, %v392_v6  ;;  %v3020_v62 = vadd.f32 %v3019_v18, %v6888_v26  ;;  %v4893_v11 = vld [vmem:[%s7560_s6 + $0x20] ss:$8 sps:$4 sm:$0xff]   ;;  %v4904_v18 = vld [vmem:[%s7560_s6 + $0x54] ss:$8 sps:$4 sm:$0xff]  }
 0xacf   : > { %v6946_v61 = vadd.f32 %v3028_v59, %v395_v55  ;;  %v4905_v36 = vld [vmem:[%s7560_s6 + $0x60] ss:$8 sps:$4 sm:$0xff]  }
 0xad0   : > { %v6940_v51 = vadd.f32 %v3020_v62, %v393_v4  ;;  %3079 = vadd.xlane.f32.xlu0 %v6935_v50  ;;  %v4899_v4 = vld [vmem:[%s7560_s6 + $0x40] ss:$8 sps:$4 sm:$0xff]   ;;  %v4908_v62 = vld [vmem:[%s7560_s6 + $0x70] ss:$8 sps:$4 sm:$0xff]  }
 0xad2   : > { %3081 = vadd.xlane.f32.xlu1 %v6940_v51 }
 0xad4   : > { %3083 = vadd.xlane.f32.xlu0 %v6943_v9 }
 0xad6   : > { %3085 = vadd.xlane.f32.xlu1 %v6946_v61  ;;  %v4777_v8 = vpop.f32.mrb[108].mxu0 }
 0xad7   : > { %v3032_v20 = vpop.f32.mrb[109].mxu0  ;;  %v3041_v19 = vadd.f32 %v4777_v8, %v6888_v26 }
 0xad8   : > { %v3033_v39 = vadd.f32 %v3032_v20, %v6888_v26  ;;  %v4778_v57 = vpop.f32.mrb[110].mxu0 }
 0xad9   : > { %v3035_v21 = vpop.f32.mrb[111].mxu0  ;;  %v3044_v10 = vadd.f32 %v4778_v57, %v6888_v26  ;;  %v6963_v22 = vadd.f32 %v3041_v19, %v398_v24 }
 0xada   : > { %v6955_v31 = vadd.f32 %v3033_v39, %v396_v44  ;;  %v3036_v33 = vadd.f32 %v3035_v21, %v6888_v26  ;;  %v4889_v26 = vld [vmem:[%s7560_s6 + $0x4] ss:$8 sps:$4 sm:$0xff]  }
 0xadb   : > { %v6966_v52 = vadd.f32 %v3044_v10, %v399_v37  ;;  %3392 = vmatprep.subr.bf16.mxu1 %v4889_v26 }
 0xadc   : > { %v6960_v5 = vadd.f32 %v3036_v33, %v397_v30  ;;  %3087 = vadd.xlane.f32.xlu0 %v6955_v31  ;;  %3393 = vmatpush1.bf16.msra.mxu1 %v4887_v17 }
 0xadd   : > { %3394 = vmatprep.subr.bf16.mxu1 %v4892_v49 }
 0xade   : > { %3089 = vadd.xlane.f32.xlu1 %v6960_v5 }
 0xae0   : > { %3091 = vadd.xlane.f32.xlu0 %v6963_v22  ;;  %3395 = vmatpush1.bf16.msra.mxu1 %v4890_v42 }
 0xae2   : > { %3093 = vadd.xlane.f32.xlu1 %v6966_v52 }
 0xb0f   : > { %v3064_v2 = vpop.xlane.xlu0 %3063 }
 0xb10   : > { %v3096_v41 = vmul.f32 0.0078125, %v3064_v2 }
 0xb11   : > { %v3066_v54 = vpop.xlane.xlu1 %3065 }
 0xb12   : > { %v6983_v43 = vsub.f32 %v6895_v34, %v3096_v41  ;;  %v3097_v47 = vmul.f32 0.0078125, %v3066_v54 }
 0xb13   : > { %v3068_v1 = vpop.xlane.xlu0 %3067 }
 0xb14   : > { %v6986_v48 = vsub.f32 %v6898_v7, %v3097_v47  ;;  %v3098_v25 = vmul.f32 0.0078125, %v3068_v1  ;;  %v3128_v12 = vmul.f32 %v6983_v43, %v6983_v43 }
 0xb16   : > { %v6991_v38 = vsub.f32 %v6901_v29, %v3098_v25  ;;  %3144 = vadd.xlane.f32.xlu0 %v3128_v12  ;;  %v3129_v27 = vmul.f32 %v6986_v48, %v6986_v48  ;;  %v4895_v29 = vld [vmem:[%s7560_s6 + $0x24] ss:$8 sps:$4 sm:$0xff]  }
 0xb17   : > { %v3070_v35 = vpop.xlane.xlu0 %3069  ;;  %3396 = vmatprep.subr.bf16.mxu1 %v4895_v29 }
 0xb18   : > { %v3099_v6 = vmul.f32 0.0078125, %v3070_v35  ;;  %3146 = vadd.xlane.f32.xlu1 %v3129_v27  ;;  %v3130_v34 = vmul.f32 %v6991_v38, %v6991_v38  ;;  %3397 = vmatpush1.bf16.msra.mxu1 %v4893_v11 }
 0xb1a   : > { %v6998_v7 = vsub.f32 %v6907_v3, %v3099_v6  ;;  %3148 = vadd.xlane.f32.xlu0 %v3130_v34  ;;  %v4898_v3 = vld [vmem:[%s7560_s6 + $0x34] ss:$8 sps:$4 sm:$0xff]  }
 0xb1b   : > { %3398 = vmatprep.subr.bf16.mxu1 %v4898_v3 }
 0xb1c   : > { %v3131_v28 = vmul.f32 %v6998_v7, %v6998_v7  ;;  %3399 = vmatpush1.bf16.msra.mxu1 %v4896_v15 }
 0xb1d   : > { %3400 = vmatprep.subr.bf16.mxu1 %v4901_v58 }
 0xb1e   : > { %3150 = vadd.xlane.f32.xlu1 %v3131_v28 }
 0xb20   : > { %3401 = vmatpush1.bf16.msra.mxu1 %v4899_v4 }
 0xb21   : > { %3402 = vmatprep.subr.bf16.mxu1 %v4904_v18 }
 0xb24   : > { %3403 = vmatpush1.bf16.msra.mxu1 %v4902_v45 }
 0xb25   : > { %3404 = vmatprep.subr.bf16.mxu1 %v4907_v40  ;;  %v4911_v40 = vld [vmem:[%s7561_s7 + $0x40] sm:$0xff]  }
 0xb26   : > { %4395 = vmatprep.subr.bf16.mxu0 %v4911_v40 }
 0xb28   : > { %3405 = vmatpush1.bf16.msra.mxu1 %v4905_v36  ;;  %v4913_v36 = vld [vmem:[%s7561_s7 + $0x48] sm:$0xff]  }
 0xb29   : > { %3406 = vmatprep.subr.bf16.mxu1 %v4910_v63 }
 0xb2c   : > { %3407 = vmatpush1.bf16.msra.mxu1 %v4908_v62 }
 0xb2d   : > { %4779 = vmatprep.subr.bf16.mxu1 %v4911_v40 }
 0xb50   : > { %v3072_v55 = vpop.xlane.xlu0 %3071 }
 0xb51   : > { %v3100_v59 = vmul.f32 0.0078125, %v3072_v55 }
 0xb52   : > { %v3074_v8 = vpop.xlane.xlu1 %3073 }
 0xb53   : > { %v7039_v60 = vsub.f32 %v6915_v46, %v3100_v59  ;;  %v3101_v44 = vmul.f32 0.0078125, %v3074_v8  ;;  %v4914_v59 = vld [vmem:[%s7561_s7 + $0x8] sm:$0xff]  }
 0xb54   : > { %v3076_v20 = vpop.xlane.xlu0 %3075 }
 0xb55   : > { %v7042_v39 = vsub.f32 %v6920_v13, %v3101_v44  ;;  %v3102_v57 = vmul.f32 0.0078125, %v3076_v20  ;;  %v3132_v32 = vmul.f32 %v7039_v60, %v7039_v60  ;;  %v4915_v44 = vld [vmem:[%s7561_s7 + $0x50] sm:$0xff]  }
 0xb56   : > { %v3078_v30 = vpop.xlane.xlu1 %3077 }
 0xb57   : > { %v7047_v21 = vsub.f32 %v6923_v23, %v3102_v57  ;;  %v3103_v56 = vmul.f32 0.0078125, %v3078_v30  ;;  %3152 = vadd.xlane.f32.xlu0 %v3132_v32  ;;  %v3133_v24 = vmul.f32 %v7042_v39, %v7042_v39  ;;  %v3242_v32 = vsub.s32 3, %v7679_v14  ;;  %v4916_v30 = vld [vmem:[%s7561_s7 + $0x10] sm:$0xff]  }
 0xb59   : > { %v7052_v46 = vsub.f32 %v6926_v0, %v3103_v56  ;;  %3154 = vadd.xlane.f32.xlu1 %v3133_v24  ;;  %v3134_v13 = vmul.f32 %v7047_v21, %v7047_v21  ;;  %v4917_v24 = vld [vmem:[%s7561_s7 + $0x58] sm:$0xff]  }
 0xb5b   : > { %3156 = vadd.xlane.f32.xlu0 %v3134_v13  ;;  %v3135_v19 = vmul.f32 %v7052_v46, %v7052_v46  ;;  %v7123_v13 = vrot.slane %v6883_v53, %v3242_v32 }
 0xb5d   : > { %3158 = vadd.xlane.f32.xlu1 %v3135_v19  ;;  %v3080_v33 = vpop.xlane.xlu0 %3079  ;;  %v3262_v19 = vsub.s32 4, %v7679_v14 }
 0xb5e   : > { %v3104_v23 = vmul.f32 0.0078125, %v3080_v33  ;;  %v4918_v33 = vld [vmem:[%s7561_s7 + $0x18] sm:$0xff]  }
 0xb5f   : > { %v3082_v16 = vpop.xlane.xlu1 %3081 }
 0xb60   : > { %v7059_v37 = vsub.f32 %v6935_v50, %v3104_v23  ;;  %v3105_v10 = vmul.f32 0.0078125, %v3082_v16  ;;  %v4919_v16 = vld [vmem:[%s7561_s7 + $0x60] sm:$0xff]  }
 0xb61   : > { %v3084_v17 = vpop.xlane.xlu0 %3083 }
 0xb62   : > { %v7062_v0 = vsub.f32 %v6940_v51, %v3105_v10  ;;  %v3106_v26 = vmul.f32 0.0078125, %v3084_v17  ;;  %v3136_v49 = vmul.f32 %v7059_v37, %v7059_v37 }
 0xb63   : > { %v3086_v42 = vpop.xlane.xlu1 %3085 }
 0xb64   : > { %v7067_v2 = vsub.f32 %v6943_v9, %v3106_v26  ;;  %v3107_v41 = vmul.f32 0.0078125, %v3086_v42  ;;  %3160 = vadd.xlane.f32.xlu0 %v3136_v49  ;;  %v3137_v54 = vmul.f32 %v7062_v0, %v7062_v0  ;;  %v7138_v42 = vld [vmem:[%s7562_s8] sm:$0xff] }
 0xb66   : > { %v7072_v50 = vsub.f32 %v6946_v61, %v3107_v41  ;;  %3162 = vadd.xlane.f32.xlu1 %v3137_v54  ;;  %v3138_v51 = vmul.f32 %v7067_v2, %v7067_v2  ;;  %v7143_v41 = vrot.slane %v7138_v42, %v3262_v19 }
 0xb68   : > { %3164 = vadd.xlane.f32.xlu0 %v3138_v51  ;;  %v3139_v47 = vmul.f32 %v7072_v50, %v7072_v50 }
 0xb69   : > { %v3088_v1 = vpop.xlane.xlu0 %3087 }
 0xb6a   : > { %v3108_v25 = vmul.f32 0.0078125, %v3088_v1  ;;  %3166 = vadd.xlane.f32.xlu1 %v3139_v47 }
 0xb6b   : > { %v3090_v9 = vpop.xlane.xlu1 %3089 }
 0xb6c   : > { %v7079_v12 = vsub.f32 %v6955_v31, %v3108_v25  ;;  %v3109_v27 = vmul.f32 0.0078125, %v3090_v9 }
 0xb6d   : > { %v3092_v35 = vpop.xlane.xlu0 %3091 }
 0xb6e   : > { %v7082_v61 = vsub.f32 %v6960_v5, %v3109_v27  ;;  %v3110_v6 = vmul.f32 0.0078125, %v3092_v35  ;;  %v3140_v34 = vmul.f32 %v7079_v12, %v7079_v12 }
 0xb6f   : > { %v3094_v28 = vpop.xlane.xlu1 %3093 }
 0xb70   : > { %v7087_v29 = vsub.f32 %v6963_v22, %v3110_v6  ;;  %v3111_v11 = vmul.f32 0.0078125, %v3094_v28  ;;  %3168 = vadd.xlane.f32.xlu0 %v3140_v34  ;;  %v3141_v3 = vmul.f32 %v7082_v61, %v7082_v61  ;;  %v7681_v28 = vmov 0  }
 0xb72   : > { %v7092_v31 = vsub.f32 %v6966_v52, %v3111_v11  ;;  %3170 = vadd.xlane.f32.xlu1 %v3141_v3  ;;  %v3142_v5 = vmul.f32 %v7087_v29, %v7087_v29  ;;  %v4912_v52 = vld [vmem:[%s7561_s7] sm:$0xff]  }
 0xb73   : > { %4396 = vmatpush3.bf16.msra.mxu0 %v4912_v52 }
 0xb74   : > { %3172 = vadd.xlane.f32.xlu0 %v3142_v5  ;;  %v3143_v15 = vmul.f32 %v7092_v31, %v7092_v31  ;;  %4397 = vmatprep.subr.bf16.mxu0 %v4913_v36 }
 0xb76   : > { %3174 = vadd.xlane.f32.xlu1 %v3143_v15 }
 0xb77   : > { %4398 = vmatpush3.bf16.msra.mxu0 %v4914_v59 }
 0xb78   : > { %4399 = vmatprep.subr.bf16.mxu0 %v4915_v44 }
 0xb7b   : > { %4400 = vmatpush3.bf16.msra.mxu0 %v4916_v30 }
 0xb7c   : > { %4401 = vmatprep.subr.bf16.mxu0 %v4917_v24 }
 0xb7f   : > { %4402 = vmatpush3.bf16.msra.mxu0 %v4918_v33 }
 0xb80   : > { %4403 = vmatprep.subr.bf16.mxu0 %v4919_v16 }
 0xba3   : > { %v3145_v58 = vpop.xlane.xlu0 %3144 }
 0xba4   : > { %v3176_v22 = vmul.f32 0.0078125, %v3145_v58 }
 0xba5   : > { %v3147_v4 = vpop.xlane.xlu1 %3146 }
 0xba6   : > { %v3192_v18 = vadd.f32 1e-05, %v3176_v22  ;;  %v3177_v45 = vmul.f32 0.0078125, %v3147_v4 }
 0xba7   : > { %v3149_v62 = vpop.xlane.xlu0 %3148 }
 0xba8   : > { %5183 = vrsqrt.f32 %v3192_v18  ;;  %v3193_v63 = vadd.f32 1e-05, %v3177_v45  ;;  %v3178_v55 = vmul.f32 0.0078125, %v3149_v62 }
 0xbaa   : > { %5185 = vrsqrt.f32 %v3193_v63  ;;  %v3194_v8 = vadd.f32 1e-05, %v3178_v55 }
 0xbab   : > { %v3151_v20 = vpop.xlane.xlu1 %3150 }
 0xbac   : > { %5187 = vrsqrt.f32 %v3194_v8  ;;  %v3179_v57 = vmul.f32 0.0078125, %v3151_v20 }
 0xbae   : > { %v3195_v56 = vadd.f32 1e-05, %v3179_v57 }
 0xbb0   : > { %5189 = vrsqrt.f32 %v3195_v56 }
 0xbb2   : > { %v5184_v23 = vpop.eup %5183 }
 0xbb3   : > { %v3224_v10 = vmul.f32 %v5184_v23, %v6983_v43  ;;  %v4920_v43 = vld [vmem:[%s7561_s7 + $0x20] sm:$0xff]  }
 0xbb4   : > { %v5186_v17 = vpop.eup %5185  ;;  %4404 = vmatpush3.bf16.msra.mxu0 %v4920_v43 }
 0xbb5   : > { %v3244_v26 = vmul.f32 %v7123_v13, %v3224_v10  ;;  %v3225_v49 = vmul.f32 %v5186_v17, %v6986_v48  ;;  %v4921_v48 = vld [vmem:[%s7561_s7 + $0x68] sm:$0xff]  }
 0xbb6   : > { %v5188_v54 = vpop.eup %5187  ;;  %4405 = vmatprep.subr.bf16.mxu0 %v4921_v48 }
 0xbb7   : > { %v3245_v51 = vmul.f32 %v7123_v13, %v3225_v49  ;;  %v7153_v47 = vadd.f32 %v7143_v41, %v3244_v26  ;;  %v3226_v25 = vmul.f32 %v5188_v54, %v6991_v38 }
 0xbb9   : > { %v7156_v1 = vadd.f32 %v7143_v41, %v3245_v51  ;;  %v3246_v6 = vmul.f32 %v7123_v13, %v3226_v25 }
 0xbba   : > { %v5190_v9 = vpop.eup %5189 }
 0xbbb   : > { %v3280_v27 = vpack.c.bf16 %v7156_v1, %v7153_v47  ;;  %v3227_v35 = vmul.f32 %v5190_v9, %v6998_v7  ;;  %v7169_v38 = vadd.f32 %v7143_v41, %v3246_v6 }
 0xbbd   : > { %3425 = vmatmul.mubr.bf16.vlgmr.msra.gmra.mrb[80].mxu1 %v3280_v27  ;;  %v3247_v34 = vmul.f32 %v7123_v13, %v3227_v35 }
 0xbbe   : > { %3434 = vmatprep.mubr.bf16.mxu1 %v7681_v28  ;;  %4787 = vmatpush3.bf16.msra.mxu1 %v4912_v52 }
 0xbbf   : > { %v7166_v11 = vadd.f32 %v7143_v41, %v3247_v34  ;;  %4780 = vmatprep.subr.bf16.mxu1 %v4913_v36 }
 0xbc1   : > { %v3281_v3 = vpack.c.bf16 %v7166_v11, %v7169_v38 }
 0xbc2   : > { %4788 = vmatpush3.bf16.msra.mxu1 %v4914_v59 }
 0xbc3   : > { %4781 = vmatprep.subr.bf16.mxu1 %v4915_v44 }
 0xbc5   : > { %3435 = vmatmul.mubr.bf16.gmra.mrb[84].mxu1 %v3281_v3 }
 0xbc6   : > { %3444 = vmatprep.mubr.bf16.mxu1 %v7681_v28  ;;  %4789 = vmatpush3.bf16.msra.mxu1 %v4916_v30 }
 0xbc7   : > { %4782 = vmatprep.subr.bf16.mxu1 %v4917_v24 }
 0xbca   : > { %4790 = vmatpush3.bf16.msra.mxu1 %v4918_v33 }
 0xbcb   : > { %4783 = vmatprep.subr.bf16.mxu1 %v4919_v16 }
 0xbce   : > { %4791 = vmatpush3.bf16.msra.mxu1 %v4920_v43 }
 0xbcf   : > { %4784 = vmatprep.subr.bf16.mxu1 %v4921_v48 }
 0xbe4   : > { %v3153_v7 = vpop.xlane.xlu0 %3152 }
 0xbe5   : > { %v3180_v5 = vmul.f32 0.0078125, %v3153_v7 }
 0xbe6   : > { %v3155_v15 = vpop.xlane.xlu1 %3154 }
 0xbe7   : > { %v3196_v58 = vadd.f32 1e-05, %v3180_v5  ;;  %v3181_v22 = vmul.f32 0.0078125, %v3155_v15 }
 0xbe8   : > { %v3157_v4 = vpop.xlane.xlu0 %3156 }
 0xbe9   : > { %5191 = vrsqrt.f32 %v3196_v58  ;;  %v3197_v18 = vadd.f32 1e-05, %v3181_v22  ;;  %v3182_v45 = vmul.f32 0.0078125, %v3157_v4 }
 0xbea   : > { %v3159_v40 = vpop.xlane.xlu1 %3158 }
 0xbeb   : > { %5193 = vrsqrt.f32 %v3197_v18  ;;  %v3198_v52 = vadd.f32 1e-05, %v3182_v45  ;;  %v3183_v36 = vmul.f32 0.0078125, %v3159_v40 }
 0xbed   : > { %5195 = vrsqrt.f32 %v3198_v52  ;;  %v3199_v62 = vadd.f32 1e-05, %v3183_v36 }
 0xbef   : > { %5197 = vrsqrt.f32 %v3199_v62 }
 0xbf1   : > { %v3161_v63 = vpop.xlane.xlu0 %3160 }
 0xbf2   : > { %v3184_v55 = vmul.f32 0.0078125, %v3161_v63 }
 0xbf3   : > { %v5192_v59 = vpop.eup %5191  ;;  %v3163_v8 = vpop.xlane.xlu1 %3162 }
 0xbf4   : > { %v3200_v44 = vadd.f32 1e-05, %v3184_v55  ;;  %v3185_v20 = vmul.f32 0.0078125, %v3163_v8  ;;  %v3228_v57 = vmul.f32 %v5192_v59, %v7039_v60 }
 0xbf5   : > { %v5194_v30 = vpop.eup %5193  ;;  %v3165_v56 = vpop.xlane.xlu0 %3164 }
 0xbf6   : > { %5199 = vrsqrt.f32 %v3200_v44  ;;  %v3201_v24 = vadd.f32 1e-05, %v3185_v20  ;;  %v3186_v33 = vmul.f32 0.0078125, %v3165_v56  ;;  %v3229_v23 = vmul.f32 %v5194_v30, %v7042_v39 }
 0xbf7   : > { %v5196_v16 = vpop.eup %5195  ;;  %v3167_v10 = vpop.xlane.xlu1 %3166  ;;  %v3248_v17 = vmul.f32 %v7123_v13, %v3228_v57 }
 0xbf8   : > { %5201 = vrsqrt.f32 %v3201_v24  ;;  %v3187_v26 = vmul.f32 0.0078125, %v3167_v10  ;;  %v3249_v49 = vmul.f32 %v7123_v13, %v3229_v23  ;;  %v3202_v54 = vadd.f32 1e-05, %v3186_v33 }
 0xbf9   : > { %v5198_v43 = vpop.eup %5197  ;;  %v7179_v48 = vadd.f32 %v7143_v41, %v3248_v17  ;;  %v3230_v25 = vmul.f32 %v5196_v16, %v7047_v21 }
 0xbfa   : > { %v3203_v60 = vadd.f32 1e-05, %v3187_v26  ;;  %v7182_v51 = vadd.f32 %v7143_v41, %v3249_v49  ;;  %v3231_v39 = vmul.f32 %v5198_v43, %v7052_v46  ;;  %v4923_v49 = vld [vmem:[%s7561_s7 + $0x70] sm:$0xff]  }
 0xbfb   : > { %v3250_v34 = vmul.f32 %v7123_v13, %v3230_v25  ;;  %v4924_v43 = vld [vmem:[%s7561_s7 + $0x30] sm:$0xff]   ;;  %v4925_v25 = vld [vmem:[%s7561_s7 + $0x78] sm:$0xff]  }
 0xbfc   : > { %5203 = vrsqrt.f32 %v3203_v60  ;;  %v3282_v9 = vpack.c.bf16 %v7182_v51, %v7179_v48  ;;  %v3251_v27 = vmul.f32 %v7123_v13, %v3231_v39 }
 0xbfd   : > { %5205 = vrsqrt.f32 %v3202_v54  ;;  %v3169_v35 = vpop.xlane.xlu0 %3168  ;;  %v7195_v4 = vadd.f32 %v7143_v41, %v3250_v34 }
 0xbfe   : > { %v3188_v6 = vmul.f32 0.0078125, %v3169_v35  ;;  %3445 = vmatmul.mubr.bf16.gmra.mrb[88].mxu1 %v3282_v9  ;;  %v7192_v21 = vadd.f32 %v7143_v41, %v3251_v27  ;;  %v4926_v9 = vld [vmem:[%s7561_s7 + $0x38] sm:$0xff]  }
 0xbff   : > { %v3171_v3 = vpop.xlane.xlu1 %3170  ;;  %3454 = vmatprep.mubr.bf16.mxu1 %v7681_v28 }
 0xc00   : > { %v5200_v7 = vpop.eup %5199  ;;  %v3189_v5 = vmul.f32 0.0078125, %v3171_v3  ;;  %v3204_v46 = vadd.f32 1e-05, %v3188_v6  ;;  %v3283_v36 = vpack.c.bf16 %v7192_v21, %v7195_v4 }
 0xc01   : > { %v3173_v22 = vpop.xlane.xlu0 %3172  ;;  %v3232_v18 = vmul.f32 %v5200_v7, %v7059_v37 }
 0xc02   : > { %v5202_v15 = vpop.eup %5201  ;;  %v3205_v58 = vadd.f32 1e-05, %v3189_v5  ;;  %v3190_v62 = vmul.f32 0.0078125, %v3173_v22 }
 0xc03   : > { %v3175_v45 = vpop.xlane.xlu1 %3174  ;;  %v3233_v40 = vmul.f32 %v5202_v15, %v7062_v0  ;;  %v3252_v59 = vmul.f32 %v7123_v13, %v3232_v18  ;;  %v3306_v15 = vsub.s32 1, %v7679_v14 }
 0xc04   : > { %5207 = vrsqrt.f32 %v3205_v58  ;;  %v3191_v52 = vmul.f32 0.0078125, %v3175_v45  ;;  %v3206_v20 = vadd.f32 1e-05, %v3190_v62 }
 0xc05   : > { %5209 = vrsqrt.f32 %v3204_v46  ;;  %v3253_v63 = vmul.f32 %v7123_v13, %v3233_v40  ;;  %v7209_v57 = vadd.f32 %v7143_v41, %v3252_v59  ;;  %v7268_v58 = vrot.slane %v7138_v42, %v3306_v15 }
 0xc06   : > { %v5204_v55 = vpop.eup %5203  ;;  %3455 = vmatmul.mubr.bf16.gmra.mrb[92].mxu1 %v3283_v36  ;;  %v3207_v44 = vadd.f32 1e-05, %v3191_v52  ;;  %v7271_v22 = vrot.slane %v6883_v53, %v3306_v15 }
 0xc07   : > { %v5206_v8 = vpop.eup %5205  ;;  %3464 = vmatprep.mubr.bf16.mxu1 %v7681_v28  ;;  %v7205_v37 = vadd.f32 %v7143_v41, %v3253_v63  ;;  %v3235_v0 = vmul.f32 %v5204_v55, %v7072_v50  ;;  %v4922_v50 = vld [vmem:[%s7561_s7 + $0x28] sm:$0xff]  }
 0xc08   : > { %v3234_v30 = vmul.f32 %v5206_v8, %v7067_v2  ;;  %5211 = vrsqrt.f32 %v3207_v44  ;;  %4406 = vmatpush3.bf16.msra.mxu0 %v4922_v50  ;;  %4792 = vmatpush3.bf16.msra.mxu1 %v4922_v50 }
 0xc09   : > { %v3284_v56 = vpack.c.bf16 %v7205_v37, %v7209_v57  ;;  %v3255_v24 = vmul.f32 %v7123_v13, %v3235_v0  ;;  %5213 = vrsqrt.f32 %v3206_v20  ;;  %4407 = vmatprep.subr.bf16.mxu0 %v4923_v49  ;;  %4785 = vmatprep.subr.bf16.mxu1 %v4923_v49 }
 0xc0a   : > { %v3254_v23 = vmul.f32 %v7123_v13, %v3234_v30 }
 0xc0b   : > { %v7221_v2 = vadd.f32 %v7143_v41, %v3255_v24 }
 0xc0c   : > { %v7225_v17 = vadd.f32 %v7143_v41, %v3254_v23  ;;  %4408 = vmatpush3.bf16.msra.mxu0 %v4924_v43  ;;  %4793 = vmatpush3.bf16.msra.mxu1 %v4924_v43 }
 0xc0d   : > { %4409 = vmatprep.subr.bf16.mxu0 %v4925_v25  ;;  %4786 = vmatprep.subr.bf16.mxu1 %v4925_v25 }
 0xc0e   : > { %v5208_v33 = vpop.eup %5207  ;;  %3465 = vmatmul.mubr.bf16.gmra.mrb[96].mxu1 %v3284_v56  ;;  %v3285_v54 = vpack.c.bf16 %v7221_v2, %v7225_v17 }
 0xc0f   : > { %v5210_v16 = vpop.eup %5209  ;;  %3474 = vmatprep.mubr.bf16.mxu1 %v7681_v28  ;;  %v3237_v10 = vmul.f32 %v5208_v33, %v7082_v61 }
 0xc10   : > { %v3236_v26 = vmul.f32 %v5210_v16, %v7079_v12  ;;  %4410 = vmatpush3.bf16.msra.mxu0 %v4926_v9  ;;  %4794 = vmatpush3.bf16.msra.mxu1 %v4926_v9 }
 0xc11   : > { %v3257_v61 = vmul.f32 %v7123_v13, %v3237_v10 }
 0xc12   : > { %v5212_v60 = vpop.eup %5211  ;;  %v3256_v12 = vmul.f32 %v7123_v13, %v3236_v26 }
 0xc13   : > { %v5214_v39 = vpop.eup %5213  ;;  %v7246_v27 = vadd.f32 %v7143_v41, %v3257_v61  ;;  %v3239_v35 = vmul.f32 %v5212_v60, %v7092_v31 }
 0xc14   : > { %v7250_v6 = vadd.f32 %v7143_v41, %v3256_v12  ;;  %v3238_v34 = vmul.f32 %v5214_v39, %v7087_v29 }
 0xc15   : > { %v3259_v7 = vmul.f32 %v7123_v13, %v3239_v35 }
 0xc16   : > { %3475 = vmatmul.mubr.bf16.gmra.mrb[100].mxu1 %v3285_v54  ;;  %v3286_v3 = vpack.c.bf16 %v7246_v27, %v7250_v6  ;;  %v3258_v5 = vmul.f32 %v7123_v13, %v3238_v34 }
 0xc17   : > { %3484 = vmatprep.mubr.bf16.mxu1 %v7681_v28  ;;  %v7259_v31 = vadd.f32 %v7143_v41, %v3259_v7 }
 0xc18   : > { %v7262_v46 = vadd.f32 %v7143_v41, %v3258_v5 }
 0xc1a   : > { %v3287_v29 = vpack.c.bf16 %v7259_v31, %v7262_v46 }
 0xc1e   : > { %3485 = vmatmul.mubr.bf16.gmra.mrb[104].mxu1 %v3286_v3 }
 0xc1f   : > { %3494 = vmatprep.mubr.bf16.mxu1 %v7681_v28 }
 0xc26   : > { %3495 = vmatmul.mubr.bf16.gmra.mrb[108].mxu1 %v3287_v29 }
 0xc90   : > { %v3426_v13 = vpop.f32.mrb[80].mxu1 }
 0xc91   : > { %v3427_v28 = vadd.f32 %v3426_v13, %v7268_v58  ;;  %v3428_v18 = vpop.f32.mrb[81].mxu1 }
 0xc92   : > { %v3429_v45 = vadd.f32 %v3428_v18, %v7271_v22  ;;  %v3430_v41 = vpop.f32.mrb[82].mxu1 }
 0xc93   : > { %v3431_v40 = vadd.f32 %v3430_v41, %v7268_v58  ;;  %v3432_v52 = vpop.f32.mrb[83].mxu1  ;;  %v3505_v62 = vmax.f32 %v3427_v28, 0.0 }
 0xc94   : > { %v3433_v36 = vadd.f32 %v3432_v52, %v7271_v22  ;;  %v3506_v55 = vmax.f32 %v3429_v45, 0.0 }
 0xc95   : > { %v3507_v63 = vmax.f32 %v3431_v40, 0.0 }
 0xc96   : > { %v3508_v59 = vmax.f32 %v3433_v36, 0.0 }
 0xc97   : > { %v3537_v8 = vpack.c.bf16 %v3507_v63, %v3505_v62 }
 0xc98   : > { %v3538_v44 = vpack.c.bf16 %v3508_v59, %v3506_v55  ;;  %v3436_v53 = vpop.f32.mrb[84].mxu1 }
 0xc99   : > { %v3437_v0 = vadd.f32 %v3436_v53, %v7268_v58  ;;  %v3438_v20 = vpop.f32.mrb[85].mxu1 }
 0xc9a   : > { %v3439_v30 = vadd.f32 %v3438_v20, %v7271_v22  ;;  %v3440_v56 = vpop.f32.mrb[86].mxu1  ;;  %3717 = vmatprep.mubr.bf16.mxu0 %v3538_v44 }
 0xc9b   : > { %v3441_v24 = vadd.f32 %v3440_v56, %v7268_v58  ;;  %v3442_v33 = vpop.f32.mrb[87].mxu1  ;;  %3718 = vmatmul.mubr.bf16.vlgmr.msra.gmra.mrb[112].mxu0 %v3537_v8  ;;  %v3509_v16 = vmax.f32 %v3437_v0, 0.0 }
 0xc9c   : > { %v3443_v23 = vadd.f32 %v3442_v33, %v7271_v22  ;;  %v3510_v10 = vmax.f32 %v3439_v30, 0.0 }
 0xc9d   : > { %v3511_v50 = vmax.f32 %v3441_v24, 0.0 }
 0xc9e   : > { %v3512_v26 = vmax.f32 %v3443_v23, 0.0 }
 0xc9f   : > { %v3539_v49 = vpack.c.bf16 %v3511_v50, %v3509_v16 }
 0xca0   : > { %v3540_v43 = vpack.c.bf16 %v3512_v26, %v3510_v10 }
 0xca2   : > { %3725 = vmatprep.mubr.bf16.mxu0 %v3540_v43 }
 0xca3   : > { %3726 = vmatmul.mubr.bf16.gmra.mrb[116].mxu0 %v3539_v49 }
 0xcd1   : > { %v3446_v54 = vpop.f32.mrb[88].mxu1 }
 0xcd2   : > { %v3447_v61 = vadd.f32 %v3446_v54, %v7268_v58  ;;  %v3448_v60 = vpop.f32.mrb[89].mxu1 }
 0xcd3   : > { %v3449_v12 = vadd.f32 %v3448_v60, %v7271_v22  ;;  %v3450_v25 = vpop.f32.mrb[90].mxu1 }
 0xcd4   : > { %v3451_v39 = vadd.f32 %v3450_v25, %v7268_v58  ;;  %v3452_v9 = vpop.f32.mrb[91].mxu1  ;;  %v3513_v34 = vmax.f32 %v3447_v61, 0.0 }
 0xcd5   : > { %v3453_v35 = vadd.f32 %v3452_v9, %v7271_v22  ;;  %v3514_v7 = vmax.f32 %v3449_v12, 0.0 }
 0xcd6   : > { %v3515_v3 = vmax.f32 %v3451_v39, 0.0 }
 0xcd7   : > { %v3516_v5 = vmax.f32 %v3453_v35, 0.0 }
 0xcd8   : > { %v3541_v29 = vpack.c.bf16 %v3515_v3, %v3513_v34 }
 0xcd9   : > { %v3542_v15 = vpack.c.bf16 %v3516_v5, %v3514_v7  ;;  %v3456_v13 = vpop.f32.mrb[92].mxu1 }
 0xcda   : > { %v3457_v28 = vadd.f32 %v3456_v13, %v7268_v58  ;;  %v3458_v18 = vpop.f32.mrb[93].mxu1 }
 0xcdb   : > { %v3459_v45 = vadd.f32 %v3458_v18, %v7271_v22  ;;  %v3460_v41 = vpop.f32.mrb[94].mxu1  ;;  %3733 = vmatprep.mubr.bf16.mxu0 %v3542_v15 }
 0xcdc   : > { %v3461_v40 = vadd.f32 %v3460_v41, %v7268_v58  ;;  %v3462_v52 = vpop.f32.mrb[95].mxu1  ;;  %3734 = vmatmul.mubr.bf16.gmra.mrb[120].mxu0 %v3541_v29  ;;  %v3517_v62 = vmax.f32 %v3457_v28, 0.0 }
 0xcdd   : > { %v3463_v36 = vadd.f32 %v3462_v52, %v7271_v22  ;;  %v3518_v55 = vmax.f32 %v3459_v45, 0.0 }
 0xcde   : > { %v3519_v63 = vmax.f32 %v3461_v40, 0.0 }
 0xcdf   : > { %v3520_v59 = vmax.f32 %v3463_v36, 0.0 }
 0xce0   : > { %v3543_v8 = vpack.c.bf16 %v3519_v63, %v3517_v62 }
 0xce1   : > { %v3544_v44 = vpack.c.bf16 %v3520_v59, %v3518_v55  ;;  %v3466_v53 = vpop.f32.mrb[96].mxu1 }
 0xce2   : > { %v3467_v0 = vadd.f32 %v3466_v53, %v7268_v58  ;;  %v3468_v20 = vpop.f32.mrb[97].mxu1 }
 0xce3   : > { %v3469_v30 = vadd.f32 %v3468_v20, %v7271_v22  ;;  %v3470_v56 = vpop.f32.mrb[98].mxu1  ;;  %3741 = vmatprep.mubr.bf16.mxu0 %v3544_v44 }
 0xce4   : > { %v3471_v24 = vadd.f32 %v3470_v56, %v7268_v58  ;;  %v3472_v33 = vpop.f32.mrb[99].mxu1  ;;  %3742 = vmatmul.mubr.bf16.gmra.mrb[124].mxu0 %v3543_v8  ;;  %v3521_v16 = vmax.f32 %v3467_v0, 0.0 }
 0xce5   : > { %v3473_v23 = vadd.f32 %v3472_v33, %v7271_v22  ;;  %v3522_v10 = vmax.f32 %v3469_v30, 0.0 }
 0xce6   : > { %v3523_v50 = vmax.f32 %v3471_v24, 0.0 }
 0xce7   : > { %v3524_v26 = vmax.f32 %v3473_v23, 0.0 }
 0xce8   : > { %v3545_v49 = vpack.c.bf16 %v3523_v50, %v3521_v16 }
 0xce9   : > { %v3546_v43 = vpack.c.bf16 %v3524_v26, %v3522_v10  ;;  %v3476_v54 = vpop.f32.mrb[100].mxu1 }
 0xcea   : > { %v3477_v61 = vadd.f32 %v3476_v54, %v7268_v58  ;;  %v3478_v60 = vpop.f32.mrb[101].mxu1 }
 0xceb   : > { %v3479_v12 = vadd.f32 %v3478_v60, %v7271_v22  ;;  %v3480_v25 = vpop.f32.mrb[102].mxu1  ;;  %3749 = vmatprep.mubr.bf16.mxu0 %v3546_v43 }
 0xcec   : > { %v3481_v39 = vadd.f32 %v3480_v25, %v7268_v58  ;;  %v3482_v9 = vpop.f32.mrb[103].mxu1  ;;  %3750 = vmatmul.mubr.bf16.gmra.mrb[128].mxu0 %v3545_v49  ;;  %v3525_v34 = vmax.f32 %v3477_v61, 0.0  ;;  %v7308_v61 = vrot.slane %v7138_v42, %v3242_v32 }
 0xced   : > { %v3483_v35 = vadd.f32 %v3482_v9, %v7271_v22  ;;  %v3526_v7 = vmax.f32 %v3479_v12, 0.0 }
 0xcee   : > { %v3527_v3 = vmax.f32 %v3481_v39, 0.0 }
 0xcef   : > { %v3528_v5 = vmax.f32 %v3483_v35, 0.0 }
 0xcf0   : > { %v3547_v29 = vpack.c.bf16 %v3527_v3, %v3525_v34 }
 0xcf1   : > { %v3548_v15 = vpack.c.bf16 %v3528_v5, %v3526_v7  ;;  %v3486_v13 = vpop.f32.mrb[104].mxu1 }
 0xcf2   : > { %v3487_v28 = vadd.f32 %v3486_v13, %v7268_v58  ;;  %v3488_v18 = vpop.f32.mrb[105].mxu1 }
 0xcf3   : > { %v3489_v45 = vadd.f32 %v3488_v18, %v7271_v22  ;;  %v3490_v41 = vpop.f32.mrb[106].mxu1  ;;  %3757 = vmatprep.mubr.bf16.mxu0 %v3548_v15 }
 0xcf4   : > { %v3491_v40 = vadd.f32 %v3490_v41, %v7268_v58  ;;  %v3492_v52 = vpop.f32.mrb[107].mxu1  ;;  %3758 = vmatmul.mubr.bf16.gmra.mrb[132].mxu0 %v3547_v29  ;;  %v3529_v62 = vmax.f32 %v3487_v28, 0.0 }
 0xcf5   : > { %v3493_v36 = vadd.f32 %v3492_v52, %v7271_v22  ;;  %v3530_v55 = vmax.f32 %v3489_v45, 0.0 }
 0xcf6   : > { %v3531_v63 = vmax.f32 %v3491_v40, 0.0 }
 0xcf7   : > { %v3532_v59 = vmax.f32 %v3493_v36, 0.0 }
 0xcf8   : > { %v3549_v8 = vpack.c.bf16 %v3531_v63, %v3529_v62 }
 0xcf9   : > { %v3550_v44 = vpack.c.bf16 %v3532_v59, %v3530_v55  ;;  %v3496_v53 = vpop.f32.mrb[108].mxu1 }
 0xcfa   : > { %v3497_v0 = vadd.f32 %v3496_v53, %v7268_v58  ;;  %v3498_v20 = vpop.f32.mrb[109].mxu1 }
 0xcfb   : > { %v3499_v30 = vadd.f32 %v3498_v20, %v7271_v22  ;;  %v3500_v56 = vpop.f32.mrb[110].mxu1  ;;  %3765 = vmatprep.mubr.bf16.mxu1 %v3550_v44 }
 0xcfc   : > { %v3501_v24 = vadd.f32 %v3500_v56, %v7268_v58  ;;  %v3502_v33 = vpop.f32.mrb[111].mxu1  ;;  %3766 = vmatmul.mubr.bf16.vlgmr.msra.gmra.mrb[112].mxu1 %v3549_v8  ;;  %v3533_v16 = vmax.f32 %v3497_v0, 0.0 }
 0xcfd   : > { %v3503_v23 = vadd.f32 %v3502_v33, %v7271_v22  ;;  %v3534_v10 = vmax.f32 %v3499_v30, 0.0 }
 0xcfe   : > { %v3535_v50 = vmax.f32 %v3501_v24, 0.0 }
 0xcff   : > { %v3536_v26 = vmax.f32 %v3503_v23, 0.0 }
 0xd00   : > { %v3551_v49 = vpack.c.bf16 %v3535_v50, %v3533_v16 }
 0xd01   : > { %v3552_v43 = vpack.c.bf16 %v3536_v26, %v3534_v10 }
 0xd03   : > { %3773 = vmatprep.mubr.bf16.mxu1 %v3552_v43 }
 0xd04   : > { %3774 = vmatmul.mubr.bf16.gmra.mrb[116].mxu1 %v3551_v49 }
 0xd6e   : > { %v4411_v54 = vpop.f32.mrb[112].mxu0 }
 0xd6f   : > { %v4412_v60 = vpop.f32.mrb[113].mxu0 }
 0xd70   : > { %v4413_v58 = vadd.f32 %v4412_v60, %v4411_v54  ;;  %v4414_v12 = vpop.f32.mrb[114].mxu0 }
 0xd71   : > { %v4415_v25 = vpop.f32.mrb[115].mxu0 }
 0xd72   : > { %v3720_v22 = vadd.f32 %v4413_v58, %v7308_v61  ;;  %v4416_v39 = vadd.f32 %v4415_v25, %v4414_v12 }
 0xd74   : > { %v3723_v9 = vadd.f32 %v4416_v39, %v7308_v61  ;;  %v7313_v35 = vadd.f32 %v3720_v22, %v7153_v47 }
 0xd76   : > { %3798 = vadd.xlane.f32.xlu0 %v7313_v35  ;;  %v4417_v34 = vpop.f32.mrb[116].mxu0  ;;  %v7317_v3 = vadd.f32 %v3723_v9, %v7156_v1 }
 0xd77   : > { %v4418_v32 = vpop.f32.mrb[117].mxu0 }
 0xd78   : > { %v4419_v7 = vadd.f32 %v4418_v32, %v4417_v34  ;;  %3800 = vadd.xlane.f32.xlu1 %v7317_v3  ;;  %v4420_v5 = vpop.f32.mrb[118].mxu0 }
 0xd79   : > { %v4421_v29 = vpop.f32.mrb[119].mxu0 }
 0xd7a   : > { %v3728_v15 = vadd.f32 %v4419_v7, %v7308_v61  ;;  %v4422_v13 = vadd.f32 %v4421_v29, %v4420_v5 }
 0xd7c   : > { %v3731_v28 = vadd.f32 %v4422_v13, %v7308_v61  ;;  %v7323_v47 = vadd.f32 %v3728_v15, %v7169_v38 }
 0xd7e   : > { %3802 = vadd.xlane.f32.xlu0 %v7323_v47  ;;  %v7327_v18 = vadd.f32 %v3731_v28, %v7166_v11 }
 0xd80   : > { %3804 = vadd.xlane.f32.xlu1 %v7327_v18 }
 0xdaf   : > { %v4423_v1 = vpop.f32.mrb[120].mxu0 }
 0xdb0   : > { %v4424_v45 = vpop.f32.mrb[121].mxu0 }
 0xdb1   : > { %v4425_v41 = vadd.f32 %v4424_v45, %v4423_v1  ;;  %v4426_v40 = vpop.f32.mrb[122].mxu0 }
 0xdb2   : > { %v4427_v52 = vpop.f32.mrb[123].mxu0 }
 0xdb3   : > { %v3736_v36 = vadd.f32 %v4425_v41, %v7308_v61  ;;  %v4428_v62 = vadd.f32 %v4427_v52, %v4426_v40 }
 0xdb5   : > { %v3739_v63 = vadd.f32 %v4428_v62, %v7308_v61  ;;  %v7333_v38 = vadd.f32 %v3736_v36, %v7179_v48 }
 0xdb7   : > { %3806 = vadd.xlane.f32.xlu0 %v7333_v38  ;;  %v4429_v55 = vpop.f32.mrb[124].mxu0  ;;  %v7337_v11 = vadd.f32 %v3739_v63, %v7182_v51 }
 0xdb8   : > { %v4430_v59 = vpop.f32.mrb[125].mxu0 }
 0xdb9   : > { %v4431_v8 = vadd.f32 %v4430_v59, %v4429_v55  ;;  %3808 = vadd.xlane.f32.xlu1 %v7337_v11  ;;  %v4432_v44 = vpop.f32.mrb[126].mxu0 }
 0xdba   : > { %v4433_v53 = vpop.f32.mrb[127].mxu0 }
 0xdbb   : > { %v3744_v0 = vadd.f32 %v4431_v8, %v7308_v61  ;;  %v4434_v20 = vadd.f32 %v4433_v53, %v4432_v44 }
 0xdbd   : > { %v3747_v30 = vadd.f32 %v4434_v20, %v7308_v61  ;;  %v7343_v48 = vadd.f32 %v3744_v0, %v7195_v4 }
 0xdbf   : > { %3810 = vadd.xlane.f32.xlu0 %v7343_v48  ;;  %v4435_v56 = vpop.f32.mrb[128].mxu0  ;;  %v7347_v51 = vadd.f32 %v3747_v30, %v7192_v21 }
 0xdc0   : > { %v4436_v24 = vpop.f32.mrb[129].mxu0 }
 0xdc1   : > { %v4437_v33 = vadd.f32 %v4436_v24, %v4435_v56  ;;  %3812 = vadd.xlane.f32.xlu1 %v7347_v51  ;;  %v4438_v23 = vpop.f32.mrb[130].mxu0 }
 0xdc2   : > { %v4439_v16 = vpop.f32.mrb[131].mxu0 }
 0xdc3   : > { %v3752_v50 = vadd.f32 %v4437_v33, %v7308_v61  ;;  %v4440_v10 = vadd.f32 %v4439_v16, %v4438_v23 }
 0xdc5   : > { %v3755_v26 = vadd.f32 %v4440_v10, %v7308_v61  ;;  %v7353_v4 = vadd.f32 %v3752_v50, %v7209_v57 }
 0xdc7   : > { %3814 = vadd.xlane.f32.xlu0 %v7353_v4  ;;  %v4441_v49 = vpop.f32.mrb[132].mxu0  ;;  %v7357_v21 = vadd.f32 %v3755_v26, %v7205_v37 }
 0xdc8   : > { %v4442_v43 = vpop.f32.mrb[133].mxu0 }
 0xdc9   : > { %v4443_v54 = vadd.f32 %v4442_v43, %v4441_v49  ;;  %3816 = vadd.xlane.f32.xlu1 %v7357_v21  ;;  %v4444_v60 = vpop.f32.mrb[134].mxu0 }
 0xdca   : > { %v4445_v58 = vpop.f32.mrb[135].mxu0 }
 0xdcb   : > { %v3760_v12 = vadd.f32 %v4443_v54, %v7308_v61  ;;  %v4446_v25 = vadd.f32 %v4445_v58, %v4444_v60 }
 0xdcd   : > { %v3763_v22 = vadd.f32 %v4446_v25, %v7308_v61  ;;  %v7363_v57 = vadd.f32 %v3760_v12, %v7225_v17 }
 0xdcf   : > { %3818 = vadd.xlane.f32.xlu0 %v7363_v57  ;;  %v4447_v39 = vpop.f32.mrb[112].mxu1  ;;  %v7367_v37 = vadd.f32 %v3763_v22, %v7221_v2 }
 0xdd0   : > { %v4448_v9 = vpop.f32.mrb[113].mxu1 }
 0xdd1   : > { %v4449_v34 = vadd.f32 %v4448_v9, %v4447_v39  ;;  %3820 = vadd.xlane.f32.xlu1 %v7367_v37  ;;  %v4450_v32 = vpop.f32.mrb[114].mxu1 }
 0xdd2   : > { %v4451_v7 = vpop.f32.mrb[115].mxu1 }
 0xdd3   : > { %v3768_v5 = vadd.f32 %v4449_v34, %v7308_v61  ;;  %v4452_v29 = vadd.f32 %v4451_v7, %v4450_v32 }
 0xdd5   : > { %v3771_v15 = vadd.f32 %v4452_v29, %v7308_v61  ;;  %v7373_v17 = vadd.f32 %v3768_v5, %v7250_v6 }
 0xdd7   : > { %3822 = vadd.xlane.f32.xlu0 %v7373_v17  ;;  %v4453_v13 = vpop.f32.mrb[116].mxu1  ;;  %v7377_v2 = vadd.f32 %v3771_v15, %v7246_v27 }
 0xdd8   : > { %v4454_v28 = vpop.f32.mrb[117].mxu1 }
 0xdd9   : > { %v4455_v1 = vadd.f32 %v4454_v28, %v4453_v13  ;;  %3824 = vadd.xlane.f32.xlu1 %v7377_v2  ;;  %v4456_v45 = vpop.f32.mrb[118].mxu1 }
 0xdda   : > { %v4457_v41 = vpop.f32.mrb[119].mxu1 }
 0xddb   : > { %v3776_v40 = vadd.f32 %v4455_v1, %v7308_v61  ;;  %v4458_v52 = vadd.f32 %v4457_v41, %v4456_v45 }
 0xddd   : > { %v3779_v36 = vadd.f32 %v4458_v52, %v7308_v61  ;;  %v7383_v6 = vadd.f32 %v3776_v40, %v7262_v46 }
 0xddf   : > { %3826 = vadd.xlane.f32.xlu0 %v7383_v6  ;;  %v7387_v62 = vadd.f32 %v3779_v36, %v7259_v31 }
 0xde1   : > { %3828 = vadd.xlane.f32.xlu1 %v7387_v62 }
 0xe03   : > { %v3799_v27 = vpop.xlane.xlu0 %3798 }
 0xe04   : > { %v3830_v63 = vmul.f32 0.0078125, %v3799_v27 }
 0xe05   : > { %v3801_v55 = vpop.xlane.xlu1 %3800 }
 0xe06   : > { %v7391_v59 = vsub.f32 %v7313_v35, %v3830_v63  ;;  %v3831_v8 = vmul.f32 0.0078125, %v3801_v55 }
 0xe08   : > { %v7394_v44 = vsub.f32 %v7317_v3, %v3831_v8  ;;  %v3862_v46 = vmul.f32 %v7391_v59, %v7391_v59 }
 0xe0a   : > { %3878 = vadd.xlane.f32.xlu0 %v3862_v46  ;;  %v3863_v31 = vmul.f32 %v7394_v44, %v7394_v44 }
 0xe0b   : > { %v3803_v61 = vpop.xlane.xlu0 %3802 }
 0xe0c   : > { %v3832_v53 = vmul.f32 0.0078125, %v3803_v61  ;;  %3880 = vadd.xlane.f32.xlu1 %v3863_v31 }
 0xe0d   : > { %v3805_v0 = vpop.xlane.xlu1 %3804 }
 0xe0e   : > { %v7401_v20 = vsub.f32 %v7323_v47, %v3832_v53  ;;  %v3833_v35 = vmul.f32 0.0078125, %v3805_v0 }
 0xe10   : > { %v7404_v30 = vsub.f32 %v7327_v18, %v3833_v35  ;;  %v3864_v3 = vmul.f32 %v7401_v20, %v7401_v20 }
 0xe12   : > { %3882 = vadd.xlane.f32.xlu0 %v3864_v3  ;;  %v3865_v56 = vmul.f32 %v7404_v30, %v7404_v30 }
 0xe14   : > { %3884 = vadd.xlane.f32.xlu1 %v3865_v56 }
 0xe44   : > { %v3807_v24 = vpop.xlane.xlu0 %3806 }
 0xe45   : > { %v3834_v33 = vmul.f32 0.0078125, %v3807_v24 }
 0xe46   : > { %v3809_v23 = vpop.xlane.xlu1 %3808 }
 0xe47   : > { %v7411_v16 = vsub.f32 %v7333_v38, %v3834_v33  ;;  %v3835_v47 = vmul.f32 0.0078125, %v3809_v23  ;;  %v3996_v23 = vsub.s32 5, %v7679_v14 }
 0xe49   : > { %v7414_v50 = vsub.f32 %v7337_v11, %v3835_v47  ;;  %v3866_v18 = vmul.f32 %v7411_v16, %v7411_v16 }
 0xe4b   : > { %3886 = vadd.xlane.f32.xlu0 %v3866_v18  ;;  %v3867_v10 = vmul.f32 %v7414_v50, %v7414_v50  ;;  %v5266_v18 = vld [vmem:[%s7562_s8 + $0x8] sm:$0xff] }
 0xe4c   : > { %v3811_v26 = vpop.xlane.xlu0 %3810 }
 0xe4d   : > { %v3836_v49 = vmul.f32 0.0078125, %v3811_v26  ;;  %3888 = vadd.xlane.f32.xlu1 %v3867_v10  ;;  %v7476_v10 = vrot.slane %v5266_v18, %v3262_v19 }
 0xe4e   : > { %v3813_v43 = vpop.xlane.xlu1 %3812 }
 0xe4f   : > { %v7421_v54 = vsub.f32 %v7343_v48, %v3836_v49  ;;  %v3837_v38 = vmul.f32 0.0078125, %v3813_v43  ;;  %v7480_v49 = vrot.slane %v7138_v42, %v3996_v23 }
 0xe51   : > { %v7424_v60 = vsub.f32 %v7347_v51, %v3837_v38  ;;  %v3868_v11 = vmul.f32 %v7421_v54, %v7421_v54 }
 0xe53   : > { %3890 = vadd.xlane.f32.xlu0 %v3868_v11  ;;  %v3869_v58 = vmul.f32 %v7424_v60, %v7424_v60 }
 0xe54   : > { %v3815_v12 = vpop.xlane.xlu0 %3814 }
 0xe55   : > { %v3838_v25 = vmul.f32 0.0078125, %v3815_v12  ;;  %3892 = vadd.xlane.f32.xlu1 %v3869_v58 }
 0xe56   : > { %v3817_v22 = vpop.xlane.xlu1 %3816 }
 0xe57   : > { %v7431_v39 = vsub.f32 %v7353_v4, %v3838_v25  ;;  %v3839_v48 = vmul.f32 0.0078125, %v3817_v22 }
 0xe59   : > { %v7434_v9 = vsub.f32 %v7357_v21, %v3839_v48  ;;  %v3870_v51 = vmul.f32 %v7431_v39, %v7431_v39 }
 0xe5b   : > { %3894 = vadd.xlane.f32.xlu0 %v3870_v51  ;;  %v3871_v34 = vmul.f32 %v7434_v9, %v7434_v9 }
 0xe5c   : > { %v3819_v32 = vpop.xlane.xlu0 %3818 }
 0xe5d   : > { %v3840_v7 = vmul.f32 0.0078125, %v3819_v32  ;;  %3896 = vadd.xlane.f32.xlu1 %v3871_v34 }
 0xe5e   : > { %v3821_v5 = vpop.xlane.xlu1 %3820 }
 0xe5f   : > { %v7441_v29 = vsub.f32 %v7363_v57, %v3840_v7  ;;  %v3841_v4 = vmul.f32 0.0078125, %v3821_v5 }
 0xe61   : > { %v7444_v15 = vsub.f32 %v7367_v37, %v3841_v4  ;;  %v3872_v21 = vmul.f32 %v7441_v29, %v7441_v29 }
 0xe63   : > { %3898 = vadd.xlane.f32.xlu0 %v3872_v21  ;;  %v3873_v13 = vmul.f32 %v7444_v15, %v7444_v15 }
 0xe64   : > { %v3823_v28 = vpop.xlane.xlu0 %3822 }
 0xe65   : > { %v3842_v1 = vmul.f32 0.0078125, %v3823_v28  ;;  %3900 = vadd.xlane.f32.xlu1 %v3873_v13 }
 0xe66   : > { %v3825_v45 = vpop.xlane.xlu1 %3824 }
 0xe67   : > { %v7451_v41 = vsub.f32 %v7373_v17, %v3842_v1  ;;  %v3843_v57 = vmul.f32 0.0078125, %v3825_v45 }
 0xe69   : > { %v7454_v40 = vsub.f32 %v7377_v2, %v3843_v57  ;;  %v3874_v37 = vmul.f32 %v7451_v41, %v7451_v41 }
 0xe6b   : > { %3902 = vadd.xlane.f32.xlu0 %v3874_v37  ;;  %v3875_v52 = vmul.f32 %v7454_v40, %v7454_v40 }
 0xe6c   : > { %v3827_v36 = vpop.xlane.xlu0 %3826 }
 0xe6d   : > { %v3844_v27 = vmul.f32 0.0078125, %v3827_v36  ;;  %3904 = vadd.xlane.f32.xlu1 %v3875_v52 }
 0xe6e   : > { %v3829_v63 = vpop.xlane.xlu1 %3828 }
 0xe6f   : > { %v7461_v55 = vsub.f32 %v7383_v6, %v3844_v27  ;;  %v3845_v17 = vmul.f32 0.0078125, %v3829_v63 }
 0xe71   : > { %v7464_v8 = vsub.f32 %v7387_v62, %v3845_v17  ;;  %v3876_v2 = vmul.f32 %v7461_v55, %v7461_v55 }
 0xe73   : > { %3906 = vadd.xlane.f32.xlu0 %v3876_v2  ;;  %v3877_v46 = vmul.f32 %v7464_v8, %v7464_v8 }
 0xe75   : > { %3908 = vadd.xlane.f32.xlu1 %v3877_v46 }
 0xe97   : > { %v3879_v31 = vpop.xlane.xlu0 %3878 }
 0xe98   : > { %v3910_v61 = vmul.f32 0.0078125, %v3879_v31 }
 0xe99   : > { %v3881_v53 = vpop.xlane.xlu1 %3880 }
 0xe9a   : > { %v3926_v0 = vadd.f32 1e-05, %v3910_v61  ;;  %v3911_v35 = vmul.f32 0.0078125, %v3881_v53 }
 0xe9c   : > { %5215 = vrsqrt.f32 %v3926_v0  ;;  %v3927_v6 = vadd.f32 1e-05, %v3911_v35 }
 0xe9e   : > { %5217 = vrsqrt.f32 %v3927_v6 }
 0xe9f   : > { %v3883_v3 = vpop.xlane.xlu0 %3882 }
 0xea0   : > { %v3912_v62 = vmul.f32 0.0078125, %v3883_v3 }
 0xea1   : > { %v3885_v56 = vpop.xlane.xlu1 %3884 }
 0xea2   : > { %v3928_v24 = vadd.f32 1e-05, %v3912_v62  ;;  %v3913_v33 = vmul.f32 0.0078125, %v3885_v56 }
 0xea4   : > { %5219 = vrsqrt.f32 %v3928_v24  ;;  %v3929_v47 = vadd.f32 1e-05, %v3913_v33 }
 0xea6   : > { %v5216_v26 = vpop.eup %5215  ;;  %5221 = vrsqrt.f32 %v3929_v47 }
 0xea7   : > { %v3958_v43 = vmul.f32 %v5216_v26, %v7391_v59 }
 0xea8   : > { %v5218_v38 = vpop.eup %5217 }
 0xea9   : > { %v3978_v11 = vmul.f32 %v7476_v10, %v3958_v43  ;;  %v3959_v58 = vmul.f32 %v5218_v38, %v7394_v44 }
 0xeab   : > { %v3998_v14 = vadd.f32 %v7480_v49, %v3978_v11  ;;  %v3979_v19 = vmul.f32 %v7476_v10, %v3959_v58 }
 0xead   : > { %4014 = vst [vmem:[%s7488_s17] sm:$0xff] %v3998_v14  ;;  %v3999_v42 = vadd.f32 %v7480_v49, %v3979_v19 }
 0xeae   : > { %v5220_v59 = vpop.eup %5219 }
 0xeaf   : > { %4015 = vst [vmem:[%s7488_s17 + $0x8] sm:$0xff] %v3999_v42  ;;  %v3960_v44 = vmul.f32 %v5220_v59, %v7401_v20 }
 0xeb0   : > { %v5222_v12 = vpop.eup %5221 }
 0xeb1   : > { %v3980_v25 = vmul.f32 %v7476_v10, %v3960_v44  ;;  %v3961_v22 = vmul.f32 %v5222_v12, %v7404_v30 }
 0xeb3   : > { %v4000_v48 = vadd.f32 %v7480_v49, %v3980_v25  ;;  %v3981_v51 = vmul.f32 %v7476_v10, %v3961_v22 }
 0xeb5   : > { %4016 = vst [vmem:[%s7488_s17 + $0x10] sm:$0xff] %v4000_v48  ;;  %v4001_v34 = vadd.f32 %v7480_v49, %v3981_v51 }
 0xeb7   : > { %4017 = vst [vmem:[%s7488_s17 + $0x18] sm:$0xff] %v4001_v34 }
 0xed8   : > { %v3887_v32 = vpop.xlane.xlu0 %3886 }
 0xed9   : > { %v3914_v7 = vmul.f32 0.0078125, %v3887_v32 }
 0xeda   : > { %v3889_v5 = vpop.xlane.xlu1 %3888 }
 0xedb   : > { %v3930_v4 = vadd.f32 1e-05, %v3914_v7  ;;  %v3915_v21 = vmul.f32 0.0078125, %v3889_v5 }
 0xedd   : > { %5223 = vrsqrt.f32 %v3930_v4  ;;  %v3931_v20 = vadd.f32 1e-05, %v3915_v21 }
 0xedf   : > { %5225 = vrsqrt.f32 %v3931_v20 }
 0xee0   : > { %v3891_v13 = vpop.xlane.xlu0 %3890 }
 0xee1   : > { %v3916_v28 = vmul.f32 0.0078125, %v3891_v13 }
 0xee2   : > { %v3893_v1 = vpop.xlane.xlu1 %3892 }
 0xee3   : > { %v3932_v30 = vadd.f32 1e-05, %v3916_v28  ;;  %v3917_v45 = vmul.f32 0.0078125, %v3893_v1 }
 0xee5   : > { %5227 = vrsqrt.f32 %v3932_v30  ;;  %v3933_v57 = vadd.f32 1e-05, %v3917_v45 }
 0xee7   : > { %v5224_v37 = vpop.eup %5223  ;;  %5229 = vrsqrt.f32 %v3933_v57 }
 0xee8   : > { %v3962_v52 = vmul.f32 %v5224_v37, %v7411_v16  ;;  %v3895_v36 = vpop.xlane.xlu0 %3894 }
 0xee9   : > { %v5226_v27 = vpop.eup %5225  ;;  %v3918_v63 = vmul.f32 0.0078125, %v3895_v36 }
 0xeea   : > { %v3982_v17 = vmul.f32 %v7476_v10, %v3962_v52  ;;  %v3963_v2 = vmul.f32 %v5226_v27, %v7414_v50  ;;  %v3897_v46 = vpop.xlane.xlu1 %3896 }
 0xeeb   : > { %v3934_v31 = vadd.f32 1e-05, %v3918_v63  ;;  %v3919_v61 = vmul.f32 0.0078125, %v3897_v46 }
 0xeec   : > { %v4002_v53 = vadd.f32 %v7480_v49, %v3982_v17  ;;  %v3983_v0 = vmul.f32 %v7476_v10, %v3963_v2 }
 0xeed   : > { %5231 = vrsqrt.f32 %v3934_v31  ;;  %v3935_v35 = vadd.f32 1e-05, %v3919_v61 }
 0xeee   : > { %4018 = vst [vmem:[%s7488_s17 + $0x20] sm:$0xff] %v4002_v53  ;;  %v4003_v16 = vadd.f32 %v7480_v49, %v3983_v0 }
 0xeef   : > { %v5228_v6 = vpop.eup %5227  ;;  %5233 = vrsqrt.f32 %v3935_v35 }
 0xef0   : > { %4019 = vst [vmem:[%s7488_s17 + $0x28] sm:$0xff] %v4003_v16  ;;  %v3964_v3 = vmul.f32 %v5228_v6, %v7421_v54  ;;  %v3899_v62 = vpop.xlane.xlu0 %3898 }
 0xef1   : > { %v5230_v50 = vpop.eup %5229  ;;  %v3920_v56 = vmul.f32 0.0078125, %v3899_v62 }
 0xef2   : > { %v3984_v24 = vmul.f32 %v7476_v10, %v3964_v3  ;;  %v3965_v33 = vmul.f32 %v5230_v50, %v7424_v60  ;;  %v3901_v23 = vpop.xlane.xlu1 %3900 }
 0xef3   : > { %v3936_v47 = vadd.f32 1e-05, %v3920_v56  ;;  %v3921_v18 = vmul.f32 0.0078125, %v3901_v23 }
 0xef4   : > { %v4004_v26 = vadd.f32 %v7480_v49, %v3984_v24  ;;  %v3985_v43 = vmul.f32 %v7476_v10, %v3965_v33 }
 0xef5   : > { %5235 = vrsqrt.f32 %v3936_v47  ;;  %v3937_v38 = vadd.f32 1e-05, %v3921_v18 }
 0xef6   : > { %4020 = vst [vmem:[%s7488_s17 + $0x30] sm:$0xff] %v4004_v26  ;;  %v4005_v54 = vadd.f32 %v7480_v49, %v3985_v43 }
 0xef7   : > { %v5232_v11 = vpop.eup %5231  ;;  %5237 = vrsqrt.f32 %v3937_v38 }
 0xef8   : > { %4021 = vst [vmem:[%s7488_s17 + $0x38] sm:$0xff] %v4005_v54  ;;  %v3966_v58 = vmul.f32 %v5232_v11, %v7431_v39  ;;  %v3903_v14 = vpop.xlane.xlu0 %3902 }
 0xef9   : > { %v5234_v60 = vpop.eup %5233  ;;  %v3922_v19 = vmul.f32 0.0078125, %v3903_v14 }
 0xefa   : > { %v3986_v42 = vmul.f32 %v7476_v10, %v3966_v58  ;;  %v3967_v59 = vmul.f32 %v5234_v60, %v7434_v9  ;;  %v3905_v44 = vpop.xlane.xlu1 %3904 }
 0xefb   : > { %v3938_v12 = vadd.f32 1e-05, %v3922_v19  ;;  %v3923_v25 = vmul.f32 0.0078125, %v3905_v44 }
 0xefc   : > { %v4006_v22 = vadd.f32 %v7480_v49, %v3986_v42  ;;  %v3987_v48 = vmul.f32 %v7476_v10, %v3967_v59 }
 0xefd   : > { %5239 = vrsqrt.f32 %v3938_v12  ;;  %v3939_v51 = vadd.f32 1e-05, %v3923_v25 }
 0xefe   : > { %4022 = vst [vmem:[%s7488_s17 + $0x40] sm:$0xff] %v4006_v22  ;;  %v4007_v39 = vadd.f32 %v7480_v49, %v3987_v48 }
 0xeff   : > { %v5236_v34 = vpop.eup %5235  ;;  %5241 = vrsqrt.f32 %v3939_v51 }
 0xf00   : > { %4023 = vst [vmem:[%s7488_s17 + $0x48] sm:$0xff] %v4007_v39  ;;  %v3968_v32 = vmul.f32 %v5236_v34, %v7441_v29  ;;  %v3907_v7 = vpop.xlane.xlu0 %3906 }
 0xf01   : > { %v5238_v9 = vpop.eup %5237  ;;  %v3924_v5 = vmul.f32 0.0078125, %v3907_v7 }
 0xf02   : > { %v3988_v4 = vmul.f32 %v7476_v10, %v3968_v32  ;;  %v3969_v21 = vmul.f32 %v5238_v9, %v7444_v15  ;;  %v3909_v20 = vpop.xlane.xlu1 %3908 }
 0xf03   : > { %v3940_v13 = vadd.f32 1e-05, %v3924_v5  ;;  %v3925_v28 = vmul.f32 0.0078125, %v3909_v20 }
 0xf04   : > { %v4008_v1 = vadd.f32 %v7480_v49, %v3988_v4  ;;  %v3989_v30 = vmul.f32 %v7476_v10, %v3969_v21 }
 0xf05   : > { %5243 = vrsqrt.f32 %v3940_v13  ;;  %v3941_v45 = vadd.f32 1e-05, %v3925_v28 }
 0xf06   : > { %4024 = vst [vmem:[%s7488_s17 + $0x50] sm:$0xff] %v4008_v1  ;;  %v4009_v29 = vadd.f32 %v7480_v49, %v3989_v30 }
 0xf07   : > { %v5240_v57 = vpop.eup %5239  ;;  %5245 = vrsqrt.f32 %v3941_v45 }
 0xf08   : > { %4025 = vst [vmem:[%s7488_s17 + $0x58] sm:$0xff] %v4009_v29  ;;  %v3970_v37 = vmul.f32 %v5240_v57, %v7451_v41 }
 0xf09   : > { %v5242_v15 = vpop.eup %5241 }
 0xf0a   : > { %v3990_v52 = vmul.f32 %v7476_v10, %v3970_v37  ;;  %v3971_v36 = vmul.f32 %v5242_v15, %v7454_v40 }
 0xf0c   : > { %v4010_v27 = vadd.f32 %v7480_v49, %v3990_v52  ;;  %v3991_v63 = vmul.f32 %v7476_v10, %v3971_v36 }
 0xf0e   : > { %4026 = vst [vmem:[%s7488_s17 + $0x60] sm:$0xff] %v4010_v27  ;;  %v4011_v17 = vadd.f32 %v7480_v49, %v3991_v63 }
 0xf0f   : > { %v5244_v2 = vpop.eup %5243 }
 0xf10   : > { %4027 = vst [vmem:[%s7488_s17 + $0x68] sm:$0xff] %v4011_v17  ;;  %v3972_v46 = vmul.f32 %v5244_v2, %v7461_v55 }
 0xf11   : > { %v5246_v31 = vpop.eup %5245 }
 0xf12   : > { %v3992_v41 = vmul.f32 %v7476_v10, %v3972_v46  ;;  %v3973_v61 = vmul.f32 %v5246_v31, %v7464_v8 }
 0xf14   : > { %v4012_v53 = vadd.f32 %v7480_v49, %v3992_v41  ;;  %v3993_v40 = vmul.f32 %v7476_v10, %v3973_v61 }
 0xf16   : > { %4028 = vst [vmem:[%s7488_s17 + $0x70] sm:$0xff] %v4012_v53  ;;  %v4013_v0 = vadd.f32 %v7480_v49, %v3993_v40 }
 0xf18   : > { %4029 = vst [vmem:[%s7488_s17 + $0x78] sm:$0xff] %v4013_v0 }
 0xf19 PF: > { %s19_s30 = sadd.s32 1, %s5273_s30  }
 0xf1a   : > { %p16_p4 = scmp.ge.s32.totalorder %s19_s30, 4  }
 0xf1c   :  { %18 = sbr.rel (!%p16_p4) target bundleno = 1 (0x1), region = 92 }

</bundles_post_ra>
